<compile_context>
chip_gen: v6e
topology: v6e:2x2x1
jax: 0.10.0
libtpu: 0.0.40
codegen_flags: <defaults>
</compile_context>

<pallas_src>
import math

import jax
import jax.numpy as jnp
from jax import lax
from jax.experimental import pallas as pl
from jax.experimental.pallas import tpu as pltpu


# ----------------------------- cfg (3DCrowdNet defaults) --------------------
class cfg:
    output_hm_shape = (8, 64, 64)      # (D, H, W)
    input_img_shape = (256, 256)       # (H, W)
    sigma = 2.5
    focal = (5000.0, 5000.0)
    princpt = (128.0, 128.0)
    camera_3d_size = 2.5


ROOT_JOINT_IDX = 0

_K_VALUE = math.sqrt(cfg.focal[0] * cfg.focal[1]
                     * cfg.camera_3d_size * cfg.camera_3d_size
                     / (cfg.input_img_shape[0] * cfg.input_img_shape[1]))
_SQRT_INV_2SIGMA2 = 1.0 / (cfg.sigma * math.sqrt(2.0))
_SCALE_X = cfg.output_hm_shape[2] / cfg.input_img_shape[1]
_SCALE_Y = cfg.output_hm_shape[1] / cfg.input_img_shape[0]
_FX_SCALED = cfg.focal[0] * _SCALE_X      # fold "x/z*focal + princpt then *scale"
_FY_SCALED = cfg.focal[1] * _SCALE_Y
_CX_SCALED = cfg.princpt[0] * _SCALE_X
_CY_SCALED = cfg.princpt[1] * _SCALE_Y


# ----------------------------- fused forward kernel -------------------------
def _fused_forward_kernel(joints_ref, mask_ref, cam_ref, regT_ref, meshT_ref,
                          hm_ref, slab_ref, mcamT_ref):
    # joints_ref: (Bb, J, 2)  mask_ref: (Bb, J, 1)  cam_ref: (Bb, 1, 3)
    # regT_ref:   (V, Jn)     meshT_ref: (Bb, 3, V)
    # hm_ref:     (Bb, J, HW) lane-dense flat heatmap
    # slab_ref:   (Bb, 8, 128) packed tiny outputs:
    #             row 0 lanes 0:3  -> cam_trans
    #             rows 1:3 lanes 0:Jn -> joint_proj^T (x row, y row)
    #             rows 3:6 lanes 0:Jn -> joint_cam^T (root-centered)
    # mcamT_ref:  (Bb, 3, V) root-centered mesh (transposed)
    Bb, J, HW = hm_ref.shape
    Jn = regT_ref.shape[1]
    W = cfg.output_hm_shape[2]
    S = _SQRT_INV_2SIGMA2

    # ---- 2D gaussian heatmap, fused with joints_mask ------------------------
    # exp(-((col-x)^2 + (row-y)^2) / (2 sigma^2)); the 1/(2 sigma^2) is folded
    # into the coordinates via S = 1/(sigma*sqrt(2)).
    idx = lax.broadcasted_iota(jnp.int32, (1, 1, HW), 2)
    if (W & (W - 1)) == 0:                                   # static: W = 2^k
        col = jnp.bitwise_and(idx, W - 1).astype(jnp.float32) * S
        row = jnp.right_shift(idx, W.bit_length() - 1).astype(jnp.float32) * S
    else:
        col = (idx % W).astype(jnp.float32) * S
        row = (idx // W).astype(jnp.float32) * S
    j = joints_ref[...]                                      # (Bb, J, 2)
    x = j[:, :, 0:1] * S                                     # (Bb, J, 1)
    y = j[:, :, 1:2] * S
    dx = col - x                                             # (Bb, J, HW)
    dy = row - y
    hm_ref[...] = jnp.exp(-(dx * dx + dy * dy)) * mask_ref[...]

    # ---- packed small-output slab -------------------------------------------
    slab_ref[...] = jnp.zeros_like(slab_ref)

    # camera translation (get_camera_trans, is_render=False path)
    cam = cam_ref[...]                                       # (Bb, 1, 3)
    gamma = pl.reciprocal(1.0 + jnp.exp(-cam[:, :, 2:3]))    # sigmoid, (Bb,1,1)
    slab_ref[:, 0:1, 0:2] = cam[:, :, 0:2]
    slab_ref[:, 0:1, 2:3] = _K_VALUE * gamma

    # ---- joint regression + projection (V / Jn on lanes) --------------------
    reg = regT_ref[...]                                      # (V, Jn)
    jcT = jnp.stack(
        [jnp.dot(meshT_ref[b], reg, preferred_element_type=jnp.float32)
         for b in range(Bb)], axis=0)                        # (Bb, 3, Jn)

    inv_z = pl.reciprocal(jcT[:, 2:3, :] + 1e-4)             # (Bb, 1, Jn)
    slab_ref[:, 1:2, 0:Jn] = jcT[:, 0:1, :] * inv_z * _FX_SCALED + _CX_SCALED
    slab_ref[:, 2:3, 0:Jn] = jcT[:, 1:2, :] * inv_z * _FY_SCALED + _CY_SCALED

    root = jcT[:, :, ROOT_JOINT_IDX:ROOT_JOINT_IDX + 1]      # (Bb, 3, 1)
    slab_ref[:, 3:6, 0:Jn] = jcT - root
    mcamT_ref[...] = meshT_ref[...] - root


# ----------------------------- wrapper ---------------------------------------
def _pick_block_batch(B, J, HW):
    """Largest per-step batch block that (a) divides B, (b) keeps the
    double-buffered heatmap block well under the v5e 16 MiB scoped-VMEM
    default, (c) keeps >= 2 grid steps when B >= 2 (v7x's second TC)."""
    budget = 8 * 1024 * 1024                  # bytes for the hm double-buffer
    per_b = 2 * J * HW * 4
    cap = max(1, budget // per_b)
    best = 1
    for bb in range(1, B + 1):
        if B % bb:
            continue
        if bb > cap:
            continue
        if B >= 2 and B // bb < 2:
            continue
        best = bb
    return best


@jax.jit
def model_forward(joint_coord_img, joints_mask, mesh_cam, cam_param,
                  joint_regressor):
    """Fused forward of the in-file math:
      joint_coord_img: (B, J, 2)  joints_mask: (B, J, 1)
      mesh_cam: (B, V, 3)         cam_param: (B, 3)
      joint_regressor: (Jn, V)
    """
    B, J, _ = joint_coord_img.shape
    Jn, V = joint_regressor.shape
    H, W = cfg.output_hm_shape[1], cfg.output_hm_shape[2]
    HW = H * W
    assert Jn <= 125, "packed output slab assumes Jn fits in 128 lanes"

    Bb = _pick_block_batch(B, J, HW)
    grid = (B // Bb,)

    joints = joint_coord_img.astype(jnp.float32)
    mask = joints_mask.astype(jnp.float32)
    cam3 = cam_param.astype(jnp.float32).reshape(B, 1, 3)
    reg_T = joint_regressor.astype(jnp.float32).T                 # (V, Jn)
    mesh_f32 = mesh_cam.astype(jnp.float32)
    mesh_T = jnp.swapaxes(mesh_f32, 1, 2)                         # (B, 3, V)

    out_shapes = (
        jax.ShapeDtypeStruct((B, J, HW), jnp.float32),   # heatmap (flat, lane-dense)
        jax.ShapeDtypeStruct((B, 8, 128), jnp.float32),  # packed small outputs
        jax.ShapeDtypeStruct((B, 3, V), jnp.float32),    # centered mesh (transposed)
    )

    hm, slab, mcamT = pl.pallas_call(
        _fused_forward_kernel,
        out_shape=out_shapes,
        grid=grid,
        in_specs=[
            pl.BlockSpec((Bb, J, 2), lambda b: (b, 0, 0)),
            pl.BlockSpec((Bb, J, 1), lambda b: (b, 0, 0)),
            pl.BlockSpec((Bb, 1, 3), lambda b: (b, 0, 0)),
            pl.BlockSpec((V, Jn), lambda b: (0, 0)),
            pl.BlockSpec((Bb, 3, V), lambda b: (b, 0, 0)),
        ],
        out_specs=(
            pl.BlockSpec((Bb, J, HW), lambda b: (b, 0, 0)),
            pl.BlockSpec((Bb, 8, 128), lambda b: (b, 0, 0)),
            pl.BlockSpec((Bb, 3, V), lambda b: (b, 0, 0)),
        ),
        compiler_params=pltpu.CompilerParams(
            dimension_semantics=("parallel",)),
    )(joints, mask, cam3, reg_T, mesh_T)

    return {
        "joint_heatmap": hm.reshape(B, J, H, W),          # contiguous, free
        "cam_trans": slab[:, 0, 0:3],                     # (B, 3)
        "joint_proj": jnp.swapaxes(slab[:, 1:3, 0:Jn], 1, 2),   # (B, Jn, 2)
        "joint_cam": jnp.swapaxes(slab[:, 3:6, 0:Jn], 1, 2),    # (B, Jn, 3)
        "smpl_mesh_cam": jnp.swapaxes(mcamT, 1, 2),       # (B, V, 3)
        "mesh_cam_render": mesh_f32,                      # identity of input mesh
    }


# ----------------------------- reference (pure JAX) --------------------------
def _ref_heatmap(joints, mask):
    H, W = cfg.output_hm_shape[1], cfg.output_hm_shape[2]
    xx = jnp.arange(W, dtype=jnp.float32)[None, None, None, :]
    yy = jnp.arange(H, dtype=jnp.float32)[None, None, :, None]
    x = joints[:, :, 0, None, None]
    y = joints[:, :, 1, None, None]
    hm = jnp.exp(-((xx - x) / cfg.sigma) ** 2 / 2.0
                 - ((yy - y) / cfg.sigma) ** 2 / 2.0)
    return hm * mask[:, :, :, None]


def _ref_get_coord(reg, mesh):
    jc = jnp.einsum("jv,bvc->bjc", reg, mesh)
    z = jc[:, :, 2] + 1e-4
    x = jc[:, :, 0] / z * cfg.focal[0] + cfg.princpt[0]
    y = jc[:, :, 1] / z * cfg.focal[1] + cfg.princpt[1]
    x = x / cfg.input_img_shape[1] * cfg.output_hm_shape[2]
    y = y / cfg.input_img_shape[0] * cfg.output_hm_shape[1]
    proj = jnp.stack((x, y), axis=2)
    root = jc[:, ROOT_JOINT_IDX:ROOT_JOINT_IDX + 1, :]
    return proj, jc - root, mesh - root, mesh


def _ref_cam_trans(cam_param):
    t_xy = cam_param[:, :2]
    gamma = jax.nn.sigmoid(cam_param[:, 2])
    return jnp.concatenate((t_xy, (_K_VALUE * gamma)[:, None]), axis=1)


# ----------------------------- main ------------------------------------------
if __name__ == "__main__":
    B, J, V = 2, 30, 128            # batch, joint superset, synthetic mesh verts
    H, W = cfg.output_hm_shape[1], cfg.output_hm_shape[2]

    key = jax.random.PRNGKey(0)
    k1, k2, k3, k4, k5 = jax.random.split(key, 5)

    joint_coord_img = jax.random.uniform(k1, (B, J, 2), jnp.float32) * W
    joints_mask = (jax.random.uniform(k2, (B, J, 1)) > 0.2).astype(jnp.float32)
    mesh_cam = jax.random.normal(k3, (B, V, 3), jnp.float32) * 0.2
    mesh_cam = mesh_cam.at[:, :, 2].add(3.0)          # keep depth positive
    cam_param = jax.random.normal(k4, (B, 3), jnp.float32)
    joint_regressor = jax.nn.softmax(
        jax.random.normal(k5, (J, V), jnp.float32), axis=-1)

    out = model_forward(joint_coord_img, joints_mask, mesh_cam, cam_param,
                        joint_regressor)
    jax.block_until_ready(out)

    # light correctness checks against pure-JAX references
    ref_hm = _ref_heatmap(joint_coord_img, joints_mask)
    assert jnp.allclose(out["joint_heatmap"], ref_hm, rtol=1e-2, atol=1e-2)
    rp, rjc, rmc, rmr = _ref_get_coord(joint_regressor, mesh_cam)
    assert jnp.allclose(out["joint_proj"], rp, rtol=1e-2, atol=1e-2)
    assert jnp.allclose(out["joint_cam"], rjc, rtol=1e-2, atol=1e-2)
    assert jnp.allclose(out["smpl_mesh_cam"], rmc, rtol=1e-2, atol=1e-2)
    assert jnp.allclose(out["mesh_cam_render"], rmr, rtol=1e-2, atol=1e-2)
    assert jnp.allclose(out["cam_trans"], _ref_cam_trans(cam_param),
                        rtol=1e-2, atol=1e-2)

    print("KERNEL_OK")
</pallas_src>

<mosaic_0001>
module attributes {stable_mosaic.version = 11 : i64} {
  func.func @_fused_forward_kernel(%arg0: i32, %arg1: memref<1x30x2xf32, #tpu.memory_space<vmem>>, %arg2: memref<1x30x1xf32, #tpu.memory_space<vmem>>, %arg3: memref<1x1x3xf32, #tpu.memory_space<vmem>>, %arg4: memref<128x30xf32, #tpu.memory_space<vmem>>, %arg5: memref<1x3x128xf32, #tpu.memory_space<vmem>>, %arg6: memref<1x30x4096xf32, #tpu.memory_space<vmem>>, %arg7: memref<1x8x128xf32, #tpu.memory_space<vmem>>, %arg8: memref<1x3x128xf32, #tpu.memory_space<vmem>>) attributes {dimension_semantics = [#tpu.dimension_semantics<parallel>], iteration_bounds = array<i64: 2>, scalar_prefetch = 0 : i64, scratch_operands = 0 : i64, tpu.core_type = #tpu.core_type<tc>, window_params = [{transform_indices = @transform_0, window_bounds = array<i64: 1, 30, 2>}, {transform_indices = @transform_1, window_bounds = array<i64: 1, 30, 1>}, {transform_indices = @transform_2, window_bounds = array<i64: 1, 1, 3>}, {pipeline_mode = #tpu.pipeline_mode<synchronous>, transform_indices = @transform_3, window_bounds = array<i64: 128, 30>}, {transform_indices = @transform_4, window_bounds = array<i64: 1, 3, 128>}, {transform_indices = @transform_5, window_bounds = array<i64: 1, 30, 4096>}, {transform_indices = @transform_6, window_bounds = array<i64: 1, 8, 128>}, {transform_indices = @transform_7, window_bounds = array<i64: 1, 3, 128>}]} {
    %0 = tpu.iota {dimensions = array<i32: 2>} : vector<1x1x4096xi32>
    %c63_i32 = arith.constant 63 : i32
    %1 = vector.broadcast %c63_i32 : i32 to vector<1x1x4096xi32>
    %2 = arith.andi %0, %1 : vector<1x1x4096xi32>
    %3 = arith.sitofp %2 : vector<1x1x4096xi32> to vector<1x1x4096xf32>
    %cst = arith.constant 0.282842726 : f32
    %4 = vector.broadcast %cst : f32 to vector<1x1x4096xf32>
    %5 = arith.mulf %3, %4 : vector<1x1x4096xf32>
    %c6_i32 = arith.constant 6 : i32
    %6 = vector.broadcast %c6_i32 : i32 to vector<1x1x4096xi32>
    %7 = arith.shrsi %0, %6 : vector<1x1x4096xi32>
    %8 = arith.sitofp %7 : vector<1x1x4096xi32> to vector<1x1x4096xf32>
    %cst_0 = arith.constant 0.282842726 : f32
    %9 = vector.broadcast %cst_0 : f32 to vector<1x1x4096xf32>
    %10 = arith.mulf %8, %9 : vector<1x1x4096xf32>
    %c0 = arith.constant 0 : index
    %c0_1 = arith.constant 0 : index
    %c0_2 = arith.constant 0 : index
    %11 = vector.load %arg1[%c0, %c0_1, %c0_2] : memref<1x30x2xf32, #tpu.memory_space<vmem>>, vector<1x30x2xf32>
    %12 = vector.extract_strided_slice %11 {offsets = [0, 0, 0], sizes = [1, 30, 1], strides = [1, 1, 1]} : vector<1x30x2xf32> to vector<1x30x1xf32>
    %cst_3 = arith.constant 0.282842726 : f32
    %13 = vector.broadcast %cst_3 : f32 to vector<1x30x1xf32>
    %14 = arith.mulf %12, %13 : vector<1x30x1xf32>
    %15 = vector.extract_strided_slice %11 {offsets = [0, 0, 1], sizes = [1, 30, 1], strides = [1, 1, 1]} : vector<1x30x2xf32> to vector<1x30x1xf32>
    %cst_4 = arith.constant 0.282842726 : f32
    %16 = vector.broadcast %cst_4 : f32 to vector<1x30x1xf32>
    %17 = arith.mulf %15, %16 : vector<1x30x1xf32>
    %18 = vector.broadcast %5 : vector<1x1x4096xf32> to vector<1x30x4096xf32>
    %19 = vector.broadcast %14 : vector<1x30x1xf32> to vector<1x30x4096xf32>
    %20 = arith.subf %18, %19 : vector<1x30x4096xf32>
    %21 = vector.broadcast %10 : vector<1x1x4096xf32> to vector<1x30x4096xf32>
    %22 = vector.broadcast %17 : vector<1x30x1xf32> to vector<1x30x4096xf32>
    %23 = arith.subf %21, %22 : vector<1x30x4096xf32>
    %24 = arith.mulf %20, %20 : vector<1x30x4096xf32>
    %25 = arith.mulf %23, %23 : vector<1x30x4096xf32>
    %26 = arith.addf %24, %25 : vector<1x30x4096xf32>
    %cst_5 = arith.constant 0.000000e+00 : f32
    %27 = vector.broadcast %cst_5 : f32 to vector<1x30x4096xf32>
    %28 = arith.subf %27, %26 : vector<1x30x4096xf32>
    %29 = math.exp %28 : vector<1x30x4096xf32>
    %c0_6 = arith.constant 0 : index
    %c0_7 = arith.constant 0 : index
    %c0_8 = arith.constant 0 : index
    %30 = vector.load %arg2[%c0_6, %c0_7, %c0_8] : memref<1x30x1xf32, #tpu.memory_space<vmem>>, vector<1x30x1xf32>
    %31 = vector.broadcast %30 : vector<1x30x1xf32> to vector<1x30x4096xf32>
    %32 = arith.mulf %29, %31 : vector<1x30x4096xf32>
    %c0_9 = arith.constant 0 : index
    %c0_10 = arith.constant 0 : index
    %c0_11 = arith.constant 0 : index
    %33 = vector.load %arg6[%c0_9, %c0_10, %c0_11] : memref<1x30x4096xf32, #tpu.memory_space<vmem>>, vector<1x30x4096xf32>
    tpu.vector_store %arg6[%c0_9, %c0_10, %c0_11], %32 {strides = array<i32>} : memref<1x30x4096xf32, #tpu.memory_space<vmem>>, vector<1x30x4096xf32>,
    %cst_12 = arith.constant 0.000000e+00 : f32
    %34 = vector.broadcast %cst_12 : f32 to vector<1x8x128xf32>
    %c0_13 = arith.constant 0 : index
    %c0_14 = arith.constant 0 : index
    %c0_15 = arith.constant 0 : index
    %35 = vector.load %arg7[%c0_13, %c0_14, %c0_15] : memref<1x8x128xf32, #tpu.memory_space<vmem>>, vector<1x8x128xf32>
    tpu.vector_store %arg7[%c0_13, %c0_14, %c0_15], %34 {strides = array<i32>} : memref<1x8x128xf32, #tpu.memory_space<vmem>>, vector<1x8x128xf32>,
    %c0_16 = arith.constant 0 : index
    %c0_17 = arith.constant 0 : index
    %c0_18 = arith.constant 0 : index
    %36 = vector.load %arg3[%c0_16, %c0_17, %c0_18] : memref<1x1x3xf32, #tpu.memory_space<vmem>>, vector<1x1x3xf32>
    %37 = vector.extract_strided_slice %36 {offsets = [0, 0, 2], sizes = [1, 1, 1], strides = [1, 1, 1]} : vector<1x1x3xf32> to vector<1x1x1xf32>
    %cst_19 = arith.constant 0.000000e+00 : f32
    %38 = vector.broadcast %cst_19 : f32 to vector<1x1x1xf32>
    %39 = arith.subf %38, %37 : vector<1x1x1xf32>
    %40 = math.exp %39 : vector<1x1x1xf32>
    %cst_20 = arith.constant 1.000000e+00 : f32
    %41 = vector.broadcast %cst_20 : f32 to vector<1x1x1xf32>
    %42 = arith.addf %41, %40 : vector<1x1x1xf32>
    %43 = tpu.reciprocal %42 : vector<1x1x1xf32> -> vector<1x1x1xf32>
    %44 = vector.extract_strided_slice %36 {offsets = [0, 0, 0], sizes = [1, 1, 2], strides = [1, 1, 1]} : vector<1x1x3xf32> to vector<1x1x2xf32>
    %c0_21 = arith.constant 0 : index
    %c0_22 = arith.constant 0 : index
    %c0_23 = arith.constant 0 : index
    %45 = vector.load %arg7[%c0_21, %c0_22, %c0_23] : memref<1x8x128xf32, #tpu.memory_space<vmem>>, vector<1x1x2xf32>
    tpu.vector_store %arg7[%c0_21, %c0_22, %c0_23], %44 {strides = array<i32>} : memref<1x8x128xf32, #tpu.memory_space<vmem>>, vector<1x1x2xf32>,
    %cst_24 = arith.constant 48.828125 : f32
    %46 = vector.broadcast %cst_24 : f32 to vector<1x1x1xf32>
    %47 = arith.mulf %46, %43 : vector<1x1x1xf32>
    %c0_25 = arith.constant 0 : index
    %c0_26 = arith.constant 0 : index
    %c2 = arith.constant 2 : index
    %48 = vector.load %arg7[%c0_25, %c0_26, %c2] : memref<1x8x128xf32, #tpu.memory_space<vmem>>, vector<1x1x1xf32>
    tpu.vector_store %arg7[%c0_25, %c0_26, %c2], %47 {strides = array<i32>} : memref<1x8x128xf32, #tpu.memory_space<vmem>>, vector<1x1x1xf32>,
    %c0_27 = arith.constant 0 : index
    %c0_28 = arith.constant 0 : index
    %49 = vector.load %arg4[%c0_27, %c0_28] : memref<128x30xf32, #tpu.memory_space<vmem>>, vector<128x30xf32>
    %c0_29 = arith.constant 0 : index
    %c0_30 = arith.constant 0 : index
    %c0_31 = arith.constant 0 : index
    %50 = vector.load %arg5[%c0_29, %c0_30, %c0_31] : memref<1x3x128xf32, #tpu.memory_space<vmem>>, vector<1x3x128xf32>
    %51 = vector.shape_cast %50 : vector<1x3x128xf32> to vector<3x128xf32>
    %cst_32 = arith.constant dense<0.000000e+00> : vector<3x30xf32>
    %52 = tpu.matmul %51, %49, %cst_32 {dimension_numbers = #tpu.dot_dimension_numbers<[1], [0], [0], [1], [0, 0, 1, 1], [], []>} : vector<3x128xf32>, vector<128x30xf32>, vector<3x30xf32> -> vector<3x30xf32>
    %53 = vector.shape_cast %52 : vector<3x30xf32> to vector<1x3x30xf32>
    %54 = vector.extract_strided_slice %53 {offsets = [0, 2, 0], sizes = [1, 1, 30], strides = [1, 1, 1]} : vector<1x3x30xf32> to vector<1x1x30xf32>
    %cst_33 = arith.constant 9.99999974E-5 : f32
    %55 = vector.broadcast %cst_33 : f32 to vector<1x1x30xf32>
    %56 = arith.addf %54, %55 : vector<1x1x30xf32>
    %57 = tpu.reciprocal %56 : vector<1x1x30xf32> -> vector<1x1x30xf32>
    %58 = vector.extract_strided_slice %53 {offsets = [0, 0, 0], sizes = [1, 1, 30], strides = [1, 1, 1]} : vector<1x3x30xf32> to vector<1x1x30xf32>
    %59 = arith.mulf %58, %57 : vector<1x1x30xf32>
    %cst_34 = arith.constant 1.250000e+03 : f32
    %60 = vector.broadcast %cst_34 : f32 to vector<1x1x30xf32>
    %61 = arith.mulf %59, %60 : vector<1x1x30xf32>
    %cst_35 = arith.constant 3.200000e+01 : f32
    %62 = vector.broadcast %cst_35 : f32 to vector<1x1x30xf32>
    %63 = arith.addf %61, %62 : vector<1x1x30xf32>
    %c0_36 = arith.constant 0 : index
    %c1 = arith.constant 1 : index
    %c0_37 = arith.constant 0 : index
    %64 = vector.load %arg7[%c0_36, %c1, %c0_37] : memref<1x8x128xf32, #tpu.memory_space<vmem>>, vector<1x1x30xf32>
    tpu.vector_store %arg7[%c0_36, %c1, %c0_37], %63 {strides = array<i32>} : memref<1x8x128xf32, #tpu.memory_space<vmem>>, vector<1x1x30xf32>,
    %65 = vector.extract_strided_slice %53 {offsets = [0, 1, 0], sizes = [1, 1, 30], strides = [1, 1, 1]} : vector<1x3x30xf32> to vector<1x1x30xf32>
    %66 = arith.mulf %65, %57 : vector<1x1x30xf32>
    %cst_38 = arith.constant 1.250000e+03 : f32
    %67 = vector.broadcast %cst_38 : f32 to vector<1x1x30xf32>
    %68 = arith.mulf %66, %67 : vector<1x1x30xf32>
    %cst_39 = arith.constant 3.200000e+01 : f32
    %69 = vector.broadcast %cst_39 : f32 to vector<1x1x30xf32>
    %70 = arith.addf %68, %69 : vector<1x1x30xf32>
    %c0_40 = arith.constant 0 : index
    %c2_41 = arith.constant 2 : index
    %c0_42 = arith.constant 0 : index
    %71 = vector.load %arg7[%c0_40, %c2_41, %c0_42] : memref<1x8x128xf32, #tpu.memory_space<vmem>>, vector<1x1x30xf32>
    tpu.vector_store %arg7[%c0_40, %c2_41, %c0_42], %70 {strides = array<i32>} : memref<1x8x128xf32, #tpu.memory_space<vmem>>, vector<1x1x30xf32>,
    %72 = vector.extract_strided_slice %53 {offsets = [0, 0, 0], sizes = [1, 3, 1], strides = [1, 1, 1]} : vector<1x3x30xf32> to vector<1x3x1xf32>
    %73 = vector.broadcast %72 : vector<1x3x1xf32> to vector<1x3x30xf32>
    %74 = arith.subf %53, %73 : vector<1x3x30xf32>
    %c0_43 = arith.constant 0 : index
    %c3 = arith.constant 3 : index
    %c0_44 = arith.constant 0 : index
    %75 = vector.load %arg7[%c0_43, %c3, %c0_44] : memref<1x8x128xf32, #tpu.memory_space<vmem>>, vector<1x3x30xf32>
    tpu.vector_store %arg7[%c0_43, %c3, %c0_44], %74 {strides = array<i32>} : memref<1x8x128xf32, #tpu.memory_space<vmem>>, vector<1x3x30xf32>,
    %c0_45 = arith.constant 0 : index
    %c0_46 = arith.constant 0 : index
    %c0_47 = arith.constant 0 : index
    %76 = vector.load %arg5[%c0_45, %c0_46, %c0_47] : memref<1x3x128xf32, #tpu.memory_space<vmem>>, vector<1x3x128xf32>
    %77 = vector.broadcast %72 : vector<1x3x1xf32> to vector<1x3x128xf32>
    %78 = arith.subf %76, %77 : vector<1x3x128xf32>
    %c0_48 = arith.constant 0 : index
    %c0_49 = arith.constant 0 : index
    %c0_50 = arith.constant 0 : index
    %79 = vector.load %arg8[%c0_48, %c0_49, %c0_50] : memref<1x3x128xf32, #tpu.memory_space<vmem>>, vector<1x3x128xf32>
    tpu.vector_store %arg8[%c0_48, %c0_49, %c0_50], %78 {strides = array<i32>} : memref<1x3x128xf32, #tpu.memory_space<vmem>>, vector<1x3x128xf32>,
    return
  }
  func.func @transform_0(%arg0: i32) -> (i32, i32, i32) {
    %c0_i32 = arith.constant 0 : i32
    %c0_i32_0 = arith.constant 0 : i32
    %c0_i32_1 = arith.constant 0 : i32
    return %arg0, %c0_i32, %c0_i32_0 : i32, i32, i32
  }
  func.func @transform_1(%arg0: i32) -> (i32, i32, i32) {
    %c0_i32 = arith.constant 0 : i32
    %c0_i32_0 = arith.constant 0 : i32
    %c0_i32_1 = arith.constant 0 : i32
    return %arg0, %c0_i32, %c0_i32_0 : i32, i32, i32
  }
  func.func @transform_2(%arg0: i32) -> (i32, i32, i32) {
    %c0_i32 = arith.constant 0 : i32
    %c0_i32_0 = arith.constant 0 : i32
    %c0_i32_1 = arith.constant 0 : i32
    return %arg0, %c0_i32, %c0_i32_0 : i32, i32, i32
  }
  func.func @transform_3(%arg0: i32) -> (i32, i32) {
    %c0_i32 = arith.constant 0 : i32
    %c0_i32_0 = arith.constant 0 : i32
    %c0_i32_1 = arith.constant 0 : i32
    return %c0_i32, %c0_i32_0 : i32, i32
  }
  func.func @transform_4(%arg0: i32) -> (i32, i32, i32) {
    %c0_i32 = arith.constant 0 : i32
    %c0_i32_0 = arith.constant 0 : i32
    %c0_i32_1 = arith.constant 0 : i32
    return %arg0, %c0_i32, %c0_i32_0 : i32, i32, i32
  }
  func.func @transform_5(%arg0: i32) -> (i32, i32, i32) {
    %c0_i32 = arith.constant 0 : i32
    %c0_i32_0 = arith.constant 0 : i32
    %c0_i32_1 = arith.constant 0 : i32
    return %arg0, %c0_i32, %c0_i32_0 : i32, i32, i32
  }
  func.func @transform_6(%arg0: i32) -> (i32, i32, i32) {
    %c0_i32 = arith.constant 0 : i32
    %c0_i32_0 = arith.constant 0 : i32
    %c0_i32_1 = arith.constant 0 : i32
    return %arg0, %c0_i32, %c0_i32_0 : i32, i32, i32
  }
  func.func @transform_7(%arg0: i32) -> (i32, i32, i32) {
    %c0_i32 = arith.constant 0 : i32
    %c0_i32_0 = arith.constant 0 : i32
    %c0_i32_1 = arith.constant 0 : i32
    return %arg0, %c0_i32, %c0_i32_0 : i32, i32, i32
  }
}

</mosaic_0001>

<bundles_post_ra>
// kernel: model_forward.1
= control target key start
LH: loop header
LB: loop body
LE: loop exit
PB: predicated region body
PF: predicated region fallthrough
CT: control target
= control target key end

     0   :  { %13 = vsyncpa [#allocation3], 0  ;;  %s5186_s0 = inlined_call_operand.vmem [shape: f32[2,30,2], index: 0, kind: input, shape index: {}]   ;;  %s5187_s1 = inlined_call_operand.vmem [shape: f32[2,30,1], index: 1, kind: input, shape index: {}]   ;;  %s5188_s2 = inlined_call_operand.hbm [shape: f32[2,1,3], index: 2, kind: input, shape index: {}]   ;;  %s5189_s3 = inlined_call_operand.vmem [shape: f32[128,30], index: 3, kind: input, shape index: {}]   ;;  %s5190_s4 = inlined_call_operand.vmem [shape: f32[2,3,128], index: 4, kind: input, shape index: {}]   ;;  %s5191_s5 = inlined_call_operand.vmem [shape: f32[2,30,4096], index: 5, kind: output, shape index: {0}]   ;;  %s5192_s6 = inlined_call_operand.vmem [shape: f32[2,8,128], index: 6, kind: output, shape index: {1}]   ;;  %s5193_s7 = inlined_call_operand.vmem [shape: f32[2,3,128], index: 7, kind: output, shape index: {2}]  }
   0x1   :  { %15 = vsyncpa [#allocation3 + $0x1], 0  ;;  %s2724_s24 = smov 0   ;;  %s2726_s25 = smov 0  }
   0x2   :  { %s2728_s26 = smov 0   ;;  %s2730_s27 = smov 0  }
   0x3 LB: > { %s2743_s28 = sadd.s32 4294967295, %s2677_s27   ;;  %s2746_s29 = sadd.s32 1, %s2677_s27   ;;  %s2677_s27 = sphi %s2730_s27, %s5929_s27   ;;  %s2673_s26 = sphi %s2728_s26, %s5928_s26   ;;  %s2669_s25 = sphi %s2726_s25, %s5927_s25   ;;  %s2665_s24 = sphi %s2724_s24, %s5926_s24  }
   0x4   : > { %s77_s30 = ssub.s32 %s2677_s27, %s2746_s29  ;;  %s80_s8 = sadd.s32 1, %s2673_s26 }
   0x5   : > { %p78_p0 = scmp.eq.s32.totalorder %s77_s30, 0  ;;  %p87_p1 = scmp.ne.s32.totalorder %s2673_s26, %s2669_s25 }
   0x6   : > { %p88_p2 = scmp.eq.s32.totalorder %s2677_s27, 0  ;;  %p93_p3 = scmp.ne.s32.totalorder %s2669_s25, %s2665_s24 }
   0x7   : > { %s2756_s9 = scalar_select %p78_p0, %s2673_s26, %s80_s8  }
   0x8   : > { %p89_p4 = por %p88_p2, %p87_p1  ;;  %p94_p5 = scmp.eq.s32.totalorder %s2743_s28, 0 }
   0x9   : > { %p2310_p6 = scmp.lt.s32.totalorder %s2677_s27, 2  ;;  %s261_s11 = sand.u32 1, %s2673_s26  }
   0xa   : > { %p2760_p7 = por %p94_p5, %p93_p3  ;;  %s2236_s12 = sshll.u32 %s2677_s27, 4 }
   0xb   : > { %s264_s13 = scalar_lea.vmem [#allocation2], %s261_s11  ;;  %s2769_s17 = scalar_lea.hbm %s5188_s2, %s2236_s12 }
   0xc   : > { %s5323_s10 = scalar_select %p2760_p7, 1, 0 }
   0xd   : > { %s271_s14 = sshll.u32 %s264_s13, 4  ;;  %p2773_p8 = pnand %p2310_p6, %p89_p4  ;;  %s2771_s14 = int_to_ptr.vmem [resolvable:$true] %s271_s14 }
   0xe   : > { %s262_s19 = scalar_lea.sflag [#allocation3], %s261_s11  ;;  %s2615_s20 = scalar_lea.hbm %s2769_s17, 16 }
   0xf   : > { %p2616_p11 = scmp.ne.s32.totalorder %s2769_s17, %s2615_s20  ;;  %p2617_p12 = pneg %p2773_p8 }
  0x10   : > { %s2620_s23 = scalar_lea.hbm %s5188_s2, 32  ;;  %p2621_p1 = scmp.lt.s32.totalorder %s2769_s17, %s5188_s2 }
  0x11   : > { %p2618_p13 = pnand %p2617_p12, %p2616_p11  ;;  %p2622_p2 = scmp.lt.s32.totalorder %s2620_s23, %s2615_s20 }
  0x13   : > { %p2619_p0 = pneg %p2618_p13  ;;  %p2623_p3 = por %p2622_p2, %p2621_p1 }
  0x15   : > { %p2624_p4 = pnand %p2623_p3, %p2619_p0 }
  0x17   : > { %2627 = shalt.err (!%p2624_p4)
}
  0x18   : > { %s2628_s8 = scalar_lea.vmem %s2771_s14, 16  ;;  %s2679_s11 = smov [#allocation2]  }
  0x19   : > { %p2629_p5 = scmp.ne.s32.totalorder %s2771_s14, %s2628_s8  ;;  %s2633_s12 = sshll.u32 %s2679_s11, 4  ;;  %s2634_s12 = int_to_ptr.vmem [resolvable:$false] %s2633_s12 }
  0x1a   : > { %s2635_s13 = scalar_lea.vmem %s2634_s12, 32  ;;  %p2636_p13 = scmp.lt.s32.totalorder %s2771_s14, %s2634_s12 }
  0x1b   : > { %p2631_p6 = pnand %p2629_p5, %p2617_p12  ;;  %p2637_p9 = scmp.lt.s32.totalorder %s2635_s13, %s2628_s8 }
  0x1d   : > { %p2632_p11 = pneg %p2631_p6  ;;  %p2638_p10 = por %p2637_p9, %p2636_p13 }
  0x1f   : > { %p2639_p7 = pnand %p2638_p10, %p2632_p11 }
  0x21   : > { %2642 = shalt.err (!%p2639_p7)
}
  0x22   : > { %2309 = dma.hbm_to_vmem [thread:$0]  (!%p2773_p8), %s2769_s17, 16, %s2771_s14, %s262_s19  }
  0x23   : > { %p5325_p0 = scmp.lt.s32.totalorder %s2677_s27, 3  ;;  %p5326_p1 = scmp.ge.s32.totalorder %s2677_s27, 1 }
  0x25   : > { %p284_p12 = pnand %p5326_p1, %p5325_p0 }
  0x27   : > { %287 = sbr.rel (%p284_p12) target bundleno = 559 (0x22f), region = 40 }
  0x2c   : > { %s289_s15 = sand.u32 1, %s2669_s25   ;;  %p5327_p9 = scmp.ne.s32.totalorder %s5323_s10, 0 }
  0x2d   : > { %s290_s16 = scalar_lea.sflag [#allocation3], %s289_s15  ;;  %s2802_s20 = scalar_lea.vmem [#allocation2], %s289_s15 }
  0x2e   : > { %2660 = dma.done.wait (%p5327_p9), %s290_s16, 16  }
  0x2f   : > { %2662 = vsyncadd (%p5327_p9), %s290_s16, 4294967280  ;;  %p344_p7 = scmp.lt.s32.totalorder %s2743_s28, 1  ;;  %v2680_v0 = vmov 0.0   ;;  %vm2681_vm0 = vmmov 0   ;;  %v2682_v1 = vmov 0   ;;  %v1971_v2 = vld [vmem:[%s5189_s3 + $0x78] sm:$0xff]  ;;  %v371_v32 = vlaneseq }
  0x30   : > { %2269 = vmatprep.subr.mxu0 %v2680_v0  ;;  %2301 = vmatprep.mubr.msk.f32.mxu0 %vm2681_vm0, %v2680_v0  ;;  %v1970_v3 = vld [vmem:[%s5189_s3 + $0x70] sm:$0xff]  ;;  %v1969_v4 = vld [vmem:[%s5189_s3 + $0x68] sm:$0xff]  ;;  %v1968_v5 = vld [vmem:[%s5189_s3 + $0x60] sm:$0xff]  ;;  %v2683_v20 = vmov 1   ;;  %vm1951_vm1 = vcmask 8192   ;;  %vm2051_vm2 = vcmask 237568  }
  0x31   : > { %2348 = vset.pattern.permute.xlu1 %v2682_v1  ;;  %2347 = vset.pattern.permute.xlu0 %v2682_v1  ;;  %s5931_s28 = smov (!%p344_p7, %s2743_s28), 1  ;;  %v1967_v6 = vld [vmem:[%s5189_s3 + $0x58] sm:$0xff]  ;;  %v1966_v13 = vld [vmem:[%s5189_s3 + $0x50] sm:$0xff]  ;;  %v1965_v16 = vld [vmem:[%s5189_s3 + $0x48] sm:$0xff]  ;;  %v2909_v33 = vand.u32 127, %v371_v32  ;;  %vm2058_vm3 = vcmask 238593  }
  0x32   : > { %s2245_s27 = sshll.u32 %s5931_s28, 3  ;;  %s2249_s23 = sshll.u32 %s5931_s28, 5  ;;  %2270 = vmatpush3.msra.mxu0 %v1971_v2  ;;  %v1964_v17 = vld [vmem:[%s5189_s3 + $0x40] sm:$0xff]  ;;  %v1963_v18 = vld [vmem:[%s5189_s3 + $0x38] sm:$0xff]  ;;  %v1962_v19 = vld [vmem:[%s5189_s3 + $0x30] sm:$0xff]  ;;  %vm2066_vm4 = vcmask 239616  }
  0x33   : > { %s2826_s22 = scalar_lea.vmem %s5192_s6, %s2245_s27  ;;  %2271 = vmatprep.subr.mxu0 %v2680_v0  ;;  %s348_s12 = scalar_lea.vmem %s5186_s0, %s2249_s23  ;;  %v1961_v21 = vld [vmem:[%s5189_s3 + $0x28] sm:$0xff]  ;;  %v1960_v22 = vld [vmem:[%s5189_s3 + $0x20] sm:$0xff]  ;;  %v1959_v23 = vld [vmem:[%s5189_s3 + $0x18] sm:$0xff]  ;;  %5328 = vst [vmem:[#allocation5_spill] sm:$0xff] %v2909_v33  ;;  %v2912_v34 = vadd.s32 128, %v2909_v33  ;;  %v2915_v35 = vadd.s32 256, %v2909_v33 }
  0x34   : > { %1944 = vst [vmem:[%s2826_s22] sm:$0xff] %v2680_v0  ;;  %2272 = vmatpush3.msra.mxu0 %v1970_v3  ;;  %v598_v7 = vld [vmem:[%s348_s12 + $0x10] sm:$0xff]  ;;  %v596_v9 = vld [vmem:[%s348_s12] sm:$0xff]  ;;  %v599_v10 = vld [vmem:[%s348_s12 + $0x18] sm:$0x3f]  ;;  %s353_s14 = scalar_lea.vmem %s5187_s1, %s2249_s23  ;;  %s2242_s19 = sshll.u32 %s5931_s28, 2  ;;  %v2918_v36 = vadd.s32 384, %v2909_v33 }
  0x35   : > { %2273 = vmatprep.subr.mxu0 %v2680_v0  ;;  %v602_v8 = vmul.f32 0.28284273, %v598_v7  ;;  %v597_v11 = vld [vmem:[%s348_s12 + $0x8] sm:$0xff]  ;;  %v600_v12 = vmul.f32 0.28284273, %v596_v9  ;;  %v1958_v24 = vld [vmem:[%s5189_s3 + $0x10] sm:$0xff]  ;;  %s2899_s12 = scalar_lea.vmem %s5190_s4, %s2242_s19  ;;  %s370_s18 = scalar_lea.vmem %s5193_s7, %s2242_s19 }
  0x36   : > { %2274 = vmatpush3.msra.mxu0 %v1969_v4  ;;  %v603_v14 = vmul.f32 0.28284273, %v599_v10  ;;  %v601_v15 = vmul.f32 0.28284273, %v597_v11  ;;  %v1664_v25 = vld [vmem:[%s353_s14] sm:$0xff]  ;;  %v1957_v26 = vld [vmem:[%s5189_s3 + $0x8] sm:$0xff] }
  0x37   : > { %2275 = vmatprep.subr.mxu0 %v2680_v0  ;;  %616 = vperm.xlu1 %2348, %v602_v8   ;;  %v1665_v27 = vld [vmem:[%s353_s14 + $0x8] sm:$0xff]  ;;  %v1956_v28 = vld [vmem:[%s5189_s3] sm:$0xff]  ;;  %v1666_v29 = vld [vmem:[%s353_s14 + $0x10] sm:$0xff]  ;;  %5329 = vst [vmem:[#allocation6_spill] sm:$0xff] %v2912_v34  ;;  %v2921_v37 = vadd.s32 512, %v2909_v33  ;;  %v2924_v38 = vadd.s32 640, %v2909_v33 }
  0x38   : > { %2276 = vmatpush3.msra.mxu0 %v1968_v5  ;;  %606 = vperm.xlu0 %2347, %v600_v12   ;;  %v1972_v30 = vld [vmem:[%s2899_s12] sm:$0x7]  ;;  %v1667_v31 = vld [vmem:[%s353_s14 + $0x18] sm:$0x3f]  ;;  %5330 = vst [vmem:[#allocation7_spill] sm:$0xff] %v2915_v35  ;;  %5331 = vst [vmem:[#allocation8_spill] sm:$0xff] %v2918_v36 }
  0x39   : > { %2277 = vmatprep.subr.mxu0 %v2680_v0  ;;  %5332 = vst [vmem:[#allocation9_spill] sm:$0xff] %v2921_v37  ;;  %5333 = vst [vmem:[#allocation10_spill] sm:$0xff] %v2924_v38  ;;  %v2927_v39 = vadd.s32 768, %v2909_v33  ;;  %v2930_v40 = vadd.s32 896, %v2909_v33  ;;  %v2933_v41 = vadd.s32 1024, %v2909_v33  ;;  %v2936_v42 = vadd.s32 1152, %v2909_v33 }
  0x3a   : > { %2278 = vmatpush3.msra.mxu0 %v1967_v6  ;;  %v2939_v43 = vadd.s32 1280, %v2909_v33  ;;  %v2942_v44 = vadd.s32 1408, %v2909_v33  ;;  %v2945_v45 = vadd.s32 1536, %v2909_v33  ;;  %v2948_v46 = vadd.s32 1664, %v2909_v33  ;;  %s2251_s16 = sshll.u32 %s5931_s28, 10 }
  0x3b   : > { %2279 = vmatprep.subr.mxu0 %v2680_v0  ;;  %621 = vperm.xlu1 %2348, %v603_v14   ;;  %5334 = vst [vmem:[#allocation11_spill] sm:$0xff] %v2927_v39  ;;  %5335 = vst [vmem:[#allocation12_spill] sm:$0xff] %v2930_v40  ;;  %v2951_v47 = vadd.s32 1792, %v2909_v33  ;;  %v2954_v48 = vadd.s32 1920, %v2909_v33  ;;  %v2957_v49 = vadd.s32 2048, %v2909_v33  ;;  %v2960_v50 = vadd.s32 2176, %v2909_v33  ;;  %s4573_s14 = scalar_lea.vmem %s5191_s5, %s2251_s16 }
  0x3c   : > { %2280 = vmatpush3.msra.mxu0 %v1966_v13  ;;  %611 = vperm.xlu0 %2347, %v601_v15   ;;  %5336 = vst [vmem:[#allocation13_spill] sm:$0xff] %v2933_v41  ;;  %5337 = vst [vmem:[#allocation14_spill] sm:$0xff] %v2936_v42  ;;  %v2963_v51 = vadd.s32 2304, %v2909_v33  ;;  %v2966_v52 = vadd.s32 2432, %v2909_v33  ;;  %v2969_v53 = vadd.s32 2560, %v2909_v33  ;;  %v2972_v54 = vadd.s32 2688, %v2909_v33 }
  0x3d   : > { %2281 = vmatprep.subr.mxu0 %v2680_v0  ;;  %5338 = vst [vmem:[#allocation15_spill] sm:$0xff] %v2939_v43  ;;  %5339 = vst [vmem:[#allocation16_spill] sm:$0xff] %v2942_v44  ;;  %v2975_v55 = vadd.s32 2816, %v2909_v33  ;;  %v2978_v56 = vadd.s32 2944, %v2909_v33  ;;  %v2981_v57 = vadd.s32 3072, %v2909_v33  ;;  %v2984_v58 = vadd.s32 3200, %v2909_v33 }
  0x3e   : > { %2282 = vmatpush3.msra.mxu0 %v1965_v16  ;;  %5340 = vst [vmem:[#allocation17_spill] sm:$0xff] %v2945_v45  ;;  %5341 = vst [vmem:[#allocation18_spill] sm:$0xff] %v2948_v46  ;;  %v2987_v59 = vadd.s32 3328, %v2909_v33  ;;  %v2990_v60 = vadd.s32 3456, %v2909_v33  ;;  %v2993_v61 = vadd.s32 3584, %v2909_v33  ;;  %v2996_v62 = vadd.s32 3712, %v2909_v33 }
  0x3f   : > { %2283 = vmatprep.subr.mxu0 %v2680_v0  ;;  %2350 = vset.pattern.permute.xlu1 %v2683_v20  ;;  %5342 = vst [vmem:[#allocation19_spill] sm:$0xff] %v2951_v47  ;;  %5343 = vst [vmem:[#allocation20_spill] sm:$0xff] %v2954_v48  ;;  %v2999_v63 = vadd.s32 3840, %v2909_v33  ;;  %v405_v2 = vand.u32 63, %v2912_v34  ;;  %v406_v3 = vand.u32 63, %v2915_v35  ;;  %v407_v4 = vand.u32 63, %v2918_v36 }
  0x40   : > { %2284 = vmatpush3.msra.mxu0 %v1964_v17  ;;  %2349 = vset.pattern.permute.xlu0 %v2683_v20  ;;  %5344 = vst [vmem:[#allocation21_spill] sm:$0xff] %v2957_v49  ;;  %5345 = vst [vmem:[#allocation22_spill] sm:$0xff] %v2960_v50  ;;  %v408_v5 = vand.u32 63, %v2921_v37  ;;  %v409_v6 = vand.u32 63, %v2924_v38  ;;  %v410_v7 = vand.u32 63, %v2927_v39  ;;  %v412_v9 = vand.u32 63, %v2933_v41 }
  0x41   : > { %2285 = vmatprep.subr.mxu0 %v2680_v0  ;;  %757 = vperm.xlu1 %2350, %v601_v15   ;;  %5346 = vst [vmem:[#allocation23_spill] sm:$0xff] %v2963_v51  ;;  %5347 = vst [vmem:[#allocation24_spill] sm:$0xff] %v2966_v52  ;;  %v413_v10 = vand.u32 63, %v2936_v42  ;;  %v414_v11 = vand.u32 63, %v2939_v43  ;;  %v416_v13 = vand.u32 63, %v2945_v45  ;;  %v418_v15 = vand.u32 63, %v2951_v47 }
  0x42   : > { %2286 = vmatpush3.msra.mxu0 %v1963_v18  ;;  %753 = vperm.xlu0 %2349, %v600_v12   ;;  %5348 = vst [vmem:[#allocation25_spill] sm:$0xff] %v2969_v53  ;;  %5349 = vst [vmem:[#allocation26_spill] sm:$0xff] %v2972_v54  ;;  %v415_v12 = vand.u32 63, %v2942_v44  ;;  %v419_v16 = vand.u32 63, %v2954_v48  ;;  %v420_v17 = vand.u32 63, %v2957_v49  ;;  %v421_v18 = vand.u32 63, %v2960_v50 }
  0x43   : > { %2287 = vmatprep.subr.mxu0 %v2680_v0  ;;  %5350 = vst [vmem:[#allocation27_spill] sm:$0xff] %v2975_v55  ;;  %5351 = vst [vmem:[#allocation28_spill] sm:$0xff] %v2978_v56  ;;  %v423_v20 = vand.u32 63, %v2966_v52  ;;  %v440_v52 = vcvt.s32.f32 %v408_v5  ;;  %v444_v50 = vcvt.s32.f32 %v412_v9  ;;  %v446_v49 = vcvt.s32.f32 %v414_v11 }
  0x44   : > { %2288 = vmatpush3.msra.mxu0 %v1962_v19  ;;  %5352 = vst [vmem:[#allocation29_spill] sm:$0xff] %v2981_v57  ;;  %5353 = vst [vmem:[#allocation30_spill] sm:$0xff] %v2984_v58  ;;  %v422_v19 = vand.u32 63, %v2963_v51  ;;  %v442_v51 = vcvt.s32.f32 %v410_v7  ;;  %v448_v48 = vcvt.s32.f32 %v416_v13  ;;  %v450_v47 = vcvt.s32.f32 %v418_v15 }
  0x45   : > { %2289 = vmatprep.subr.mxu0 %v2680_v0  ;;  %761 = vperm.xlu1 %2350, %v602_v8   ;;  %5354 = vst [vmem:[#allocation31_spill] sm:$0xff] %v2987_v59  ;;  %5355 = vst [vmem:[#allocation32_spill] sm:$0xff] %v2990_v60  ;;  %v411_v8 = vand.u32 63, %v2930_v40  ;;  %vm1954_vm5 = vcmask 16400  }
  0x46   : > { %2290 = vmatpush3.msra.mxu0 %v1961_v21  ;;  %765 = vperm.xlu0 %2349, %v603_v14   ;;  %5356 = vst [vmem:[#allocation33_spill] sm:$0xff] %v2993_v61  ;;  %5357 = vst [vmem:[#allocation34_spill] sm:$0xff] %v2996_v62  ;;  %v417_v14 = vand.u32 63, %v2948_v46  ;;  %v424_v21 = vand.u32 63, %v2969_v53  ;;  %v438_v53 = vcvt.s32.f32 %v406_v3  ;;  %v452_v46 = vcvt.s32.f32 %v420_v17 }
  0x47   : > { %2291 = vmatprep.subr.mxu0 %v2680_v0  ;;  %5358 = vst [vmem:[#allocation35_spill] sm:$0xff] %v2999_v63  ;;  %v454_v45 = vcvt.s32.f32 %v422_v19 }
  0x48   : > { %2292 = vmatpush3.msra.mxu0 %v1960_v22  ;;  %v425_v22 = vand.u32 63, %v2972_v54 }
  0x49   : > { %2293 = vmatprep.subr.mxu0 %v2680_v0  ;;  %2351 = vset.pattern.permute.xlu1 %v2682_v1 }
  0x4a   : > { %2294 = vmatpush3.msra.mxu0 %v1959_v23  ;;  %1670 = vperm.xlu1 %2351, %v1664_v25   ;;  %v426_v23 = vand.u32 63, %v2975_v55  ;;  %v428_v25 = vand.u32 63, %v2981_v57  ;;  %v437_v55 = vcvt.s32.f32 %v405_v2  ;;  %v441_v57 = vcvt.s32.f32 %v409_v6 }
  0x4b   : > { %2295 = vmatprep.subr.mxu0 %v2680_v0  ;;  %2352 = vset.pattern.permute.xlu0 %v2682_v1  ;;  %v404_v1 = vand.u32 63, %v2909_v33  ;;  %v457_v2 = vcvt.s32.f32 %v425_v22 }
  0x4c   : > { %2296 = vmatpush3.msra.mxu0 %v1958_v24  ;;  %1675 = vperm.xlu0 %2352, %v1665_v27   ;;  %v427_v24 = vand.u32 63, %v2978_v56  ;;  %v430_v27 = vand.u32 63, %v2987_v59  ;;  %v439_v56 = vcvt.s32.f32 %v407_v4  ;;  %v445_v59 = vcvt.s32.f32 %v413_v10 }
  0x4d   : > { %2297 = vmatprep.subr.mxu0 %v2680_v0  ;;  %v436_v54 = vcvt.s32.f32 %v404_v1  ;;  %v456_v1 = vcvt.s32.f32 %v424_v21  ;;  %v458_v3 = vcvt.s32.f32 %v426_v23  ;;  %v460_v5 = vcvt.s32.f32 %v428_v25 }
  0x4e   : > { %2298 = vmatpush3.msra.mxu0 %v1957_v26  ;;  %1680 = vperm.xlu1 %2351, %v1666_v29   ;;  %v429_v26 = vand.u32 63, %v2984_v58  ;;  %v432_v29 = vand.u32 63, %v2993_v61  ;;  %v443_v58 = vcvt.s32.f32 %v411_v8  ;;  %v449_v61 = vcvt.s32.f32 %v417_v14 }
  0x4f   : > { %2299 = vmatprep.subr.mxu0 %v2680_v0  ;;  %v3002_v0 = vadd.s32 3968, %v2909_v33  ;;  %v459_v4 = vcvt.s32.f32 %v427_v24  ;;  %v462_v7 = vcvt.s32.f32 %v430_v27  ;;  %v3036_v8 = vmul.f32 0.28284273, %v436_v54 }
  0x50   : > { %2300 = vmatpush3.msra.mxu0 %v1956_v28  ;;  %v431_v28 = vand.u32 63, %v2990_v60  ;;  %v447_v60 = vcvt.s32.f32 %v415_v12  ;;  %v461_v6 = vcvt.s32.f32 %v429_v26  ;;  %v464_v10 = vcvt.s32.f32 %v432_v29 }
  0x51   : > { %2302 = vmatmul.mubr.f32.vlgmr.msra.gmra.mxu0 %v1972_v30  ;;  %5359 = vst [vmem:[#allocation36_spill] sm:$0xff] %v3002_v0  ;;  %v433_v30 = vand.u32 63, %v2996_v62  ;;  %v435_v32 = vand.u32 63, %v3002_v0  ;;  %v451_v62 = vcvt.s32.f32 %v419_v16  ;;  %v455_v0 = vcvt.s32.f32 %v423_v20 }
  0x52   : > { %1685 = vperm.xlu1 %2351, %v1667_v31   ;;  %v434_v31 = vand.u32 63, %v2999_v63  ;;  %v453_v63 = vcvt.s32.f32 %v421_v18  ;;  %v463_v9 = vcvt.s32.f32 %v431_v28  ;;  %v3038_v11 = vmul.f32 0.28284273, %v437_v55 }
  0x53   : > { %v3040_v12 = vmul.f32 0.28284273, %v438_v53  ;;  %v465_v13 = vcvt.s32.f32 %v433_v30  ;;  %v467_v15 = vcvt.s32.f32 %v435_v32  ;;  %v3042_v16 = vmul.f32 0.28284273, %v439_v56 }
  0x54   : > { %v466_v14 = vcvt.s32.f32 %v434_v31  ;;  %v3044_v18 = vmul.f32 0.28284273, %v440_v52  ;;  %v3046_v19 = vmul.f32 0.28284273, %v441_v57  ;;  %v3048_v20 = vmul.f32 0.28284273, %v442_v51 }
  0x55   : > { %v3051_v21 = vmul.f32 0.28284273, %v443_v58  ;;  %v3053_v55 = vmul.f32 0.28284273, %v444_v50  ;;  %v3055_v53 = vmul.f32 0.28284273, %v445_v59 }
  0x56   : > { %v3058_v23 = vmul.f32 0.28284273, %v446_v49  ;;  %v3060_v56 = vmul.f32 0.28284273, %v447_v60  ;;  %v3062_v52 = vmul.f32 0.28284273, %v448_v48 }
  0x57   : > { %v3065_v51 = vmul.f32 0.28284273, %v449_v61  ;;  %v3067_v24 = vmul.f32 0.28284273, %v450_v47  ;;  %v3069_v58 = vmul.f32 0.28284273, %v451_v62 }
  0x58   : > { %v3072_v59 = vmul.f32 0.28284273, %v452_v46  ;;  %v3074_v25 = vmul.f32 0.28284273, %v453_v63  ;;  %v3076_v49 = vmul.f32 0.28284273, %v454_v45 }
  0x59   : > { %v3079_v48 = vmul.f32 0.28284273, %v455_v0  ;;  %v3081_v26 = vmul.f32 0.28284273, %v456_v1  ;;  %v3083_v61 = vmul.f32 0.28284273, %v457_v2 }
  0x5a   : > { %5360 = vst [vmem:[#allocation37_spill] sm:$0xff] %v3072_v59  ;;  %5361 = vst [vmem:[#allocation38_spill] sm:$0xff] %v3074_v25  ;;  %v3086_v62 = vmul.f32 0.28284273, %v458_v3  ;;  %v3088_v27 = vmul.f32 0.28284273, %v459_v4 }
  0x5b   : > { %5362 = vst [vmem:[#allocation39_spill] sm:$0xff] %v3076_v49  ;;  %5363 = vst [vmem:[#allocation40_spill] sm:$0xff] %v3079_v48  ;;  %v3090_v46 = vmul.f32 0.28284273, %v460_v5  ;;  %v3093_v45 = vmul.f32 0.28284273, %v461_v6 }
  0x5c   : > { %5364 = vst [vmem:[#allocation41_spill] sm:$0xff] %v3081_v26  ;;  %5365 = vst [vmem:[#allocation42_spill] sm:$0xff] %v3083_v61  ;;  %v3095_v28 = vmul.f32 0.28284273, %v462_v7  ;;  %v3097_v0 = vmul.f32 0.28284273, %v463_v9 }
  0x5d   : > { %5366 = vst [vmem:[#allocation43_spill] sm:$0xff] %v3086_v62  ;;  %5367 = vst [vmem:[#allocation44_spill] sm:$0xff] %v3088_v27  ;;  %v3100_v30 = vmul.f32 0.28284273, %v464_v10  ;;  %v3102_v31 = vmul.f32 0.28284273, %v465_v13 }
  0x5e   : > { %5368 = vst [vmem:[#allocation45_spill] sm:$0xff] %v3090_v46  ;;  %5369 = vst [vmem:[#allocation46_spill] sm:$0xff] %v3093_v45  ;;  %v3104_v32 = vmul.f32 0.28284273, %v466_v14  ;;  %v3107_v2 = vmul.f32 0.28284273, %v467_v15 }
  0x5f   : > { %5370 = vst [vmem:[#allocation47_spill] sm:$0xff] %v3095_v28  ;;  %5371 = vst [vmem:[#allocation48_spill] sm:$0xff] %v3097_v0 }
  0x60   : > { %5372 = vst [vmem:[#allocation49_spill] sm:$0xff] %v3100_v30  ;;  %5373 = vst [vmem:[#allocation50_spill] sm:$0xff] %v3102_v31 }
  0x61   : > { %5374 = vst [vmem:[#allocation51_spill] sm:$0xff] %v3104_v32  ;;  %5375 = vst [vmem:[#allocation52_spill] sm:$0xff] %v3107_v2 }
  0xb2   : > { %v617_v17 = vpop.permute.xlu1 %616 }
  0xb3   : > { %v688_v54 = vsub.f32 %v3036_v8, %v617_v17  ;;  %v689_v22 = vsub.f32 %v3038_v11, %v617_v17  ;;  %v690_v57 = vsub.f32 %v3040_v12, %v617_v17  ;;  %v691_v50 = vsub.f32 %v3042_v16, %v617_v17 }
  0xb4   : > { %v692_v60 = vsub.f32 %v3044_v18, %v617_v17  ;;  %v693_v47 = vsub.f32 %v3046_v19, %v617_v17  ;;  %v694_v63 = vsub.f32 %v3048_v20, %v617_v17  ;;  %v695_v29 = vsub.f32 %v3051_v21, %v617_v17 }
  0xb5   : > { %v696_v1 = vsub.f32 %v3053_v55, %v617_v17  ;;  %v697_v3 = vsub.f32 %v3055_v53, %v617_v17  ;;  %v698_v4 = vsub.f32 %v3058_v23, %v617_v17  ;;  %v699_v5 = vsub.f32 %v3060_v56, %v617_v17 }
  0xb6   : > { %v700_v6 = vsub.f32 %v3062_v52, %v617_v17  ;;  %v701_v7 = vsub.f32 %v3065_v51, %v617_v17  ;;  %v702_v9 = vsub.f32 %v3067_v24, %v617_v17  ;;  %v703_v10 = vsub.f32 %v3069_v58, %v617_v17 }
  0xb7   : > { %v704_v13 = vsub.f32 %v3072_v59, %v617_v17  ;;  %v705_v14 = vsub.f32 %v3074_v25, %v617_v17  ;;  %v706_v15 = vsub.f32 %v3076_v49, %v617_v17  ;;  %v707_v44 = vsub.f32 %v3079_v48, %v617_v17 }
  0xb8   : > { %v708_v43 = vsub.f32 %v3081_v26, %v617_v17  ;;  %v709_v42 = vsub.f32 %v3083_v61, %v617_v17  ;;  %v710_v41 = vsub.f32 %v3086_v62, %v617_v17  ;;  %v711_v40 = vsub.f32 %v3088_v27, %v617_v17 }
  0xb9   : > { %v712_v39 = vsub.f32 %v3090_v46, %v617_v17  ;;  %v713_v38 = vsub.f32 %v3093_v45, %v617_v17  ;;  %v714_v37 = vsub.f32 %v3095_v28, %v617_v17  ;;  %v715_v36 = vsub.f32 %v3097_v0, %v617_v17 }
  0xba   : > { %v716_v35 = vsub.f32 %v3100_v30, %v617_v17  ;;  %v717_v34 = vsub.f32 %v3102_v31, %v617_v17  ;;  %v718_v33 = vsub.f32 %v3104_v32, %v617_v17  ;;  %v719_v61 = vsub.f32 %v3107_v2, %v617_v17 }
  0xbb   : > { %v3132_v26 = vmul.f32 %v688_v54, %v688_v54  ;;  %v3134_v62 = vmul.f32 %v689_v22, %v689_v22  ;;  %v3136_v27 = vmul.f32 %v690_v57, %v690_v57  ;;  %v3138_v46 = vmul.f32 %v691_v50, %v691_v50 }
  0xbc   : > { %v3140_v45 = vmul.f32 %v692_v60, %v692_v60  ;;  %v3142_v28 = vmul.f32 %v693_v47, %v693_v47  ;;  %v3144_v0 = vmul.f32 %v694_v63, %v694_v63  ;;  %v3146_v30 = vmul.f32 %v695_v29, %v695_v29 }
  0xbd   : > { %5376 = vst [vmem:[#allocation53_spill] sm:$0xff] %v3132_v26  ;;  %5377 = vst [vmem:[#allocation54_spill] sm:$0xff] %v3134_v62  ;;  %v3148_v31 = vmul.f32 %v696_v1, %v696_v1  ;;  %v3150_v32 = vmul.f32 %v697_v3, %v697_v3  ;;  %v3152_v17 = vmul.f32 %v698_v4, %v698_v4  ;;  %v5418_v62 = vld [vmem:[#allocation51_spill] sm:$0xff] }
  0xbe   : > { %5378 = vst [vmem:[#allocation55_spill] sm:$0xff] %v3136_v27  ;;  %5379 = vst [vmem:[#allocation56_spill] sm:$0xff] %v3138_v46  ;;  %v3154_v54 = vmul.f32 %v699_v5, %v699_v5  ;;  %v3156_v22 = vmul.f32 %v700_v6, %v700_v6  ;;  %v3158_v57 = vmul.f32 %v701_v7, %v701_v7  ;;  %v5417_v46 = vld [vmem:[#allocation50_spill] sm:$0xff] }
  0xbf   : > { %5380 = vst [vmem:[#allocation57_spill] sm:$0xff] %v3140_v45  ;;  %5381 = vst [vmem:[#allocation58_spill] sm:$0xff] %v3142_v28  ;;  %v3160_v50 = vmul.f32 %v702_v9, %v702_v9  ;;  %v3162_v60 = vmul.f32 %v703_v10, %v703_v10  ;;  %v3164_v47 = vmul.f32 %v704_v13, %v704_v13  ;;  %v5416_v28 = vld [vmem:[#allocation49_spill] sm:$0xff] }
  0xc0   : > { %5382 = vst [vmem:[#allocation59_spill] sm:$0xff] %v3144_v0  ;;  %5383 = vst [vmem:[#allocation60_spill] sm:$0xff] %v3146_v30  ;;  %v3166_v63 = vmul.f32 %v705_v14, %v705_v14  ;;  %v3168_v29 = vmul.f32 %v706_v15, %v706_v15  ;;  %v3170_v1 = vmul.f32 %v707_v44, %v707_v44  ;;  %v5415_v30 = vld [vmem:[#allocation48_spill] sm:$0xff] }
  0xc1   : > { %5384 = vst [vmem:[#allocation61_spill] sm:$0xff] %v3148_v31  ;;  %5385 = vst [vmem:[#allocation62_spill] sm:$0xff] %v3150_v32  ;;  %v3172_v3 = vmul.f32 %v708_v43, %v708_v43  ;;  %v3174_v4 = vmul.f32 %v709_v42, %v709_v42  ;;  %v3176_v5 = vmul.f32 %v710_v41, %v710_v41  ;;  %v607_v41 = vpop.permute.xlu0 %606  ;;  %v5414_v32 = vld [vmem:[#allocation47_spill] sm:$0xff] }
  0xc2   : > { %5386 = vst [vmem:[#allocation63_spill] sm:$0xff] %v3152_v17  ;;  %5387 = vst [vmem:[#allocation64_spill] sm:$0xff] %v3154_v54  ;;  %v3178_v6 = vmul.f32 %v711_v40, %v711_v40  ;;  %v3180_v7 = vmul.f32 %v712_v39, %v712_v39  ;;  %v3182_v9 = vmul.f32 %v713_v38, %v713_v38  ;;  %v5413_v54 = vld [vmem:[#allocation46_spill] sm:$0xff] }
  0xc3   : > { %5388 = vst [vmem:[#allocation65_spill] sm:$0xff] %v3156_v22  ;;  %5389 = vst [vmem:[#allocation66_spill] sm:$0xff] %v3158_v57  ;;  %v3184_v10 = vmul.f32 %v714_v37, %v714_v37  ;;  %v3186_v13 = vmul.f32 %v715_v36, %v715_v36  ;;  %v3188_v14 = vmul.f32 %v716_v35, %v716_v35  ;;  %v5412_v57 = vld [vmem:[#allocation45_spill] sm:$0xff] }
  0xc4   : > { %5390 = vst [vmem:[#allocation67_spill] sm:$0xff] %v3160_v50  ;;  %5391 = vst [vmem:[#allocation68_spill] sm:$0xff] %v3162_v60  ;;  %v3190_v44 = vmul.f32 %v717_v34, %v717_v34  ;;  %v3192_v43 = vmul.f32 %v718_v33, %v718_v33  ;;  %v3194_v42 = vmul.f32 %v719_v61, %v719_v61  ;;  %v5411_v60 = vld [vmem:[#allocation44_spill] sm:$0xff] }
  0xc5   : > { %5392 = vst [vmem:[#allocation69_spill] sm:$0xff] %v3164_v47  ;;  %5393 = vst [vmem:[#allocation70_spill] sm:$0xff] %v3166_v63  ;;  %v624_v40 = vsub.f32 %v3036_v8, %v607_v41  ;;  %v625_v39 = vsub.f32 %v3038_v11, %v607_v41  ;;  %v626_v38 = vsub.f32 %v3040_v12, %v607_v41  ;;  %v5410_v63 = vld [vmem:[#allocation43_spill] sm:$0xff] }
  0xc6   : > { %5394 = vst [vmem:[#allocation71_spill] sm:$0xff] %v3168_v29  ;;  %5395 = vst [vmem:[#allocation72_spill] sm:$0xff] %v3170_v1  ;;  %v627_v37 = vsub.f32 %v3042_v16, %v607_v41  ;;  %v628_v36 = vsub.f32 %v3044_v18, %v607_v41  ;;  %v629_v35 = vsub.f32 %v3046_v19, %v607_v41  ;;  %v5409_v1 = vld [vmem:[#allocation42_spill] sm:$0xff] }
  0xc7   : > { %5396 = vst [vmem:[#allocation73_spill] sm:$0xff] %v3172_v3  ;;  %5397 = vst [vmem:[#allocation74_spill] sm:$0xff] %v3174_v4  ;;  %v630_v34 = vsub.f32 %v3048_v20, %v607_v41  ;;  %v631_v33 = vsub.f32 %v3051_v21, %v607_v41  ;;  %v632_v61 = vsub.f32 %v3053_v55, %v607_v41  ;;  %v5408_v4 = vld [vmem:[#allocation41_spill] sm:$0xff] }
  0xc8   : > { %5398 = vst [vmem:[#allocation75_spill] sm:$0xff] %v3176_v5  ;;  %5399 = vst [vmem:[#allocation76_spill] sm:$0xff] %v3178_v6  ;;  %v633_v15 = vsub.f32 %v3055_v53, %v607_v41  ;;  %v642_v6 = vsub.f32 %v3076_v49, %v607_v41  ;;  %v643_v5 = vsub.f32 %v3079_v48, %v607_v41 }
  0xc9   : > { %5400 = vst [vmem:[#allocation77_spill] sm:$0xff] %v3180_v7  ;;  %5401 = vst [vmem:[#allocation78_spill] sm:$0xff] %v3182_v9  ;;  %v640_v9 = vsub.f32 %v3072_v59, %v607_v41  ;;  %v641_v7 = vsub.f32 %v3074_v25, %v607_v41  ;;  %v644_v3 = vsub.f32 %v5408_v4, %v607_v41 }
  0xca   : > { %5402 = vst [vmem:[#allocation79_spill] sm:$0xff] %v3184_v10  ;;  %5403 = vst [vmem:[#allocation80_spill] sm:$0xff] %v3186_v13  ;;  %v638_v13 = vsub.f32 %v3067_v24, %v607_v41  ;;  %v639_v10 = vsub.f32 %v3069_v58, %v607_v41  ;;  %v645_v29 = vsub.f32 %v5409_v1, %v607_v41 }
  0xcb   : > { %5404 = vst [vmem:[#allocation81_spill] sm:$0xff] %v3188_v14  ;;  %5405 = vst [vmem:[#allocation82_spill] sm:$0xff] %v3190_v44  ;;  %v636_v44 = vsub.f32 %v3062_v52, %v607_v41  ;;  %v637_v14 = vsub.f32 %v3065_v51, %v607_v41  ;;  %v646_v47 = vsub.f32 %v5410_v63, %v607_v41 }
  0xcc   : > { %5406 = vst [vmem:[#allocation83_spill] sm:$0xff] %v3192_v43  ;;  %5407 = vst [vmem:[#allocation84_spill] sm:$0xff] %v3194_v42  ;;  %v634_v42 = vsub.f32 %v3058_v23, %v607_v41  ;;  %v635_v43 = vsub.f32 %v3060_v56, %v607_v41  ;;  %v647_v50 = vsub.f32 %v5411_v60, %v607_v41 }
  0xcd   : > { %v648_v22 = vsub.f32 %v5412_v57, %v607_v41  ;;  %v649_v17 = vsub.f32 %v5413_v54, %v607_v41  ;;  %v650_v31 = vsub.f32 %v5414_v32, %v607_v41  ;;  %v651_v0 = vsub.f32 %v5415_v30, %v607_v41 }
  0xce   : > { %v652_v45 = vsub.f32 %v5416_v28, %v607_v41  ;;  %v653_v27 = vsub.f32 %v5417_v46, %v607_v41  ;;  %v654_v26 = vsub.f32 %v5418_v62, %v607_v41  ;;  %v655_v48 = vsub.f32 %v3107_v2, %v607_v41 }
  0xcf   : > { %v3228_v49 = vmul.f32 %v624_v40, %v624_v40  ;;  %v3230_v25 = vmul.f32 %v625_v39, %v625_v39  ;;  %v3232_v59 = vmul.f32 %v626_v38, %v626_v38  ;;  %v3234_v57 = vmul.f32 %v627_v37, %v627_v37 }
  0xd0   : > { %v3236_v54 = vmul.f32 %v628_v36, %v628_v36  ;;  %v3238_v32 = vmul.f32 %v629_v35, %v629_v35  ;;  %v3240_v30 = vmul.f32 %v630_v34, %v630_v34  ;;  %v3242_v28 = vmul.f32 %v631_v33, %v631_v33 }
  0xd1   : > { %5419 = vst [vmem:[#allocation41_spill] sm:$0xff] %v3228_v49  ;;  %5420 = vst [vmem:[#allocation42_spill] sm:$0xff] %v3230_v25  ;;  %v3244_v46 = vmul.f32 %v632_v61, %v632_v61  ;;  %v3246_v62 = vmul.f32 %v633_v15, %v633_v15  ;;  %v3248_v41 = vmul.f32 %v634_v42, %v634_v42  ;;  %v5462_v49 = vld [vmem:[#allocation40_spill] sm:$0xff] }
  0xd2   : > { %5421 = vst [vmem:[#allocation85_spill] sm:$0xff] %v3232_v59  ;;  %5422 = vst [vmem:[#allocation86_spill] sm:$0xff] %v3234_v57  ;;  %v3250_v40 = vmul.f32 %v635_v43, %v635_v43  ;;  %v3252_v39 = vmul.f32 %v636_v44, %v636_v44  ;;  %v3254_v38 = vmul.f32 %v637_v14, %v637_v14  ;;  %v5461_v59 = vld [vmem:[#allocation39_spill] sm:$0xff] }
  0xd3   : > { %5423 = vst [vmem:[#allocation87_spill] sm:$0xff] %v3236_v54  ;;  %5424 = vst [vmem:[#allocation88_spill] sm:$0xff] %v3238_v32  ;;  %v3256_v37 = vmul.f32 %v638_v13, %v638_v13  ;;  %v3258_v36 = vmul.f32 %v639_v10, %v639_v10  ;;  %v3260_v35 = vmul.f32 %v640_v9, %v640_v9  ;;  %v5460_v54 = vld [vmem:[#allocation38_spill] sm:$0xff] }
  0xd4   : > { %5425 = vst [vmem:[#allocation89_spill] sm:$0xff] %v3240_v30  ;;  %5426 = vst [vmem:[#allocation90_spill] sm:$0xff] %v3242_v28  ;;  %v3262_v34 = vmul.f32 %v641_v7, %v641_v7  ;;  %v3264_v33 = vmul.f32 %v642_v6, %v642_v6  ;;  %v3266_v61 = vmul.f32 %v643_v5, %v643_v5  ;;  %v5459_v30 = vld [vmem:[#allocation37_spill] sm:$0xff] }
  0xd5   : > { %5427 = vst [vmem:[#allocation91_spill] sm:$0xff] %v3244_v46  ;;  %5428 = vst [vmem:[#allocation92_spill] sm:$0xff] %v3246_v62  ;;  %v3268_v42 = vmul.f32 %v644_v3, %v644_v3  ;;  %v3270_v43 = vmul.f32 %v645_v29, %v645_v29  ;;  %v3272_v44 = vmul.f32 %v646_v47, %v646_v47  ;;  %v622_v47 = vpop.permute.xlu1 %621  ;;  %v5457_v62 = vld [vmem:[#allocation51_spill] sm:$0xff] }
  0xd6   : > { %5429 = vst [vmem:[#allocation93_spill] sm:$0xff] %v3248_v41  ;;  %5430 = vst [vmem:[#allocation94_spill] sm:$0xff] %v3250_v40  ;;  %v3274_v14 = vmul.f32 %v647_v50, %v647_v50  ;;  %v3276_v13 = vmul.f32 %v648_v22, %v648_v22  ;;  %v3278_v10 = vmul.f32 %v649_v17, %v649_v17  ;;  %v5456_v40 = vld [vmem:[#allocation50_spill] sm:$0xff] }
  0xd7   : > { %5431 = vst [vmem:[#allocation95_spill] sm:$0xff] %v3252_v39  ;;  %5432 = vst [vmem:[#allocation96_spill] sm:$0xff] %v3254_v38  ;;  %v3280_v9 = vmul.f32 %v650_v31, %v650_v31  ;;  %v3282_v7 = vmul.f32 %v651_v0, %v651_v0  ;;  %v3284_v6 = vmul.f32 %v652_v45, %v652_v45  ;;  %v5455_v38 = vld [vmem:[#allocation49_spill] sm:$0xff] }
  0xd8   : > { %5433 = vst [vmem:[#allocation97_spill] sm:$0xff] %v3256_v37  ;;  %5434 = vst [vmem:[#allocation98_spill] sm:$0xff] %v3258_v36  ;;  %v3286_v5 = vmul.f32 %v653_v27, %v653_v27  ;;  %v3288_v3 = vmul.f32 %v654_v26, %v654_v26  ;;  %v3290_v29 = vmul.f32 %v655_v48, %v655_v48  ;;  %v5454_v36 = vld [vmem:[#allocation48_spill] sm:$0xff] }
  0xd9   : > { %5435 = vst [vmem:[#allocation99_spill] sm:$0xff] %v3260_v35  ;;  %5436 = vst [vmem:[#allocation100_spill] sm:$0xff] %v3262_v34  ;;  %v720_v50 = vsub.f32 %v3036_v8, %v622_v47  ;;  %v721_v22 = vsub.f32 %v3038_v11, %v622_v47  ;;  %v722_v17 = vsub.f32 %v3040_v12, %v622_v47  ;;  %v5453_v34 = vld [vmem:[#allocation47_spill] sm:$0xff] }
  0xda   : > { %5437 = vst [vmem:[#allocation101_spill] sm:$0xff] %v3264_v33  ;;  %5438 = vst [vmem:[#allocation102_spill] sm:$0xff] %v3266_v61  ;;  %v723_v31 = vsub.f32 %v3042_v16, %v622_v47  ;;  %v724_v0 = vsub.f32 %v3044_v18, %v622_v47  ;;  %v725_v45 = vsub.f32 %v3046_v19, %v622_v47  ;;  %v5452_v61 = vld [vmem:[#allocation46_spill] sm:$0xff] }
  0xdb   : > { %5439 = vst [vmem:[#allocation103_spill] sm:$0xff] %v3268_v42  ;;  %5440 = vst [vmem:[#allocation104_spill] sm:$0xff] %v3270_v43  ;;  %v726_v27 = vsub.f32 %v3048_v20, %v622_v47  ;;  %v727_v26 = vsub.f32 %v3051_v21, %v622_v47  ;;  %v728_v48 = vsub.f32 %v3053_v55, %v622_v47  ;;  %v5451_v43 = vld [vmem:[#allocation45_spill] sm:$0xff] }
  0xdc   : > { %5441 = vst [vmem:[#allocation105_spill] sm:$0xff] %v3272_v44  ;;  %5442 = vst [vmem:[#allocation106_spill] sm:$0xff] %v3274_v14  ;;  %v729_v15 = vsub.f32 %v3055_v53, %v622_v47  ;;  %v742_v14 = vsub.f32 %v5410_v63, %v622_v47  ;;  %v743_v44 = vsub.f32 %v5411_v60, %v622_v47 }
  0xdd   : > { %5443 = vst [vmem:[#allocation107_spill] sm:$0xff] %v3276_v13  ;;  %5444 = vst [vmem:[#allocation108_spill] sm:$0xff] %v3278_v10  ;;  %v740_v10 = vsub.f32 %v5408_v4, %v622_v47  ;;  %v741_v13 = vsub.f32 %v5409_v1, %v622_v47  ;;  %v744_v42 = vsub.f32 %v5451_v43, %v622_v47 }
  0xde   : > { %5445 = vst [vmem:[#allocation109_spill] sm:$0xff] %v3280_v9  ;;  %5446 = vst [vmem:[#allocation110_spill] sm:$0xff] %v3282_v7  ;;  %v734_v7 = vsub.f32 %v3067_v24, %v622_v47  ;;  %v735_v9 = vsub.f32 %v3069_v58, %v622_v47  ;;  %v745_v33 = vsub.f32 %v5452_v61, %v622_v47 }
  0xdf   : > { %5447 = vst [vmem:[#allocation111_spill] sm:$0xff] %v3284_v6  ;;  %5448 = vst [vmem:[#allocation112_spill] sm:$0xff] %v3286_v5  ;;  %v732_v5 = vsub.f32 %v3062_v52, %v622_v47  ;;  %v733_v6 = vsub.f32 %v3065_v51, %v622_v47  ;;  %v746_v35 = vsub.f32 %v5453_v34, %v622_v47 }
  0xe0   : > { %5449 = vst [vmem:[#allocation113_spill] sm:$0xff] %v3288_v3  ;;  %5450 = vst [vmem:[#allocation114_spill] sm:$0xff] %v3290_v29  ;;  %v730_v29 = vsub.f32 %v3058_v23, %v622_v47  ;;  %v731_v3 = vsub.f32 %v3060_v56, %v622_v47  ;;  %v747_v37 = vsub.f32 %v5454_v36, %v622_v47 }
  0xe1   : > { %v748_v39 = vsub.f32 %v5455_v38, %v622_v47  ;;  %v749_v41 = vsub.f32 %v5456_v40, %v622_v47  ;;  %v750_v46 = vsub.f32 %v5457_v62, %v622_v47  ;;  %v3320_v28 = vsub.f32 %v3107_v2, %v622_v47 }
  0xe2   : > { %v736_v32 = vsub.f32 %v5459_v30, %v622_v47  ;;  %v737_v57 = vsub.f32 %v5460_v54, %v622_v47  ;;  %v738_v25 = vsub.f32 %v5461_v59, %v622_v47  ;;  %v739_v61 = vsub.f32 %v5462_v49, %v622_v47 }
  0xe3   : > { %5458 = vst [vmem:[#allocation115_spill] sm:$0xff] %v3320_v28  ;;  %v3326_v34 = vmul.f32 %v720_v50, %v720_v50  ;;  %v3328_v36 = vmul.f32 %v721_v22, %v721_v22  ;;  %v3330_v38 = vmul.f32 %v722_v17, %v722_v17  ;;  %v3332_v40 = vmul.f32 %v723_v31, %v723_v31 }
  0xe4   : > { %v3334_v62 = vmul.f32 %v724_v0, %v724_v0  ;;  %v3336_v2 = vmul.f32 %v725_v45, %v725_v45  ;;  %v3338_v28 = vmul.f32 %v726_v27, %v726_v27  ;;  %v3340_v43 = vmul.f32 %v727_v26, %v727_v26 }
  0xe5   : > { %5463 = vst [vmem:[#allocation37_spill] sm:$0xff] %v3326_v34  ;;  %5464 = vst [vmem:[#allocation38_spill] sm:$0xff] %v3328_v36  ;;  %v3342_v60 = vmul.f32 %v728_v48, %v728_v48  ;;  %v3344_v63 = vmul.f32 %v729_v15, %v729_v15  ;;  %v3346_v47 = vmul.f32 %v730_v29, %v730_v29  ;;  %v5546_v36 = vld [vmem:[#allocation25_spill] sm:$0xff]  ;;  %v5548_v34 = vld [vmem:[#allocation27_spill] sm:$0xff] }
  0xe6   : > { %5465 = vst [vmem:[#allocation39_spill] sm:$0xff] %v3330_v38  ;;  %5466 = vst [vmem:[#allocation40_spill] sm:$0xff] %v3332_v40  ;;  %v3348_v50 = vmul.f32 %v731_v3, %v731_v3  ;;  %v3350_v22 = vmul.f32 %v732_v5, %v732_v5  ;;  %v3352_v17 = vmul.f32 %v733_v6, %v733_v6  ;;  %v5544_v40 = vld [vmem:[#allocation23_spill] sm:$0xff]  ;;  %v5545_v38 = vld [vmem:[#allocation24_spill] sm:$0xff] }
  0xe7   : > { %5467 = vst [vmem:[#allocation116_spill] sm:$0xff] %v3334_v62  ;;  %5468 = vst [vmem:[#allocation117_spill] sm:$0xff] %v3336_v2  ;;  %v3354_v31 = vmul.f32 %v734_v7, %v734_v7  ;;  %v3356_v0 = vmul.f32 %v735_v9, %v735_v9  ;;  %v3358_v45 = vmul.f32 %v736_v32, %v736_v32  ;;  %v5541_v2 = vld [vmem:[#allocation21_spill] sm:$0xff] }
  0xe8   : > { %5469 = vst [vmem:[#allocation118_spill] sm:$0xff] %v3338_v28  ;;  %5470 = vst [vmem:[#allocation119_spill] sm:$0xff] %v3340_v43  ;;  %v3360_v27 = vmul.f32 %v737_v57, %v737_v57  ;;  %v3362_v26 = vmul.f32 %v738_v25, %v738_v25  ;;  %v3364_v48 = vmul.f32 %v739_v61, %v739_v61  ;;  %v612_v25 = vpop.permute.xlu0 %611  ;;  %v5539_v43 = vld [vmem:[#allocation19_spill] sm:$0xff]  ;;  %v5540_v28 = vld [vmem:[#allocation20_spill] sm:$0xff] }
  0xe9   : > { %5471 = vst [vmem:[#allocation120_spill] sm:$0xff] %v3342_v60  ;;  %5472 = vst [vmem:[#allocation121_spill] sm:$0xff] %v3344_v63  ;;  %v3366_v29 = vmul.f32 %v740_v10, %v740_v10  ;;  %v3368_v3 = vmul.f32 %v741_v13, %v741_v13  ;;  %v3370_v5 = vmul.f32 %v742_v14, %v742_v14  ;;  %v5537_v63 = vld [vmem:[#allocation17_spill] sm:$0xff]  ;;  %v5538_v60 = vld [vmem:[#allocation18_spill] sm:$0xff] }
  0xea   : > { %5473 = vst [vmem:[#allocation122_spill] sm:$0xff] %v3346_v47  ;;  %5474 = vst [vmem:[#allocation123_spill] sm:$0xff] %v3348_v50  ;;  %v3372_v6 = vmul.f32 %v743_v44, %v743_v44  ;;  %v3374_v7 = vmul.f32 %v744_v42, %v744_v42  ;;  %v3376_v9 = vmul.f32 %v745_v33, %v745_v33  ;;  %v5535_v50 = vld [vmem:[#allocation15_spill] sm:$0xff]  ;;  %v5536_v47 = vld [vmem:[#allocation16_spill] sm:$0xff] }
  0xeb   : > { %5475 = vst [vmem:[#allocation124_spill] sm:$0xff] %v3350_v22  ;;  %5476 = vst [vmem:[#allocation125_spill] sm:$0xff] %v3352_v17  ;;  %v3378_v32 = vmul.f32 %v746_v35, %v746_v35  ;;  %v3380_v57 = vmul.f32 %v747_v37, %v747_v37  ;;  %v3382_v15 = vmul.f32 %v748_v39, %v748_v39 }
  0xec   : > { %5477 = vst [vmem:[#allocation126_spill] sm:$0xff] %v3354_v31  ;;  %5478 = vst [vmem:[#allocation127_spill] sm:$0xff] %v3356_v0  ;;  %v3384_v61 = vmul.f32 %v749_v41, %v749_v41  ;;  %v3386_v10 = vmul.f32 %v750_v46, %v750_v46  ;;  %v656_v14 = vsub.f32 %v3036_v8, %v612_v25 }
  0xed   : > { %5479 = vst [vmem:[#allocation128_spill] sm:$0xff] %v3358_v45  ;;  %5480 = vst [vmem:[#allocation129_spill] sm:$0xff] %v3360_v27  ;;  %v657_v44 = vsub.f32 %v3038_v11, %v612_v25  ;;  %v658_v42 = vsub.f32 %v3040_v12, %v612_v25  ;;  %v659_v33 = vsub.f32 %v3042_v16, %v612_v25 }
  0xee   : > { %5481 = vst [vmem:[#allocation130_spill] sm:$0xff] %v3362_v26  ;;  %5482 = vst [vmem:[#allocation131_spill] sm:$0xff] %v3364_v48  ;;  %v660_v35 = vsub.f32 %v3044_v18, %v612_v25  ;;  %v661_v37 = vsub.f32 %v3046_v19, %v612_v25  ;;  %v662_v13 = vsub.f32 %v3048_v20, %v612_v25  ;;  %v5502_v48 = vld [vmem:[#allocation51_spill] sm:$0xff] }
  0xef   : > { %5483 = vst [vmem:[#allocation132_spill] sm:$0xff] %v3366_v29  ;;  %5484 = vst [vmem:[#allocation133_spill] sm:$0xff] %v3368_v3  ;;  %v663_v39 = vsub.f32 %v3051_v21, %v612_v25  ;;  %v664_v41 = vsub.f32 %v3053_v55, %v612_v25  ;;  %v665_v46 = vsub.f32 %v3055_v53, %v612_v25 }
  0xf0   : > { %5485 = vst [vmem:[#allocation134_spill] sm:$0xff] %v3370_v5  ;;  %5486 = vst [vmem:[#allocation135_spill] sm:$0xff] %v3372_v6  ;;  %v666_v8 = vsub.f32 %v3058_v23, %v612_v25  ;;  %v667_v11 = vsub.f32 %v3060_v56, %v612_v25  ;;  %v668_v12 = vsub.f32 %v3062_v52, %v612_v25  ;;  %v5501_v6 = vld [vmem:[#allocation50_spill] sm:$0xff]  ;;  %v5503_v5 = vld [vmem:[#allocation52_spill] sm:$0xff] }
  0xf1   : > { %5487 = vst [vmem:[#allocation136_spill] sm:$0xff] %v3374_v7  ;;  %5488 = vst [vmem:[#allocation137_spill] sm:$0xff] %v3376_v9  ;;  %v669_v16 = vsub.f32 %v3065_v51, %v612_v25  ;;  %v670_v18 = vsub.f32 %v3067_v24, %v612_v25  ;;  %v671_v19 = vsub.f32 %v3069_v58, %v612_v25  ;;  %v5499_v9 = vld [vmem:[#allocation48_spill] sm:$0xff]  ;;  %v5500_v7 = vld [vmem:[#allocation49_spill] sm:$0xff] }
  0xf2   : > { %5489 = vst [vmem:[#allocation138_spill] sm:$0xff] %v3378_v32  ;;  %5490 = vst [vmem:[#allocation139_spill] sm:$0xff] %v3380_v57  ;;  %v672_v20 = vsub.f32 %v5459_v30, %v612_v25  ;;  %v673_v21 = vsub.f32 %v5460_v54, %v612_v25  ;;  %v674_v55 = vsub.f32 %v5461_v59, %v612_v25  ;;  %v5497_v57 = vld [vmem:[#allocation46_spill] sm:$0xff]  ;;  %v5498_v32 = vld [vmem:[#allocation47_spill] sm:$0xff] }
  0xf3   : > { %5491 = vst [vmem:[#allocation140_spill] sm:$0xff] %v3382_v15  ;;  %5492 = vst [vmem:[#allocation141_spill] sm:$0xff] %v3384_v61  ;;  %v675_v53 = vsub.f32 %v5462_v49, %v612_v25  ;;  %v676_v23 = vsub.f32 %v5408_v4, %v612_v25  ;;  %v677_v56 = vsub.f32 %v5409_v1, %v612_v25  ;;  %v5495_v61 = vld [vmem:[#allocation44_spill] sm:$0xff]  ;;  %v5496_v15 = vld [vmem:[#allocation45_spill] sm:$0xff] }
  0xf4   : > { %5493 = vst [vmem:[#allocation142_spill] sm:$0xff] %v3386_v10  ;;  %v5494_v10 = vld [vmem:[#allocation43_spill] sm:$0xff]  ;;  %v679_v51 = vsub.f32 %v5495_v61, %v612_v25  ;;  %v680_v24 = vsub.f32 %v5496_v15, %v612_v25  ;;  %v681_v58 = vsub.f32 %v5497_v57, %v612_v25  ;;  %v682_v30 = vsub.f32 %v5498_v32, %v612_v25 }
  0xf5   : > { %v678_v52 = vsub.f32 %v5494_v10, %v612_v25  ;;  %v683_v54 = vsub.f32 %v5499_v9, %v612_v25  ;;  %v684_v59 = vsub.f32 %v5500_v7, %v612_v25  ;;  %v685_v49 = vsub.f32 %v5501_v6, %v612_v25 }
  0xf6   : > { %v686_v4 = vsub.f32 %v5502_v48, %v612_v25  ;;  %v687_v1 = vsub.f32 %v5503_v5, %v612_v25  ;;  %v3420_v3 = vmul.f32 %v656_v14, %v656_v14  ;;  %v3422_v10 = vmul.f32 %v657_v44, %v657_v44 }
  0xf7   : > { %v3424_v61 = vmul.f32 %v658_v42, %v658_v42  ;;  %v3426_v15 = vmul.f32 %v659_v33, %v659_v33  ;;  %v3428_v57 = vmul.f32 %v660_v35, %v660_v35  ;;  %v3430_v32 = vmul.f32 %v661_v37, %v661_v37 }
  0xf8   : > { %v3432_v9 = vmul.f32 %v662_v13, %v662_v13  ;;  %v3434_v7 = vmul.f32 %v663_v39, %v663_v39  ;;  %v3436_v6 = vmul.f32 %v664_v41, %v664_v41  ;;  %v3438_v48 = vmul.f32 %v665_v46, %v665_v46 }
  0xf9   : > { %v3440_v5 = vmul.f32 %v666_v8, %v666_v8  ;;  %v3442_v25 = vmul.f32 %v667_v11, %v667_v11  ;;  %v3444_v14 = vmul.f32 %v668_v12, %v668_v12  ;;  %v3446_v44 = vmul.f32 %v669_v16, %v669_v16 }
  0xfa   : > { %v3448_v42 = vmul.f32 %v670_v18, %v670_v18  ;;  %v3450_v33 = vmul.f32 %v671_v19, %v671_v19  ;;  %v3452_v35 = vmul.f32 %v672_v20, %v672_v20  ;;  %v3454_v37 = vmul.f32 %v673_v21, %v673_v21 }
  0xfb   : > { %5504 = vst [vmem:[#allocation43_spill] sm:$0xff] %v3442_v25  ;;  %5505 = vst [vmem:[#allocation44_spill] sm:$0xff] %v3444_v14  ;;  %v3456_v13 = vmul.f32 %v674_v55, %v674_v55  ;;  %v3458_v39 = vmul.f32 %v675_v53, %v675_v53  ;;  %v3460_v41 = vmul.f32 %v676_v23, %v676_v23  ;;  %v5525_v23 = vld [vmem:[#allocation5_spill] sm:$0xff] }
  0xfc   : > { %5506 = vst [vmem:[#allocation45_spill] sm:$0xff] %v3446_v44  ;;  %5507 = vst [vmem:[#allocation46_spill] sm:$0xff] %v3448_v42  ;;  %v3462_v46 = vmul.f32 %v677_v56, %v677_v56  ;;  %v3464_v8 = vmul.f32 %v678_v52, %v678_v52  ;;  %v3466_v11 = vmul.f32 %v679_v51, %v679_v51  ;;  %v500_v56 = vshra.s32 %v5525_v23, 6  ;;  %v5526_v52 = vld [vmem:[#allocation6_spill] sm:$0xff] }
  0xfd   : > { %5508 = vst [vmem:[#allocation47_spill] sm:$0xff] %v3450_v33  ;;  %5509 = vst [vmem:[#allocation48_spill] sm:$0xff] %v3452_v35  ;;  %v3468_v12 = vmul.f32 %v680_v24, %v680_v24  ;;  %v3470_v16 = vmul.f32 %v681_v58, %v681_v58  ;;  %v3472_v18 = vmul.f32 %v682_v30, %v682_v30  ;;  %v501_v51 = vshra.s32 %v5526_v52, 6  ;;  %v5527_v24 = vld [vmem:[#allocation7_spill] sm:$0xff]  ;;  %v5528_v58 = vld [vmem:[#allocation8_spill] sm:$0xff] }
  0xfe   : > { %5510 = vst [vmem:[#allocation49_spill] sm:$0xff] %v3454_v37  ;;  %5511 = vst [vmem:[#allocation50_spill] sm:$0xff] %v3456_v13  ;;  %v3474_v19 = vmul.f32 %v683_v54, %v683_v54  ;;  %v3476_v20 = vmul.f32 %v684_v59, %v684_v59  ;;  %v3478_v21 = vmul.f32 %v685_v49, %v685_v49  ;;  %v502_v26 = vshra.s32 %v5527_v24, 6  ;;  %v5529_v30 = vld [vmem:[#allocation9_spill] sm:$0xff]  ;;  %v5530_v54 = vld [vmem:[#allocation10_spill] sm:$0xff] }
  0xff   : > { %5512 = vst [vmem:[#allocation51_spill] sm:$0xff] %v3458_v39  ;;  %5513 = vst [vmem:[#allocation52_spill] sm:$0xff] %v3460_v41  ;;  %v3480_v55 = vmul.f32 %v686_v4, %v686_v4  ;;  %v3482_v53 = vmul.f32 %v687_v1, %v687_v1  ;;  %v503_v27 = vshra.s32 %v5528_v58, 6  ;;  %v504_v29 = vshra.s32 %v5529_v30, 6  ;;  %v5531_v59 = vld [vmem:[#allocation11_spill] sm:$0xff]  ;;  %v5532_v49 = vld [vmem:[#allocation12_spill] sm:$0xff] }
 0x100   : > { %5514 = vst [vmem:[#allocation143_spill] sm:$0xff] %v3462_v46  ;;  %5515 = vst [vmem:[#allocation144_spill] sm:$0xff] %v3464_v8  ;;  %v505_v45 = vshra.s32 %v5530_v54, 6  ;;  %v506_v0 = vshra.s32 %v5531_v59, 6  ;;  %v507_v31 = vshra.s32 %v5532_v49, 6  ;;  %v5533_v4 = vld [vmem:[#allocation13_spill] sm:$0xff]  ;;  %v532_v39 = vcvt.s32.f32 %v500_v56 }
 0x101   : > { %5516 = vst [vmem:[#allocation145_spill] sm:$0xff] %v3466_v11  ;;  %5517 = vst [vmem:[#allocation146_spill] sm:$0xff] %v3468_v12  ;;  %v508_v17 = vshra.s32 %v5533_v4, 6  ;;  %v5534_v1 = vld [vmem:[#allocation14_spill] sm:$0xff]  ;;  %v510_v23 = vshra.s32 %v5535_v50, 6  ;;  %v511_v52 = vshra.s32 %v5536_v47, 6  ;;  %v535_v13 = vcvt.s32.f32 %v503_v27 }
 0x102   : > { %5518 = vst [vmem:[#allocation147_spill] sm:$0xff] %v3470_v16  ;;  %5519 = vst [vmem:[#allocation148_spill] sm:$0xff] %v3472_v18  ;;  %v509_v22 = vshra.s32 %v5534_v1, 6  ;;  %v512_v24 = vshra.s32 %v5537_v63, 6  ;;  %v513_v58 = vshra.s32 %v5538_v60, 6  ;;  %v514_v30 = vshra.s32 %v5539_v43, 6 }
 0x103   : > { %5520 = vst [vmem:[#allocation149_spill] sm:$0xff] %v3474_v19  ;;  %5521 = vst [vmem:[#allocation150_spill] sm:$0xff] %v3476_v20  ;;  %v515_v54 = vshra.s32 %v5540_v28, 6  ;;  %v516_v59 = vshra.s32 %v5541_v2, 6  ;;  %v5543_v49 = vld [vmem:[#allocation22_spill] sm:$0xff]  ;;  %v518_v1 = vshra.s32 %v5544_v40, 6  ;;  %v537_v37 = vcvt.s32.f32 %v505_v45 }
 0x104   : > { %5522 = vst [vmem:[#allocation151_spill] sm:$0xff] %v3478_v21  ;;  %5523 = vst [vmem:[#allocation152_spill] sm:$0xff] %v3480_v55  ;;  %v517_v4 = vshra.s32 %v5543_v49, 6  ;;  %v519_v50 = vshra.s32 %v5545_v38, 6  ;;  %v520_v47 = vshra.s32 %v5546_v36, 6  ;;  %v5547_v60 = vld [vmem:[#allocation26_spill] sm:$0xff]  ;;  %v539_v35 = vcvt.s32.f32 %v507_v31 }
 0x105   : > { %5524 = vst [vmem:[#allocation153_spill] sm:$0xff] %v3482_v53  ;;  %v521_v43 = vshra.s32 %v5547_v60, 6  ;;  %v522_v28 = vshra.s32 %v5548_v34, 6  ;;  %v5549_v53 = vld [vmem:[#allocation28_spill] sm:$0xff]  ;;  %v5550_v21 = vld [vmem:[#allocation29_spill] sm:$0xff]  ;;  %v5551_v49 = vld [vmem:[#allocation30_spill] sm:$0xff]  ;;  %v541_v33 = vcvt.s32.f32 %v509_v22  ;;  %v544_v42 = vcvt.s32.f32 %v512_v24 }
 0x106   : > { %v523_v2 = vshra.s32 %v5549_v53, 6  ;;  %v524_v20 = vshra.s32 %v5550_v21, 6  ;;  %v525_v19 = vshra.s32 %v5551_v49, 6  ;;  %v5552_v40 = vld [vmem:[#allocation31_spill] sm:$0xff]  ;;  %v5553_v38 = vld [vmem:[#allocation32_spill] sm:$0xff]  ;;  %v5554_v36 = vld [vmem:[#allocation33_spill] sm:$0xff]  ;;  %v533_v53 = vcvt.s32.f32 %v501_v51 }
 0x107   : > { %v526_v18 = vshra.s32 %v5552_v40, 6  ;;  %v527_v16 = vshra.s32 %v5553_v38, 6  ;;  %v528_v12 = vshra.s32 %v5554_v36, 6  ;;  %v5555_v11 = vld [vmem:[#allocation34_spill] sm:$0xff]  ;;  %v5556_v46 = vld [vmem:[#allocation35_spill] sm:$0xff]  ;;  %v5557_v41 = vld [vmem:[#allocation36_spill] sm:$0xff]  ;;  %v536_v21 = vcvt.s32.f32 %v504_v29 }
 0x108   : > { %v529_v8 = vshra.s32 %v5555_v11, 6  ;;  %v530_v60 = vshra.s32 %v5556_v46, 6  ;;  %v531_v34 = vshra.s32 %v5557_v41, 6  ;;  %v538_v49 = vcvt.s32.f32 %v506_v0 }
 0x109   : > { %v540_v40 = vcvt.s32.f32 %v508_v17  ;;  %v542_v38 = vcvt.s32.f32 %v510_v23  ;;  %v545_v36 = vcvt.s32.f32 %v513_v58  ;;  %v546_v44 = vcvt.s32.f32 %v514_v30 }
 0x10a   : > { %v547_v11 = vcvt.s32.f32 %v515_v54  ;;  %v548_v14 = vcvt.s32.f32 %v516_v59  ;;  %v549_v46 = vcvt.s32.f32 %v517_v4  ;;  %v550_v25 = vcvt.s32.f32 %v518_v1 }
 0x10b   : > { %v551_v41 = vcvt.s32.f32 %v519_v50  ;;  %v552_v56 = vcvt.s32.f32 %v520_v47  ;;  %v553_v51 = vcvt.s32.f32 %v521_v43  ;;  %v555_v27 = vcvt.s32.f32 %v523_v2 }
 0x10c   : > { %v556_v29 = vcvt.s32.f32 %v524_v20  ;;  %v557_v45 = vcvt.s32.f32 %v525_v19  ;;  %v558_v0 = vcvt.s32.f32 %v526_v18  ;;  %v559_v31 = vcvt.s32.f32 %v527_v16  ;;  %v3534_v18 = vpop.permute.xlu1 %757 }
 0x10d   : > { %v560_v17 = vcvt.s32.f32 %v528_v12  ;;  %v3520_v22 = vmul.f32 0.28284273, %v532_v39  ;;  %v3522_v23 = vmul.f32 0.28284273, %v533_v53  ;;  %v562_v24 = vcvt.s32.f32 %v530_v60 }
 0x10e   : > { %v3526_v30 = vmul.f32 0.28284273, %v535_v13  ;;  %v563_v54 = vcvt.s32.f32 %v531_v34  ;;  %v3528_v59 = vmul.f32 0.28284273, %v536_v21  ;;  %v3530_v4 = vmul.f32 0.28284273, %v537_v37 }
 0x10f   : > { %5558 = vst [vmem:[#allocation6_spill] sm:$0xff] %v3522_v23  ;;  %v3532_v20 = vmul.f32 0.28284273, %v538_v49  ;;  %v3536_v12 = vmul.f32 0.28284273, %v539_v35  ;;  %v801_v1 = vsub.f32 %v3522_v23, %v3534_v18 }
 0x110   : > { %5560 = vst [vmem:[#allocation8_spill] sm:$0xff] %v3526_v30  ;;  %5561 = vst [vmem:[#allocation9_spill] sm:$0xff] %v3528_v59  ;;  %v3538_v39 = vmul.f32 0.28284273, %v540_v40  ;;  %v3540_v16 = vmul.f32 0.28284273, %v541_v33 }
 0x111   : > { %v3501_v62 = vpop.f32.mrf.mxu0  ;;  %5562 = vst [vmem:[#allocation10_spill] sm:$0xff] %v3530_v4  ;;  %5563 = vst [vmem:[#allocation11_spill] sm:$0xff] %v3532_v20  ;;  %v3546_v13 = vmul.f32 0.28284273, %v542_v38  ;;  %v3550_v37 = vmul.f32 0.28284273, %v544_v42 }
 0x112   : > { %5542 = vst [vmem:[#allocation5_spill] sm:$0xff] %v3501_v62  ;;  %v2043_v63 = vadd.f32 0.0001, %v3501_v62  ;;  %2062 = vperm.xlu0 %2352, %v3501_v62   ;;  %5564 = vst [vmem:[#allocation12_spill] sm:$0xff] %v3536_v12  ;;  %v3554_v35 = vmul.f32 0.28284273, %v545_v36  ;;  %v804_v36 = vsub.f32 %v3528_v59, %v3534_v18 }
 0x113   : > { %v2303_v55 = vpop.f32.mrf.mxu0  ;;  %5565 = vst [vmem:[#allocation13_spill] sm:$0xff] %v3538_v39  ;;  %5566 = vst [vmem:[#allocation14_spill] sm:$0xff] %v3540_v16  ;;  %v3556_v47 = vmul.f32 0.28284273, %v546_v44  ;;  %v3558_v33 = vmul.f32 0.28284273, %v547_v11  ;;  %v803_v44 = vsub.f32 %v3526_v30, %v3534_v18 }
 0x114   : > { %2353 = vrcp.f32 %v2043_v63  ;;  %v534_v55 = vcvt.s32.f32 %v502_v26  ;;  %v543_v63 = vcvt.s32.f32 %v511_v52  ;;  %v554_v26 = vcvt.s32.f32 %v522_v28  ;;  %5567 = vst [vmem:[#allocation15_spill] sm:$0xff] %v3546_v13  ;;  %5569 = vst [vmem:[#allocation17_spill] sm:$0xff] %v3550_v37 }
 0x115   : > { %v561_v52 = vcvt.s32.f32 %v529_v8  ;;  %v3544_v8 = vsub.f32 %v3520_v22, %v3534_v18  ;;  %5570 = vst [vmem:[#allocation18_spill] sm:$0xff] %v3554_v35  ;;  %5571 = vst [vmem:[#allocation19_spill] sm:$0xff] %v3556_v47  ;;  %v3562_v60 = vmul.f32 0.28284273, %v548_v14  ;;  %v3564_v34 = vmul.f32 0.28284273, %v549_v46 }
 0x116   : > { %v3524_v58 = vmul.f32 0.28284273, %v534_v55  ;;  %v3548_v19 = vmul.f32 0.28284273, %v543_v63  ;;  %5572 = vst [vmem:[#allocation20_spill] sm:$0xff] %v3558_v33 }
 0x117   : > { %5573 = vst [vmem:[#allocation21_spill] sm:$0xff] %v3562_v60  ;;  %5574 = vst [vmem:[#allocation22_spill] sm:$0xff] %v3564_v34  ;;  %v3566_v42 = vmul.f32 0.28284273, %v550_v25  ;;  %v3568_v53 = vmul.f32 0.28284273, %v551_v41 }
 0x118   : > { %5559 = vst [vmem:[#allocation7_spill] sm:$0xff] %v3524_v58  ;;  %5568 = vst [vmem:[#allocation16_spill] sm:$0xff] %v3548_v19  ;;  %v802_v43 = vsub.f32 %v3524_v58, %v3534_v18  ;;  %v3570_v55 = vmul.f32 0.28284273, %v552_v56  ;;  %v3576_v40 = vmul.f32 0.28284273, %v553_v51 }
 0x119   : > { %5575 = vst [vmem:[#allocation23_spill] sm:$0xff] %v3566_v42  ;;  %5576 = vst [vmem:[#allocation24_spill] sm:$0xff] %v3568_v53  ;;  %v3578_v38 = vmul.f32 0.28284273, %v554_v26  ;;  %v3580_v14 = vmul.f32 0.28284273, %v555_v27  ;;  %v805_v27 = vsub.f32 %v3530_v4, %v3534_v18 }
 0x11a   : > { %5577 = vst [vmem:[#allocation25_spill] sm:$0xff] %v3570_v55  ;;  %5578 = vst [vmem:[#allocation26_spill] sm:$0xff] %v3576_v40  ;;  %v3582_v63 = vmul.f32 0.28284273, %v556_v29  ;;  %v3584_v25 = vmul.f32 0.28284273, %v557_v45 }
 0x11b   : > { %5579 = vst [vmem:[#allocation27_spill] sm:$0xff] %v3578_v38  ;;  %5580 = vst [vmem:[#allocation28_spill] sm:$0xff] %v3580_v14  ;;  %v3588_v41 = vmul.f32 0.28284273, %v558_v0  ;;  %v3590_v56 = vmul.f32 0.28284273, %v559_v31  ;;  %v806_v0 = vsub.f32 %v3532_v20, %v3534_v18  ;;  %v807_v31 = vsub.f32 %v3536_v12, %v3534_v18 }
 0x11c   : > { %5581 = vst [vmem:[#allocation29_spill] sm:$0xff] %v3582_v63  ;;  %5582 = vst [vmem:[#allocation30_spill] sm:$0xff] %v3584_v25  ;;  %v3594_v51 = vmul.f32 0.28284273, %v561_v52  ;;  %v3596_v26 = vmul.f32 0.28284273, %v562_v24  ;;  %v809_v52 = vsub.f32 %v3540_v16, %v3534_v18  ;;  %v810_v24 = vsub.f32 %v3546_v13, %v3534_v18 }
 0x11d   : > { %5583 = vst [vmem:[#allocation31_spill] sm:$0xff] %v3588_v41  ;;  %5584 = vst [vmem:[#allocation32_spill] sm:$0xff] %v3590_v56  ;;  %v1060_v13 = vmul.f32 %v804_v36, %v804_v36  ;;  %v1062_v16 = vmul.f32 %v806_v0, %v806_v0 }
 0x11e   : > { %5586 = vst [vmem:[#allocation34_spill] sm:$0xff] %v3594_v51  ;;  %5587 = vst [vmem:[#allocation35_spill] sm:$0xff] %v3596_v26  ;;  %v1065_v12 = vmul.f32 %v809_v52, %v809_v52  ;;  %v1066_v20 = vmul.f32 %v810_v24, %v810_v24 }
 0x121   : > { %v2354_v50 = vpop.eup %2353 }
 0x122   : > { %v2046_v28 = vrot.slane %v2354_v50, 2  ;;  %v2053_v2 = vrot.slane %v2354_v50, 1  ;;  %v3592_v50 = vmul.f32 0.28284273, %v560_v17  ;;  %v808_v17 = vsub.f32 %v3538_v39, %v3534_v18 }
 0x123   : > { %v1063_v39 = vmul.f32 %v807_v31, %v807_v31 }
 0x124   : > { %v2048_v21 = vmul.f32 %v2046_v28, %v3501_v62  ;;  %v2055_v49 = vmul.f32 %v2053_v2, %v3501_v62  ;;  %5585 = vst [vmem:[#allocation33_spill] sm:$0xff] %v3592_v50  ;;  %v3604_v28 = vmul.f32 0.28284273, %v563_v54  ;;  %v811_v2 = vsub.f32 %v3548_v19, %v3534_v18 }
 0x125   : > { %v812_v54 = vsub.f32 %v3550_v37, %v3534_v18  ;;  %v817_v62 = vsub.f32 %v3564_v34, %v3534_v18  ;;  %v824_v34 = vsub.f32 %v3582_v63, %v3534_v18  ;;  %v1057_v37 = vmul.f32 %v801_v1, %v801_v1 }
 0x126   : > { %v2049_v11 = vmul.f32 1250.0, %v2048_v21  ;;  %v2056_v46 = vmul.f32 1250.0, %v2055_v49  ;;  %5590 = vst [vmem:[#allocation155_spill] sm:$0xff] %v3604_v28  ;;  %v813_v21 = vsub.f32 %v3554_v35, %v3534_v18  ;;  %v814_v49 = vsub.f32 %v3556_v47, %v3534_v18 }
 0x127   : > { %v820_v35 = vsub.f32 %v3570_v55, %v3534_v18  ;;  %v821_v47 = vsub.f32 %v3576_v40, %v3534_v18  ;;  %v827_v55 = vsub.f32 %v3590_v56, %v3534_v18  ;;  %v828_v40 = vsub.f32 %v3592_v50, %v3534_v18 }
 0x128   : > { %v3600_v29 = vadd.f32 32.0, %v2049_v11  ;;  %v3602_v45 = vadd.f32 32.0, %v2056_v46  ;;  %v815_v11 = vsub.f32 %v3558_v33, %v3534_v18  ;;  %v816_v46 = vsub.f32 %v3562_v60, %v3534_v18 }
 0x129   : > { %v822_v33 = vsub.f32 %v3578_v38, %v3534_v18  ;;  %v823_v60 = vsub.f32 %v3580_v14, %v3534_v18  ;;  %v829_v38 = vsub.f32 %v3594_v51, %v3534_v18  ;;  %v830_v14 = vsub.f32 %v3596_v26, %v3534_v18 }
 0x12a   : > { %5588 = vst [vmem:[#allocation36_spill] sm:$0xff] %v3600_v29  ;;  %5589 = vst [vmem:[#allocation154_spill] sm:$0xff] %v3602_v45  ;;  %v818_v45 = vsub.f32 %v3566_v42, %v3534_v18  ;;  %v819_v29 = vsub.f32 %v3568_v53, %v3534_v18  ;;  %v825_v42 = vsub.f32 %v3584_v25, %v3534_v18 }
 0x12b   : > { %v826_v53 = vsub.f32 %v3588_v41, %v3534_v18  ;;  %v831_v63 = vsub.f32 %v3604_v28, %v3534_v18  ;;  %v1056_v25 = vmul.f32 %v3544_v8, %v3544_v8  ;;  %v1058_v41 = vmul.f32 %v802_v43, %v802_v43 }
 0x12c   : > { %v1059_v19 = vmul.f32 %v803_v44, %v803_v44  ;;  %v1061_v56 = vmul.f32 %v805_v27, %v805_v27  ;;  %v1064_v50 = vmul.f32 %v808_v17, %v808_v17  ;;  %v1067_v51 = vmul.f32 %v811_v2, %v811_v2 }
 0x12d   : > { %v1068_v4 = vmul.f32 %v812_v54, %v812_v54  ;;  %v1069_v59 = vmul.f32 %v813_v21, %v813_v21  ;;  %v1070_v26 = vmul.f32 %v814_v49, %v814_v49  ;;  %v1071_v30 = vmul.f32 %v815_v11, %v815_v11  ;;  %v5609_v49 = vld [vmem:[#allocation151_spill] sm:$0xff] }
 0x12e   : > { %v1072_v58 = vmul.f32 %v816_v46, %v816_v46  ;;  %v1073_v18 = vmul.f32 %v817_v62, %v817_v62  ;;  %v1074_v28 = vmul.f32 %v818_v45, %v818_v45  ;;  %v1075_v23 = vmul.f32 %v819_v29, %v819_v29  ;;  %v5608_v45 = vld [vmem:[#allocation150_spill] sm:$0xff]  ;;  %v5610_v46 = vld [vmem:[#allocation152_spill] sm:$0xff] }
 0x12f   : > { %v1076_v8 = vmul.f32 %v820_v35, %v820_v35  ;;  %v1077_v1 = vmul.f32 %v821_v47, %v821_v47  ;;  %v1078_v43 = vmul.f32 %v822_v33, %v822_v33  ;;  %v1079_v44 = vmul.f32 %v823_v60, %v823_v60 }
 0x130   : > { %v1080_v36 = vmul.f32 %v824_v34, %v824_v34  ;;  %v1081_v27 = vmul.f32 %v825_v42, %v825_v42  ;;  %v1082_v0 = vmul.f32 %v826_v53, %v826_v53  ;;  %v1083_v31 = vmul.f32 %v827_v55, %v827_v55  ;;  %v5598_v34 = vld [vmem:[#allocation50_spill] sm:$0xff] }
 0x131   : > { %v1084_v17 = vmul.f32 %v828_v40, %v828_v40  ;;  %v1085_v52 = vmul.f32 %v829_v38, %v829_v38  ;;  %v1086_v24 = vmul.f32 %v830_v14, %v830_v14  ;;  %v1087_v2 = vmul.f32 %v831_v63, %v831_v63  ;;  %v5601_v40 = vld [vmem:[#allocation143_spill] sm:$0xff] }
 0x132   : > { %v1184_v54 = vadd.f32 %v1056_v25, %v3420_v3  ;;  %v3662_v21 = vadd.f32 %v1057_v37, %v3422_v10  ;;  %v3665_v62 = vadd.f32 %v1058_v41, %v3424_v61  ;;  %v3668_v35 = vadd.f32 %v1059_v19, %v3426_v15  ;;  %v5604_v25 = vld [vmem:[#allocation146_spill] sm:$0xff] }
 0x133   : > { %v3671_v47 = vadd.f32 %v1060_v13, %v3428_v57  ;;  %v3674_v33 = vadd.f32 %v1061_v56, %v3430_v32  ;;  %v3677_v60 = vadd.f32 %v1062_v16, %v3432_v9  ;;  %v3680_v3 = vadd.f32 %v1063_v39, %v3434_v7  ;;  %v5591_v57 = vld [vmem:[#allocation43_spill] sm:$0xff]  ;;  %v5592_v32 = vld [vmem:[#allocation44_spill] sm:$0xff]  ;;  %v5593_v9 = vld [vmem:[#allocation45_spill] sm:$0xff] }
 0x134   : > { %v3683_v10 = vadd.f32 %v1064_v50, %v3436_v6  ;;  %v3686_v61 = vadd.f32 %v1065_v12, %v3438_v48  ;;  %v3689_v15 = vadd.f32 %v1066_v20, %v3440_v5  ;;  %v3692_v13 = vadd.f32 %v1067_v51, %v5591_v57  ;;  %v5594_v7 = vld [vmem:[#allocation46_spill] sm:$0xff]  ;;  %v5595_v6 = vld [vmem:[#allocation47_spill] sm:$0xff]  ;;  %v5596_v48 = vld [vmem:[#allocation48_spill] sm:$0xff] }
 0x135   : > { %v3695_v19 = vadd.f32 %v1068_v4, %v5592_v32  ;;  %v3698_v16 = vadd.f32 %v1069_v59, %v5593_v9  ;;  %v3701_v39 = vadd.f32 %v1070_v26, %v5594_v7  ;;  %v3704_v37 = vadd.f32 %v1071_v30, %v5595_v6  ;;  %v5597_v5 = vld [vmem:[#allocation49_spill] sm:$0xff]  ;;  %v5599_v4 = vld [vmem:[#allocation51_spill] sm:$0xff]  ;;  %v5600_v59 = vld [vmem:[#allocation52_spill] sm:$0xff] }
 0x136   : > { %v3707_v12 = vadd.f32 %v1072_v58, %v5596_v48  ;;  %v3710_v20 = vadd.f32 %v1073_v18, %v5597_v5  ;;  %v3713_v42 = vadd.f32 %v1074_v28, %v5598_v34  ;;  %v3716_v53 = vadd.f32 %v1075_v23, %v5599_v4  ;;  %v5602_v30 = vld [vmem:[#allocation144_spill] sm:$0xff]  ;;  %v5603_v58 = vld [vmem:[#allocation145_spill] sm:$0xff]  ;;  %v5605_v56 = vld [vmem:[#allocation147_spill] sm:$0xff] }
 0x137   : > { %v3719_v55 = vadd.f32 %v1076_v8, %v5600_v59  ;;  %v3722_v38 = vadd.f32 %v1077_v1, %v5601_v40  ;;  %v3725_v14 = vadd.f32 %v1078_v43, %v5602_v30  ;;  %v3728_v63 = vadd.f32 %v1079_v44, %v5603_v58  ;;  %v5606_v23 = vld [vmem:[#allocation148_spill] sm:$0xff]  ;;  %v5607_v26 = vld [vmem:[#allocation149_spill] sm:$0xff]  ;;  %v5612_v48 = vld [vmem:[#allocation115_spill] sm:$0xff]  ;;  %v3789_v59 = vpop.permute.xlu0 %753 }
 0x138   : > { %v3731_v41 = vadd.f32 %v1080_v36, %v5604_v25  ;;  %v3734_v50 = vadd.f32 %v1081_v27, %v5605_v56  ;;  %v3737_v51 = vadd.f32 %v1082_v0, %v5606_v23  ;;  %v3740_v29 = vadd.f32 %v1083_v31, %v5607_v26  ;;  %v5611_v8 = vld [vmem:[#allocation153_spill] sm:$0xff] }
 0x139   : > { %v3743_v28 = vadd.f32 %v1084_v17, %v5608_v45  ;;  %v3746_v11 = vadd.f32 %v1085_v52, %v5609_v49  ;;  %v3749_v18 = vadd.f32 %v1086_v24, %v5610_v46  ;;  %v3752_v1 = vadd.f32 %v1087_v2, %v5611_v8 }
 0x13a   : > { %v1312_v43 = vsub.f32 0.0, %v1184_v54  ;;  %v1313_v44 = vsub.f32 0.0, %v3662_v21  ;;  %v1314_v36 = vsub.f32 0.0, %v3665_v62  ;;  %v1315_v27 = vsub.f32 0.0, %v3668_v35 }
 0x13b   : > { %v1316_v0 = vsub.f32 0.0, %v3671_v47  ;;  %v1317_v31 = vsub.f32 0.0, %v3674_v33  ;;  %v1318_v17 = vsub.f32 0.0, %v3677_v60  ;;  %v1319_v52 = vsub.f32 0.0, %v3680_v3 }
 0x13c   : > { %v1320_v24 = vsub.f32 0.0, %v3683_v10  ;;  %v1321_v2 = vsub.f32 0.0, %v3686_v61  ;;  %v1322_v54 = vsub.f32 0.0, %v3689_v15  ;;  %v1323_v21 = vsub.f32 0.0, %v3692_v13 }
 0x13d   : > { %v1324_v62 = vsub.f32 0.0, %v3695_v19  ;;  %v1325_v35 = vsub.f32 0.0, %v3698_v16  ;;  %v1326_v47 = vsub.f32 0.0, %v3701_v39  ;;  %v1327_v33 = vsub.f32 0.0, %v3704_v37 }
 0x13e   : > { %v1328_v60 = vsub.f32 0.0, %v3707_v12  ;;  %v1329_v3 = vsub.f32 0.0, %v3710_v20  ;;  %v1330_v10 = vsub.f32 0.0, %v3713_v42  ;;  %v1331_v61 = vsub.f32 0.0, %v3716_v53 }
 0x13f   : > { %v1332_v15 = vsub.f32 0.0, %v3719_v55  ;;  %v1333_v57 = vsub.f32 0.0, %v3722_v38  ;;  %v1334_v13 = vsub.f32 0.0, %v3725_v14  ;;  %v1335_v32 = vsub.f32 0.0, %v3728_v63 }
 0x140   : > { %v1336_v19 = vsub.f32 0.0, %v3731_v41  ;;  %v1337_v9 = vsub.f32 0.0, %v3734_v50  ;;  %v1338_v16 = vsub.f32 0.0, %v3737_v51  ;;  %v1339_v7 = vsub.f32 0.0, %v3740_v29 }
 0x141   : > { %v1340_v39 = vsub.f32 0.0, %v3743_v28  ;;  %v1341_v6 = vsub.f32 0.0, %v3746_v11  ;;  %v1472_v37 = vmul.f32 1.442695, %v1312_v43  ;;  %v3785_v12 = vmul.f32 %v5612_v48, %v5612_v48  ;;  %v5628_v48 = vld [vmem:[#allocation18_spill] sm:$0xff] }
 0x142   : > { %v1474_v5 = vmul.f32 1.442695, %v1313_v44  ;;  %v1476_v20 = vmul.f32 1.442695, %v1314_v36  ;;  %v1478_v34 = vmul.f32 1.442695, %v1315_v27  ;;  %v3793_v38 = vsub.f32 %v3520_v22, %v3789_v59 }
 0x143   : > { %5613 = vst [vmem:[#allocation43_spill] sm:$0xff] %v3785_v12  ;;  %v1342_v42 = vsub.f32 0.0, %v3749_v18  ;;  %v1343_v4 = vsub.f32 0.0, %v3752_v1  ;;  %2355 = vpow2.f32 %v1472_v37  ;;  %v1480_v53 = vmul.f32 1.442695, %v1316_v0  ;;  %v5640_v12 = vld [vmem:[#allocation27_spill] sm:$0xff] }
 0x144   : > { %2357 = vpow2.f32 %v1474_v5  ;;  %v1482_v55 = vmul.f32 1.442695, %v1317_v31  ;;  %v1484_v40 = vmul.f32 1.442695, %v1318_v17  ;;  %v1486_v30 = vmul.f32 1.442695, %v1319_v52 }
 0x145   : > { %2359 = vpow2.f32 %v1476_v20  ;;  %v1488_v14 = vmul.f32 1.442695, %v1320_v24  ;;  %v1490_v58 = vmul.f32 1.442695, %v1321_v2  ;;  %v1492_v63 = vmul.f32 1.442695, %v1322_v54 }
 0x146   : > { %2361 = vpow2.f32 %v1478_v34  ;;  %v1494_v25 = vmul.f32 1.442695, %v1323_v21  ;;  %v1496_v41 = vmul.f32 1.442695, %v1324_v62  ;;  %v1498_v56 = vmul.f32 1.442695, %v1325_v35 }
 0x147   : > { %2363 = vpow2.f32 %v1480_v53  ;;  %v1500_v50 = vmul.f32 1.442695, %v1326_v47  ;;  %v1502_v23 = vmul.f32 1.442695, %v1327_v33  ;;  %v1504_v51 = vmul.f32 1.442695, %v1328_v60 }
 0x148   : > { %2365 = vpow2.f32 %v1482_v55  ;;  %v1506_v26 = vmul.f32 1.442695, %v1329_v3  ;;  %v1508_v29 = vmul.f32 1.442695, %v1330_v10  ;;  %v1510_v45 = vmul.f32 1.442695, %v1331_v61 }
 0x149   : > { %2367 = vpow2.f32 %v1484_v40  ;;  %v1512_v28 = vmul.f32 1.442695, %v1332_v15  ;;  %v3795_v49 = vmul.f32 1.442695, %v1333_v57  ;;  %v3797_v11 = vmul.f32 1.442695, %v1334_v13 }
 0x14a   : > { %2369 = vpow2.f32 %v1486_v30  ;;  %v3799_v46 = vmul.f32 1.442695, %v1335_v32  ;;  %v3801_v18 = vmul.f32 1.442695, %v1336_v19  ;;  %v3803_v8 = vmul.f32 1.442695, %v1337_v9 }
 0x14b   : > { %2371 = vpow2.f32 %v1488_v14  ;;  %v3805_v1 = vmul.f32 1.442695, %v1338_v16  ;;  %v3807_v43 = vmul.f32 1.442695, %v1339_v7  ;;  %v3809_v44 = vmul.f32 1.442695, %v1340_v39 }
 0x14c   : > { %2373 = vpow2.f32 %v1490_v58  ;;  %v3811_v36 = vmul.f32 1.442695, %v1341_v6  ;;  %v3813_v27 = vmul.f32 1.442695, %v1342_v42  ;;  %v3815_v0 = vmul.f32 1.442695, %v1343_v4 }
 0x14d   : > { %2375 = vpow2.f32 %v1492_v63  ;;  %v5614_v31 = vld [vmem:[#allocation6_spill] sm:$0xff]  ;;  %v5615_v52 = vld [vmem:[#allocation7_spill] sm:$0xff]  ;;  %v5616_v2 = vld [vmem:[#allocation8_spill] sm:$0xff]  ;;  %v781_v5 = vsub.f32 %v5628_v48, %v3789_v59 }
 0x14e   : > { %v769_v17 = vsub.f32 %v5614_v31, %v3789_v59  ;;  %v770_v24 = vsub.f32 %v5615_v52, %v3789_v59  ;;  %2377 = vpow2.f32 %v1494_v25  ;;  %v771_v54 = vsub.f32 %v5616_v2, %v3789_v59  ;;  %v5617_v21 = vld [vmem:[#allocation9_spill] sm:$0xff]  ;;  %v5618_v35 = vld [vmem:[#allocation10_spill] sm:$0xff]  ;;  %v5619_v33 = vld [vmem:[#allocation11_spill] sm:$0xff] }
 0x14f   : > { %v772_v62 = vsub.f32 %v5617_v21, %v3789_v59  ;;  %v773_v47 = vsub.f32 %v5618_v35, %v3789_v59  ;;  %2379 = vpow2.f32 %v1496_v41  ;;  %v774_v60 = vsub.f32 %v5619_v33, %v3789_v59  ;;  %v5620_v3 = vld [vmem:[#allocation12_spill] sm:$0xff]  ;;  %v5621_v61 = vld [vmem:[#allocation13_spill] sm:$0xff]  ;;  %v5623_v13 = vld [vmem:[#allocation14_spill] sm:$0xff] }
 0x150   : > { %v775_v10 = vsub.f32 %v5620_v3, %v3789_v59  ;;  %v776_v15 = vsub.f32 %v5621_v61, %v3789_v59  ;;  %v3833_v57 = vpop.eup %2355  ;;  %2381 = vpow2.f32 %v1498_v56  ;;  %v777_v32 = vsub.f32 %v5623_v13, %v3789_v59  ;;  %v5624_v19 = vld [vmem:[#allocation15_spill] sm:$0xff]  ;;  %v5625_v16 = vld [vmem:[#allocation16_spill] sm:$0xff]  ;;  %v5627_v6 = vld [vmem:[#allocation17_spill] sm:$0xff] }
 0x151   : > { %5622 = vst [vmem:[#allocation44_spill] sm:$0xff] %v3833_v57  ;;  %v778_v9 = vsub.f32 %v5624_v19, %v3789_v59  ;;  %v779_v7 = vsub.f32 %v5625_v16, %v3789_v59  ;;  %v3841_v39 = vpop.eup %2357  ;;  %2383 = vpow2.f32 %v1500_v50  ;;  %v780_v37 = vsub.f32 %v5627_v6, %v3789_v59  ;;  %v5629_v20 = vld [vmem:[#allocation19_spill] sm:$0xff]  ;;  %v5631_v4 = vld [vmem:[#allocation20_spill] sm:$0xff]  ;;  %v5632_v55 = vld [vmem:[#allocation21_spill] sm:$0xff] }
 0x152   : > { %5626 = vst [vmem:[#allocation45_spill] sm:$0xff] %v3841_v39  ;;  %v782_v34 = vsub.f32 %v5629_v20, %v3789_v59  ;;  %v3849_v42 = vpop.eup %2359  ;;  %2385 = vpow2.f32 %v1502_v23  ;;  %v783_v53 = vsub.f32 %v5631_v4, %v3789_v59  ;;  %v784_v40 = vsub.f32 %v5632_v55, %v3789_v59  ;;  %v5633_v30 = vld [vmem:[#allocation22_spill] sm:$0xff]  ;;  %v5635_v63 = vld [vmem:[#allocation23_spill] sm:$0xff]  ;;  %v5636_v41 = vld [vmem:[#allocation24_spill] sm:$0xff] }
 0x153   : > { %5630 = vst [vmem:[#allocation46_spill] sm:$0xff] %v3849_v42  ;;  %v785_v14 = vsub.f32 %v5633_v30, %v3789_v59  ;;  %v3857_v58 = vpop.eup %2361  ;;  %2387 = vpow2.f32 %v1504_v51  ;;  %v786_v25 = vsub.f32 %v5635_v63, %v3789_v59  ;;  %v787_v56 = vsub.f32 %v5636_v41, %v3789_v59  ;;  %v5637_v50 = vld [vmem:[#allocation25_spill] sm:$0xff]  ;;  %v5639_v39 = vld [vmem:[#allocation26_spill] sm:$0xff]  ;;  %v5641_v51 = vld [vmem:[#allocation28_spill] sm:$0xff] }
 0x154   : > { %5634 = vst [vmem:[#allocation47_spill] sm:$0xff] %v3857_v58  ;;  %v788_v23 = vsub.f32 %v5637_v50, %v3789_v59  ;;  %v3865_v42 = vpop.eup %2363  ;;  %2389 = vpow2.f32 %v1506_v26  ;;  %v789_v57 = vsub.f32 %v5639_v39, %v3789_v59  ;;  %v790_v30 = vsub.f32 %v5640_v12, %v3789_v59  ;;  %v5643_v41 = vld [vmem:[#allocation29_spill] sm:$0xff]  ;;  %v5644_v50 = vld [vmem:[#allocation30_spill] sm:$0xff]  ;;  %v5645_v26 = vld [vmem:[#allocation31_spill] sm:$0xff] }
 0x155   : > { %5638 = vst [vmem:[#allocation48_spill] sm:$0xff] %v3865_v42  ;;  %v791_v58 = vsub.f32 %v5641_v51, %v3789_v59  ;;  %v3873_v55 = vpop.eup %2365  ;;  %2391 = vpow2.f32 %v1508_v29  ;;  %v792_v63 = vsub.f32 %v5643_v41, %v3789_v59  ;;  %v793_v4 = vsub.f32 %v5644_v50, %v3789_v59  ;;  %v5647_v12 = vld [vmem:[#allocation32_spill] sm:$0xff]  ;;  %v5648_v51 = vld [vmem:[#allocation33_spill] sm:$0xff]  ;;  %v5649_v29 = vld [vmem:[#allocation34_spill] sm:$0xff] }
 0x156   : > { %5642 = vst [vmem:[#allocation49_spill] sm:$0xff] %v3873_v55  ;;  %v794_v42 = vsub.f32 %v5645_v26, %v3789_v59  ;;  %v3881_v20 = vpop.eup %2367  ;;  %2393 = vpow2.f32 %v1510_v45  ;;  %v795_v39 = vsub.f32 %v5647_v12, %v3789_v59  ;;  %v796_v48 = vsub.f32 %v5648_v51, %v3789_v59  ;;  %v5651_v50 = vld [vmem:[#allocation35_spill] sm:$0xff] }
 0x157   : > { %5646 = vst [vmem:[#allocation50_spill] sm:$0xff] %v3881_v20  ;;  %v797_v55 = vsub.f32 %v5649_v29, %v3789_v59  ;;  %v3889_v6 = vpop.eup %2369  ;;  %2395 = vpow2.f32 %v1512_v28  ;;  %v798_v41 = vsub.f32 %v5651_v50, %v3789_v59  ;;  %v5652_v26 = vld [vmem:[#allocation155_spill] sm:$0xff]  ;;  %v1024_v45 = vmul.f32 %v3793_v38, %v3793_v38 }
 0x158   : > { %5650 = vst [vmem:[#allocation51_spill] sm:$0xff] %v3889_v6  ;;  %v799_v16 = vsub.f32 %v5652_v26, %v3789_v59  ;;  %v3897_v20 = vpop.eup %2371  ;;  %2397 = vpow2.f32 %v3795_v49  ;;  %v1025_v51 = vmul.f32 %v769_v17, %v769_v17  ;;  %v1026_v12 = vmul.f32 %v770_v24, %v770_v24 }
 0x159   : > { %5653 = vst [vmem:[#allocation52_spill] sm:$0xff] %v3897_v20  ;;  %v1027_v19 = vmul.f32 %v771_v54, %v771_v54  ;;  %v3900_v29 = vpop.eup %2373  ;;  %2399 = vpow2.f32 %v3797_v11  ;;  %v1028_v28 = vmul.f32 %v772_v62, %v772_v62  ;;  %v1029_v6 = vmul.f32 %v773_v47, %v773_v47 }
 0x15a   : > { %5654 = vst [vmem:[#allocation143_spill] sm:$0xff] %v3900_v29  ;;  %v1030_v50 = vmul.f32 %v774_v60, %v774_v60  ;;  %v3903_v13 = vpop.eup %2375  ;;  %2401 = vpow2.f32 %v3799_v46  ;;  %v1031_v59 = vmul.f32 %v775_v10, %v775_v10  ;;  %v1032_v38 = vmul.f32 %v776_v15, %v776_v15 }
 0x15b   : > { %5655 = vst [vmem:[#allocation144_spill] sm:$0xff] %v3903_v13  ;;  %v1033_v26 = vmul.f32 %v777_v32, %v777_v32  ;;  %v3906_v20 = vpop.eup %2377  ;;  %2403 = vpow2.f32 %v3801_v18  ;;  %v1034_v49 = vmul.f32 %v778_v9, %v778_v9  ;;  %v1035_v17 = vmul.f32 %v779_v7, %v779_v7 }
 0x15c   : > { %5656 = vst [vmem:[#allocation145_spill] sm:$0xff] %v3906_v20  ;;  %v1036_v24 = vmul.f32 %v780_v37, %v780_v37  ;;  %v3909_v54 = vpop.eup %2379  ;;  %2405 = vpow2.f32 %v3803_v8  ;;  %v1037_v11 = vmul.f32 %v781_v5, %v781_v5  ;;  %v1038_v62 = vmul.f32 %v782_v34, %v782_v34 }
 0x15d   : > { %5657 = vst [vmem:[#allocation146_spill] sm:$0xff] %v3909_v54  ;;  %v1039_v47 = vmul.f32 %v783_v53, %v783_v53  ;;  %v3912_v60 = vpop.eup %2381  ;;  %2407 = vpow2.f32 %v3805_v1  ;;  %v1040_v46 = vmul.f32 %v784_v40, %v784_v40  ;;  %v1041_v10 = vmul.f32 %v785_v14, %v785_v14  ;;  %v5723_v54 = vld [vmem:[#allocation24_spill] sm:$0xff] }
 0x15e   : > { %5658 = vst [vmem:[#allocation147_spill] sm:$0xff] %v3912_v60  ;;  %v1042_v15 = vmul.f32 %v786_v25, %v786_v25  ;;  %v3915_v32 = vpop.eup %2383  ;;  %2409 = vpow2.f32 %v3807_v43  ;;  %v1043_v18 = vmul.f32 %v787_v56, %v787_v56  ;;  %v1044_v9 = vmul.f32 %v788_v23, %v788_v23 }
 0x15f   : > { %5659 = vst [vmem:[#allocation148_spill] sm:$0xff] %v3915_v32  ;;  %v1045_v7 = vmul.f32 %v789_v57, %v789_v57  ;;  %v3918_v37 = vpop.eup %2385  ;;  %2411 = vpow2.f32 %v3809_v44  ;;  %v1046_v8 = vmul.f32 %v790_v30, %v790_v30  ;;  %v1047_v5 = vmul.f32 %v791_v58, %v791_v58  ;;  %v5664_v30 = vld [vmem:[#allocation41_spill] sm:$0xff]  ;;  %v5722_v32 = vld [vmem:[#allocation23_spill] sm:$0xff] }
 0x160   : > { %5660 = vst [vmem:[#allocation149_spill] sm:$0xff] %v3918_v37  ;;  %v1048_v34 = vmul.f32 %v792_v63, %v792_v63  ;;  %v3921_v53 = vpop.eup %2387  ;;  %2413 = vpow2.f32 %v3811_v36  ;;  %v1049_v1 = vmul.f32 %v793_v4, %v793_v4  ;;  %v1050_v40 = vmul.f32 %v794_v42, %v794_v42  ;;  %v5665_v63 = vld [vmem:[#allocation42_spill] sm:$0xff]  ;;  %v5666_v36 = vld [vmem:[#allocation85_spill] sm:$0xff] }
 0x161   : > { %5661 = vst [vmem:[#allocation150_spill] sm:$0xff] %v3921_v53  ;;  %v1051_v14 = vmul.f32 %v795_v39, %v795_v39  ;;  %v3924_v25 = vpop.eup %2389  ;;  %2415 = vpow2.f32 %v3813_v27  ;;  %v1052_v43 = vmul.f32 %v796_v48, %v796_v48  ;;  %v1053_v57 = vmul.f32 %v797_v55, %v797_v55  ;;  %v5668_v42 = vld [vmem:[#allocation86_spill] sm:$0xff]  ;;  %v5669_v27 = vld [vmem:[#allocation87_spill] sm:$0xff]  ;;  %v5670_v55 = vld [vmem:[#allocation88_spill] sm:$0xff] }
 0x162   : > { %5662 = vst [vmem:[#allocation151_spill] sm:$0xff] %v3924_v25  ;;  %v1054_v56 = vmul.f32 %v798_v41, %v798_v41  ;;  %v3927_v23 = vpop.eup %2391  ;;  %v1055_v44 = vmul.f32 %v799_v16, %v799_v16  ;;  %v3930_v58 = vadd.f32 %v1024_v45, %v5664_v30  ;;  %v3933_v53 = vadd.f32 %v1025_v51, %v5665_v63  ;;  %v5671_v16 = vld [vmem:[#allocation89_spill] sm:$0xff]  ;;  %v5673_v51 = vld [vmem:[#allocation90_spill] sm:$0xff] }
 0x163   : > { %5663 = vst [vmem:[#allocation152_spill] sm:$0xff] %v3927_v23  ;;  %v3936_v4 = vadd.f32 %v1026_v12, %v5666_v36  ;;  %v3938_v39 = vpop.eup %2393  ;;  %v3941_v25 = vadd.f32 %v1027_v19, %v5668_v42  ;;  %v3944_v48 = vadd.f32 %v1028_v28, %v5669_v27  ;;  %v3947_v41 = vadd.f32 %v1029_v6, %v5670_v55  ;;  %v5674_v12 = vld [vmem:[#allocation91_spill] sm:$0xff]  ;;  %v5676_v42 = vld [vmem:[#allocation93_spill] sm:$0xff]  ;;  %v5678_v6 = vld [vmem:[#allocation94_spill] sm:$0xff] }
 0x164   : > { %5667 = vst [vmem:[#allocation153_spill] sm:$0xff] %v3938_v39  ;;  %v3950_v45 = vadd.f32 %v1030_v50, %v5671_v16  ;;  %v3952_v30 = vpop.eup %2395  ;;  %v3955_v63 = vadd.f32 %v1031_v59, %v5673_v51  ;;  %v3958_v36 = vadd.f32 %v1032_v38, %v5674_v12  ;;  %v5675_v39 = vld [vmem:[#allocation92_spill] sm:$0xff]  ;;  %v3964_v28 = vadd.f32 %v1034_v49, %v5676_v42  ;;  %v5679_v50 = vld [vmem:[#allocation95_spill] sm:$0xff]  ;;  %v5681_v51 = vld [vmem:[#allocation97_spill] sm:$0xff] }
 0x165   : > { %5672 = vst [vmem:[#allocation115_spill] sm:$0xff] %v3952_v30  ;;  %v3961_v19 = vadd.f32 %v1033_v26, %v5675_v39  ;;  %v3966_v27 = vpop.eup %2397  ;;  %v3969_v55 = vadd.f32 %v1035_v17, %v5678_v6  ;;  %v3972_v16 = vadd.f32 %v1036_v24, %v5679_v50  ;;  %v5680_v30 = vld [vmem:[#allocation96_spill] sm:$0xff]  ;;  %v3978_v38 = vadd.f32 %v1038_v62, %v5681_v51  ;;  %v5683_v26 = vld [vmem:[#allocation98_spill] sm:$0xff]  ;;  %v5684_v49 = vld [vmem:[#allocation99_spill] sm:$0xff] }
 0x166   : > { %5677 = vst [vmem:[#allocation6_spill] sm:$0xff] %v3966_v27  ;;  %v3975_v59 = vadd.f32 %v1037_v11, %v5680_v30  ;;  %v3980_v12 = vpop.eup %2399  ;;  %v3983_v39 = vadd.f32 %v1039_v47, %v5683_v26  ;;  %v3986_v42 = vadd.f32 %v1040_v46, %v5684_v49  ;;  %v5685_v27 = vld [vmem:[#allocation100_spill] sm:$0xff]  ;;  %v5686_v6 = vld [vmem:[#allocation101_spill] sm:$0xff]  ;;  %v5688_v11 = vld [vmem:[#allocation102_spill] sm:$0xff]  ;;  %2417 = vpow2.f32 %v3815_v0 }
 0x167   : > { %5682 = vst [vmem:[#allocation7_spill] sm:$0xff] %v3980_v12  ;;  %v3989_v17 = vadd.f32 %v1041_v10, %v5685_v27  ;;  %v3992_v24 = vadd.f32 %v1042_v15, %v5686_v6  ;;  %v3994_v50 = vpop.eup %2401  ;;  %v3997_v30 = vadd.f32 %v1043_v18, %v5688_v11  ;;  %v5689_v62 = vld [vmem:[#allocation103_spill] sm:$0xff]  ;;  %v5690_v12 = vld [vmem:[#allocation104_spill] sm:$0xff]  ;;  %v5691_v26 = vld [vmem:[#allocation105_spill] sm:$0xff] }
 0x168   : > { %5687 = vst [vmem:[#allocation8_spill] sm:$0xff] %v3994_v50  ;;  %v4000_v51 = vadd.f32 %v1044_v9, %v5689_v62  ;;  %v4003_v47 = vadd.f32 %v1045_v7, %v5690_v12  ;;  %v4006_v46 = vadd.f32 %v1046_v8, %v5691_v26  ;;  %v4008_v49 = vpop.eup %2403  ;;  %v5693_v10 = vld [vmem:[#allocation106_spill] sm:$0xff]  ;;  %v5694_v15 = vld [vmem:[#allocation107_spill] sm:$0xff]  ;;  %v5695_v50 = vld [vmem:[#allocation108_spill] sm:$0xff] }
 0x169   : > { %5692 = vst [vmem:[#allocation9_spill] sm:$0xff] %v4008_v49  ;;  %v4011_v27 = vadd.f32 %v1047_v5, %v5693_v10  ;;  %v4014_v6 = vadd.f32 %v1048_v34, %v5694_v15  ;;  %v4017_v18 = vadd.f32 %v1049_v1, %v5695_v50  ;;  %v5696_v11 = vld [vmem:[#allocation109_spill] sm:$0xff]  ;;  %v4022_v62 = vpop.eup %2405  ;;  %v5698_v7 = vld [vmem:[#allocation110_spill] sm:$0xff]  ;;  %v5699_v8 = vld [vmem:[#allocation111_spill] sm:$0xff] }
 0x16a   : > { %v4020_v9 = vadd.f32 %v1050_v40, %v5696_v11  ;;  %5697 = vst [vmem:[#allocation10_spill] sm:$0xff] %v4022_v62  ;;  %v4025_v12 = vadd.f32 %v1051_v14, %v5698_v7  ;;  %v4028_v26 = vadd.f32 %v1052_v43, %v5699_v8  ;;  %v5700_v49 = vld [vmem:[#allocation112_spill] sm:$0xff]  ;;  %v5701_v10 = vld [vmem:[#allocation113_spill] sm:$0xff]  ;;  %v4036_v15 = vpop.eup %2407  ;;  %v5703_v1 = vld [vmem:[#allocation114_spill] sm:$0xff]  ;;  %v1280_v40 = vsub.f32 0.0, %v3930_v58 }
 0x16b   : > { %v4031_v5 = vadd.f32 %v1053_v57, %v5700_v49  ;;  %v4034_v34 = vadd.f32 %v1054_v56, %v5701_v10  ;;  %5702 = vst [vmem:[#allocation11_spill] sm:$0xff] %v4036_v15  ;;  %v4039_v50 = vadd.f32 %v1055_v44, %v5703_v1  ;;  %v1281_v11 = vsub.f32 0.0, %v3933_v53  ;;  %v4044_v7 = vpop.eup %2409 }
 0x16c   : > { %v1282_v14 = vsub.f32 0.0, %v3936_v4  ;;  %5704 = vst [vmem:[#allocation12_spill] sm:$0xff] %v4044_v7  ;;  %v1283_v43 = vsub.f32 0.0, %v3941_v25  ;;  %v1284_v57 = vsub.f32 0.0, %v3944_v48  ;;  %v1285_v56 = vsub.f32 0.0, %v3947_v41  ;;  %v4050_v8 = vpop.eup %2411 }
 0x16d   : > { %v1286_v49 = vsub.f32 0.0, %v3950_v45  ;;  %5705 = vst [vmem:[#allocation13_spill] sm:$0xff] %v4050_v8  ;;  %v1287_v44 = vsub.f32 0.0, %v3955_v63  ;;  %v1288_v58 = vsub.f32 0.0, %v3958_v36  ;;  %v1289_v53 = vsub.f32 0.0, %v3961_v19  ;;  %v4056_v10 = vpop.eup %2413 }
 0x16e   : > { %v1290_v4 = vsub.f32 0.0, %v3964_v28  ;;  %5706 = vst [vmem:[#allocation41_spill] sm:$0xff] %v4056_v10  ;;  %v1291_v25 = vsub.f32 0.0, %v3969_v55  ;;  %v1292_v48 = vsub.f32 0.0, %v3972_v16  ;;  %v1293_v41 = vsub.f32 0.0, %v3975_v59  ;;  %v4062_v1 = vpop.eup %2415 }
 0x16f   : > { %v1294_v45 = vsub.f32 0.0, %v3978_v38  ;;  %5707 = vst [vmem:[#allocation42_spill] sm:$0xff] %v4062_v1  ;;  %v1295_v63 = vsub.f32 0.0, %v3983_v39  ;;  %v1296_v36 = vsub.f32 0.0, %v3986_v42  ;;  %v1297_v19 = vsub.f32 0.0, %v3989_v17 }
 0x170   : > { %v1298_v28 = vsub.f32 0.0, %v3992_v24  ;;  %v1299_v10 = vsub.f32 0.0, %v3997_v30  ;;  %v1300_v55 = vsub.f32 0.0, %v4000_v51  ;;  %v1301_v16 = vsub.f32 0.0, %v4003_v47  ;;  %v4079_v51 = vpop.permute.xlu1 %761 }
 0x171   : > { %v1302_v59 = vsub.f32 0.0, %v4006_v46  ;;  %v1303_v38 = vsub.f32 0.0, %v4011_v27  ;;  %v1304_v1 = vsub.f32 0.0, %v4014_v6  ;;  %v1305_v39 = vsub.f32 0.0, %v4017_v18 }
 0x172   : > { %v1306_v42 = vsub.f32 0.0, %v4020_v9  ;;  %v1307_v17 = vsub.f32 0.0, %v4025_v12  ;;  %v1308_v24 = vsub.f32 0.0, %v4028_v26  ;;  %v1309_v30 = vsub.f32 0.0, %v4031_v5 }
 0x173   : > { %v1408_v8 = vmul.f32 1.442695, %v1280_v40  ;;  %v1410_v47 = vmul.f32 1.442695, %v1281_v11  ;;  %v1412_v46 = vmul.f32 1.442695, %v1282_v14  ;;  %v4086_v26 = vsub.f32 %v3520_v22, %v4079_v51 }
 0x174   : > { %v1414_v27 = vmul.f32 1.442695, %v1283_v43  ;;  %v1310_v6 = vsub.f32 0.0, %v4034_v34  ;;  %v1311_v18 = vsub.f32 0.0, %v4039_v50  ;;  %v1416_v9 = vmul.f32 1.442695, %v1284_v57 }
 0x175   : > { %2419 = vpow2.f32 %v1408_v8  ;;  %v1418_v12 = vmul.f32 1.442695, %v1285_v56  ;;  %v1420_v7 = vmul.f32 1.442695, %v1286_v49  ;;  %v1422_v5 = vmul.f32 1.442695, %v1287_v44 }
 0x176   : > { %2421 = vpow2.f32 %v1410_v47  ;;  %v1424_v40 = vmul.f32 1.442695, %v1288_v58  ;;  %v1426_v0 = vmul.f32 1.442695, %v1289_v53  ;;  %v1428_v11 = vmul.f32 1.442695, %v1290_v4 }
 0x177   : > { %2423 = vpow2.f32 %v1412_v46  ;;  %v1430_v14 = vmul.f32 1.442695, %v1291_v25  ;;  %v1432_v43 = vmul.f32 1.442695, %v1292_v48  ;;  %v1434_v34 = vmul.f32 1.442695, %v1293_v41 }
 0x178   : > { %2425 = vpow2.f32 %v1414_v27  ;;  %v1436_v50 = vmul.f32 1.442695, %v1294_v45  ;;  %v1438_v8 = vmul.f32 1.442695, %v1295_v63  ;;  %v1440_v57 = vmul.f32 1.442695, %v1296_v36 }
 0x179   : > { %2427 = vpow2.f32 %v1416_v9  ;;  %v1442_v56 = vmul.f32 1.442695, %v1297_v19  ;;  %v1444_v49 = vmul.f32 1.442695, %v1298_v28  ;;  %v1446_v47 = vmul.f32 1.442695, %v1299_v10 }
 0x17a   : > { %2429 = vpow2.f32 %v1418_v12  ;;  %v1448_v15 = vmul.f32 1.442695, %v1300_v55  ;;  %v4088_v62 = vmul.f32 1.442695, %v1301_v16  ;;  %v4090_v44 = vmul.f32 1.442695, %v1302_v59  ;;  %v4120_v55 = vpop.eup %2417 }
 0x17b   : > { %2431 = vpow2.f32 %v1420_v7  ;;  %v4092_v58 = vmul.f32 1.442695, %v1303_v38  ;;  %v4094_v53 = vmul.f32 1.442695, %v1304_v1  ;;  %v4096_v4 = vmul.f32 1.442695, %v1305_v39 }
 0x17c   : > { %2433 = vpow2.f32 %v1422_v5  ;;  %v4098_v25 = vmul.f32 1.442695, %v1306_v42  ;;  %v4100_v48 = vmul.f32 1.442695, %v1307_v17  ;;  %v4102_v7 = vmul.f32 1.442695, %v1308_v24 }
 0x17d   : > { %2435 = vpow2.f32 %v1424_v40  ;;  %v4104_v10 = vmul.f32 1.442695, %v1309_v30  ;;  %v4106_v41 = vmul.f32 1.442695, %v1310_v6  ;;  %v4108_v45 = vmul.f32 1.442695, %v1311_v18 }
 0x17e   : > { %2437 = vpow2.f32 %v1426_v0  ;;  %v833_v1 = vsub.f32 %v5614_v31, %v4079_v51  ;;  %v834_v63 = vsub.f32 %v5615_v52, %v4079_v51  ;;  %v835_v36 = vsub.f32 %v5616_v2, %v4079_v51  ;;  %5708 = vst [vmem:[#allocation85_spill] sm:$0xff] %v4120_v55  ;;  %v5710_v42 = vld [vmem:[#allocation14_spill] sm:$0xff]  ;;  %v5711_v24 = vld [vmem:[#allocation15_spill] sm:$0xff]  ;;  %v5712_v46 = vld [vmem:[#allocation16_spill] sm:$0xff] }
 0x17f   : > { %2439 = vpow2.f32 %v1428_v11  ;;  %v836_v19 = vsub.f32 %v5617_v21, %v4079_v51  ;;  %v837_v28 = vsub.f32 %v5618_v35, %v4079_v51  ;;  %v838_v16 = vsub.f32 %v5619_v33, %v4079_v51  ;;  %v5714_v18 = vld [vmem:[#allocation17_spill] sm:$0xff]  ;;  %v5715_v12 = vld [vmem:[#allocation18_spill] sm:$0xff]  ;;  %v5716_v40 = vld [vmem:[#allocation19_spill] sm:$0xff] }
 0x180   : > { %2441 = vpow2.f32 %v1430_v14  ;;  %v839_v59 = vsub.f32 %v5620_v3, %v4079_v51  ;;  %v840_v38 = vsub.f32 %v5621_v61, %v4079_v51  ;;  %v841_v17 = vsub.f32 %v5710_v42, %v4079_v51  ;;  %v5718_v14 = vld [vmem:[#allocation20_spill] sm:$0xff] }
 0x181   : > { %2443 = vpow2.f32 %v1432_v43  ;;  %v842_v30 = vsub.f32 %v5711_v24, %v4079_v51  ;;  %v843_v27 = vsub.f32 %v5712_v46, %v4079_v51  ;;  %v844_v9 = vsub.f32 %v5714_v18, %v4079_v51 }
 0x182   : > { %v4128_v39 = vpop.eup %2419  ;;  %2445 = vpow2.f32 %v1434_v34  ;;  %v845_v5 = vsub.f32 %v5715_v12, %v4079_v51  ;;  %v846_v0 = vsub.f32 %v5716_v40, %v4079_v51  ;;  %v847_v43 = vsub.f32 %v5718_v14, %v4079_v51  ;;  %v5719_v34 = vld [vmem:[#allocation21_spill] sm:$0xff] }
 0x183   : > { %5709 = vst [vmem:[#allocation86_spill] sm:$0xff] %v4128_v39  ;;  %v4136_v6 = vpop.eup %2421  ;;  %2447 = vpow2.f32 %v1436_v50  ;;  %v848_v55 = vsub.f32 %v5719_v34, %v4079_v51  ;;  %v5720_v50 = vld [vmem:[#allocation22_spill] sm:$0xff]  ;;  %v850_v60 = vsub.f32 %v5722_v32, %v4079_v51  ;;  %v851_v20 = vsub.f32 %v5723_v54, %v4079_v51  ;;  %v5727_v39 = vld [vmem:[#allocation27_spill] sm:$0xff]  ;;  %v5730_v54 = vld [vmem:[#allocation29_spill] sm:$0xff] }
 0x184   : > { %5713 = vst [vmem:[#allocation87_spill] sm:$0xff] %v4136_v6  ;;  %v4144_v11 = vpop.eup %2423  ;;  %2449 = vpow2.f32 %v1438_v8  ;;  %v849_v23 = vsub.f32 %v5720_v50, %v4079_v51  ;;  %v5724_v8 = vld [vmem:[#allocation25_spill] sm:$0xff]  ;;  %v854_v50 = vsub.f32 %v5727_v39, %v4079_v51  ;;  %v856_v32 = vsub.f32 %v5730_v54, %v4079_v51  ;;  %v5734_v39 = vld [vmem:[#allocation32_spill] sm:$0xff] }
 0x185   : > { %5717 = vst [vmem:[#allocation88_spill] sm:$0xff] %v4144_v11  ;;  %v4152_v37 = vpop.eup %2425  ;;  %2451 = vpow2.f32 %v1440_v57  ;;  %v852_v13 = vsub.f32 %v5724_v8, %v4079_v51  ;;  %v5726_v11 = vld [vmem:[#allocation26_spill] sm:$0xff]  ;;  %v5728_v57 = vld [vmem:[#allocation28_spill] sm:$0xff]  ;;  %v1091_v24 = vmul.f32 %v835_v36, %v835_v36 }
 0x186   : > { %5721 = vst [vmem:[#allocation89_spill] sm:$0xff] %v4152_v37  ;;  %v4160_v29 = vpop.eup %2427  ;;  %2453 = vpow2.f32 %v1442_v56  ;;  %v853_v6 = vsub.f32 %v5726_v11, %v4079_v51  ;;  %v855_v37 = vsub.f32 %v5728_v57, %v4079_v51  ;;  %v5731_v8 = vld [vmem:[#allocation30_spill] sm:$0xff]  ;;  %v5732_v56 = vld [vmem:[#allocation31_spill] sm:$0xff]  ;;  %v859_v11 = vsub.f32 %v5734_v39, %v4079_v51  ;;  %v5735_v57 = vld [vmem:[#allocation33_spill] sm:$0xff] }
 0x187   : > { %5725 = vst [vmem:[#allocation90_spill] sm:$0xff] %v4160_v29  ;;  %v4168_v34 = vpop.eup %2429  ;;  %2455 = vpow2.f32 %v1444_v49  ;;  %v857_v14 = vsub.f32 %v5731_v8, %v4079_v51  ;;  %v858_v29 = vsub.f32 %v5732_v56, %v4079_v51  ;;  %v860_v12 = vsub.f32 %v5735_v57, %v4079_v51  ;;  %v5736_v49 = vld [vmem:[#allocation34_spill] sm:$0xff]  ;;  %v5738_v8 = vld [vmem:[#allocation35_spill] sm:$0xff] }
 0x188   : > { %5729 = vst [vmem:[#allocation91_spill] sm:$0xff] %v4168_v34  ;;  %v4176_v40 = vpop.eup %2431  ;;  %2457 = vpow2.f32 %v1446_v47  ;;  %v861_v34 = vsub.f32 %v5736_v49, %v4079_v51  ;;  %v862_v54 = vsub.f32 %v5738_v8, %v4079_v51  ;;  %v5739_v56 = vld [vmem:[#allocation155_spill] sm:$0xff]  ;;  %v1088_v47 = vmul.f32 %v4086_v26, %v4086_v26 }
 0x189   : > { %5733 = vst [vmem:[#allocation92_spill] sm:$0xff] %v4176_v40  ;;  %v4184_v18 = vpop.eup %2433  ;;  %2459 = vpow2.f32 %v1448_v15  ;;  %v863_v46 = vsub.f32 %v5739_v56, %v4079_v51  ;;  %v1089_v57 = vmul.f32 %v833_v1, %v833_v1  ;;  %v1090_v39 = vmul.f32 %v834_v63, %v834_v63 }
 0x18a   : > { %5737 = vst [vmem:[#allocation93_spill] sm:$0xff] %v4184_v18  ;;  %v4192_v40 = vpop.eup %2435  ;;  %2461 = vpow2.f32 %v4088_v62  ;;  %v1092_v15 = vmul.f32 %v836_v19, %v836_v19  ;;  %v1093_v18 = vmul.f32 %v837_v28, %v837_v28  ;;  %v1094_v8 = vmul.f32 %v838_v16, %v838_v16 }
 0x18b   : > { %5740 = vst [vmem:[#allocation94_spill] sm:$0xff] %v4192_v40  ;;  %v4195_v49 = vpop.eup %2437  ;;  %2463 = vpow2.f32 %v4090_v44  ;;  %v1095_v51 = vmul.f32 %v839_v59, %v839_v59  ;;  %v1096_v26 = vmul.f32 %v840_v38, %v840_v38  ;;  %v1097_v56 = vmul.f32 %v841_v17, %v841_v17 }
 0x18c   : > { %v4198_v42 = vpop.eup %2439  ;;  %2465 = vpow2.f32 %v4092_v58  ;;  %v1098_v62 = vmul.f32 %v842_v30, %v842_v30  ;;  %v1099_v1 = vmul.f32 %v843_v27, %v843_v27  ;;  %v1100_v63 = vmul.f32 %v844_v9, %v844_v9 }
 0x18d   : > { %v4201_v40 = vpop.eup %2441  ;;  %2467 = vpow2.f32 %v4094_v53  ;;  %v1101_v44 = vmul.f32 %v845_v5, %v845_v5  ;;  %v1102_v19 = vmul.f32 %v846_v0, %v846_v0  ;;  %v1103_v28 = vmul.f32 %v847_v43, %v847_v43 }
 0x18e   : > { %v4204_v36 = vpop.eup %2443  ;;  %2469 = vpow2.f32 %v4096_v4  ;;  %v1104_v58 = vmul.f32 %v848_v55, %v848_v55  ;;  %v1105_v59 = vmul.f32 %v849_v23, %v849_v23  ;;  %v1106_v38 = vmul.f32 %v850_v60, %v850_v60 }
 0x18f   : > { %v4207_v16 = vpop.eup %2445  ;;  %2471 = vpow2.f32 %v4098_v25  ;;  %v1107_v53 = vmul.f32 %v851_v20, %v851_v20  ;;  %v1108_v30 = vmul.f32 %v852_v13, %v852_v13  ;;  %v1109_v27 = vmul.f32 %v853_v6, %v853_v6 }
 0x190   : > { %v4210_v17 = vpop.eup %2447  ;;  %2473 = vpow2.f32 %v4100_v48  ;;  %v1110_v4 = vmul.f32 %v854_v50, %v854_v50  ;;  %v1111_v5 = vmul.f32 %v855_v37, %v855_v37  ;;  %v1112_v0 = vmul.f32 %v856_v32, %v856_v32  ;;  %v5743_v50 = vld [vmem:[#allocation53_spill] sm:$0xff]  ;;  %v5744_v32 = vld [vmem:[#allocation54_spill] sm:$0xff] }
 0x191   : > { %v4213_v9 = vpop.eup %2449  ;;  %2475 = vpow2.f32 %v4102_v7  ;;  %v1113_v23 = vmul.f32 %v857_v14, %v857_v14  ;;  %v1114_v60 = vmul.f32 %v858_v29, %v858_v29  ;;  %v1115_v25 = vmul.f32 %v859_v11, %v859_v11  ;;  %v5747_v11 = vld [vmem:[#allocation56_spill] sm:$0xff] }
 0x192   : > { %v4216_v43 = vpop.eup %2451  ;;  %2477 = vpow2.f32 %v4104_v10  ;;  %v1116_v13 = vmul.f32 %v860_v12, %v860_v12  ;;  %v1117_v20 = vmul.f32 %v861_v34, %v861_v34  ;;  %v1118_v48 = vmul.f32 %v862_v54, %v862_v54  ;;  %v5745_v10 = vld [vmem:[#allocation55_spill] sm:$0xff]  ;;  %v5749_v54 = vld [vmem:[#allocation58_spill] sm:$0xff] }
 0x193   : > { %5741 = vst [vmem:[#allocation95_spill] sm:$0xff] %v4216_v43  ;;  %v4219_v55 = vpop.eup %2453  ;;  %2479 = vpow2.f32 %v4106_v41  ;;  %v1119_v7 = vmul.f32 %v863_v46, %v863_v46  ;;  %v4225_v37 = vadd.f32 %v1088_v47, %v5743_v50  ;;  %v4228_v43 = vadd.f32 %v1089_v57, %v5744_v32  ;;  %v5748_v41 = vld [vmem:[#allocation57_spill] sm:$0xff]  ;;  %v5750_v46 = vld [vmem:[#allocation59_spill] sm:$0xff]  ;;  %v5752_v57 = vld [vmem:[#allocation60_spill] sm:$0xff] }
 0x194   : > { %5742 = vst [vmem:[#allocation96_spill] sm:$0xff] %v4219_v55  ;;  %v4222_v6 = vpop.eup %2455  ;;  %v4231_v14 = vadd.f32 %v1090_v39, %v5745_v10  ;;  %v4236_v55 = vadd.f32 %v1091_v24, %v5747_v11  ;;  %v4239_v12 = vadd.f32 %v1092_v15, %v5748_v41  ;;  %v4242_v34 = vadd.f32 %v1093_v18, %v5749_v54  ;;  %v5753_v39 = vld [vmem:[#allocation61_spill] sm:$0xff]  ;;  %v5755_v11 = vld [vmem:[#allocation63_spill] sm:$0xff]  ;;  %v5757_v18 = vld [vmem:[#allocation64_spill] sm:$0xff] }
 0x195   : > { %v4233_v29 = vpop.eup %2457  ;;  %v4245_v47 = vadd.f32 %v1094_v8, %v5750_v46  ;;  %v4250_v32 = vadd.f32 %v1095_v51, %v5752_v57  ;;  %v4253_v10 = vadd.f32 %v1096_v26, %v5753_v39  ;;  %v4259_v15 = vadd.f32 %v1098_v62, %v5755_v11  ;;  %v5758_v8 = vld [vmem:[#allocation65_spill] sm:$0xff]  ;;  %v5760_v57 = vld [vmem:[#allocation67_spill] sm:$0xff] }
 0x196   : > { %5746 = vst [vmem:[#allocation97_spill] sm:$0xff] %v4233_v29  ;;  %v4247_v50 = vpop.eup %2459  ;;  %v5754_v29 = vld [vmem:[#allocation62_spill] sm:$0xff]  ;;  %v4264_v54 = vadd.f32 %v1099_v1, %v5757_v18  ;;  %v4267_v46 = vadd.f32 %v1100_v63, %v5758_v8  ;;  %v4273_v26 = vadd.f32 %v1102_v19, %v5760_v57  ;;  %v5763_v62 = vld [vmem:[#allocation69_spill] sm:$0xff]  ;;  %v5765_v18 = vld [vmem:[#allocation71_spill] sm:$0xff]  ;;  %2481 = vpow2.f32 %v4108_v45 }
 0x197   : > { %5751 = vst [vmem:[#allocation98_spill] sm:$0xff] %v4247_v50  ;;  %v4256_v24 = vadd.f32 %v1097_v56, %v5754_v29  ;;  %v4261_v41 = vpop.eup %2461  ;;  %v5759_v50 = vld [vmem:[#allocation66_spill] sm:$0xff]  ;;  %v5762_v56 = vld [vmem:[#allocation68_spill] sm:$0xff]  ;;  %v4281_v11 = vadd.f32 %v1104_v58, %v5763_v62  ;;  %v4287_v63 = vadd.f32 %v1106_v38, %v5765_v18  ;;  %v5768_v19 = vld [vmem:[#allocation73_spill] sm:$0xff] }
 0x198   : > { %5756 = vst [vmem:[#allocation99_spill] sm:$0xff] %v4261_v41  ;;  %v4270_v51 = vadd.f32 %v1101_v44, %v5759_v50  ;;  %v4275_v39 = vpop.eup %2463  ;;  %v4278_v29 = vadd.f32 %v1103_v28, %v5762_v56  ;;  %v5764_v41 = vld [vmem:[#allocation70_spill] sm:$0xff]  ;;  %v5767_v44 = vld [vmem:[#allocation72_spill] sm:$0xff]  ;;  %v4295_v57 = vadd.f32 %v1108_v30, %v5768_v19  ;;  %v5770_v56 = vld [vmem:[#allocation75_spill] sm:$0xff] }
 0x199   : > { %5761 = vst [vmem:[#allocation100_spill] sm:$0xff] %v4275_v39  ;;  %v4284_v1 = vadd.f32 %v1105_v59, %v5764_v41  ;;  %v4289_v8 = vpop.eup %2465  ;;  %v4292_v50 = vadd.f32 %v1107_v53, %v5767_v44  ;;  %v5769_v39 = vld [vmem:[#allocation74_spill] sm:$0xff]  ;;  %v4301_v58 = vadd.f32 %v1110_v4, %v5770_v56  ;;  %v5772_v59 = vld [vmem:[#allocation76_spill] sm:$0xff]  ;;  %v5773_v38 = vld [vmem:[#allocation77_spill] sm:$0xff] }
 0x19a   : > { %5766 = vst [vmem:[#allocation101_spill] sm:$0xff] %v4289_v8  ;;  %v4298_v28 = vadd.f32 %v1109_v27, %v5769_v39  ;;  %v4303_v62 = vpop.eup %2467  ;;  %v4306_v41 = vadd.f32 %v1111_v5, %v5772_v59  ;;  %v4309_v18 = vadd.f32 %v1112_v0, %v5773_v38  ;;  %v5774_v8 = vld [vmem:[#allocation78_spill] sm:$0xff]  ;;  %v5775_v44 = vld [vmem:[#allocation79_spill] sm:$0xff]  ;;  %v5776_v27 = vld [vmem:[#allocation80_spill] sm:$0xff] }
 0x19b   : > { %5771 = vst [vmem:[#allocation102_spill] sm:$0xff] %v4303_v62  ;;  %v4312_v53 = vadd.f32 %v1113_v23, %v5774_v8  ;;  %v4315_v30 = vadd.f32 %v1114_v60, %v5775_v44  ;;  %v4317_v19 = vpop.eup %2469  ;;  %v4320_v39 = vadd.f32 %v1115_v25, %v5776_v27  ;;  %v5777_v4 = vld [vmem:[#allocation81_spill] sm:$0xff]  ;;  %v5778_v62 = vld [vmem:[#allocation82_spill] sm:$0xff]  ;;  %v5779_v59 = vld [vmem:[#allocation83_spill] sm:$0xff]  ;;  %v1344_v60 = vsub.f32 0.0, %v4225_v37 }
 0x19c   : > { %v4323_v56 = vadd.f32 %v1116_v13, %v5777_v4  ;;  %v4326_v5 = vadd.f32 %v1117_v20, %v5778_v62  ;;  %v4329_v0 = vadd.f32 %v1118_v48, %v5779_v59  ;;  %v4331_v38 = vpop.eup %2471  ;;  %v5781_v23 = vld [vmem:[#allocation84_spill] sm:$0xff]  ;;  %v1345_v44 = vsub.f32 0.0, %v4228_v43 }
 0x19d   : > { %5780 = vst [vmem:[#allocation103_spill] sm:$0xff] %v4331_v38  ;;  %v4334_v8 = vadd.f32 %v1119_v7, %v5781_v23  ;;  %v1346_v25 = vsub.f32 0.0, %v4231_v14  ;;  %v4339_v27 = vpop.eup %2473  ;;  %v1347_v13 = vsub.f32 0.0, %v4236_v55  ;;  %v1348_v20 = vsub.f32 0.0, %v4239_v12 }
 0x19e   : > { %5782 = vst [vmem:[#allocation104_spill] sm:$0xff] %v4339_v27  ;;  %v1349_v48 = vsub.f32 0.0, %v4242_v34  ;;  %v1350_v62 = vsub.f32 0.0, %v4245_v47  ;;  %v4345_v4 = vpop.eup %2475  ;;  %v1351_v7 = vsub.f32 0.0, %v4250_v32  ;;  %v1352_v37 = vsub.f32 0.0, %v4253_v10 }
 0x19f   : > { %5783 = vst [vmem:[#allocation105_spill] sm:$0xff] %v4345_v4  ;;  %v1353_v43 = vsub.f32 0.0, %v4256_v24  ;;  %v1354_v14 = vsub.f32 0.0, %v4259_v15  ;;  %v4351_v59 = vpop.eup %2477  ;;  %v1355_v55 = vsub.f32 0.0, %v4264_v54  ;;  %v1356_v12 = vsub.f32 0.0, %v4267_v46 }
 0x1a0   : > { %5784 = vst [vmem:[#allocation106_spill] sm:$0xff] %v4351_v59  ;;  %v1357_v34 = vsub.f32 0.0, %v4270_v51  ;;  %v1358_v47 = vsub.f32 0.0, %v4273_v26  ;;  %v4357_v23 = vpop.eup %2479  ;;  %v1359_v32 = vsub.f32 0.0, %v4278_v29  ;;  %v1360_v10 = vsub.f32 0.0, %v4281_v11 }
 0x1a1   : > { %5785 = vst [vmem:[#allocation107_spill] sm:$0xff] %v4357_v23  ;;  %v1361_v24 = vsub.f32 0.0, %v4284_v1  ;;  %v1362_v15 = vsub.f32 0.0, %v4287_v63  ;;  %v1363_v59 = vsub.f32 0.0, %v4292_v50  ;;  %v1364_v54 = vsub.f32 0.0, %v4295_v57  ;;  %v4374_v57 = vpop.permute.xlu0 %765 }
 0x1a2   : > { %v1365_v46 = vsub.f32 0.0, %v4298_v28  ;;  %v1366_v51 = vsub.f32 0.0, %v4301_v58  ;;  %v1367_v26 = vsub.f32 0.0, %v4306_v41  ;;  %v1368_v23 = vsub.f32 0.0, %v4309_v18 }
 0x1a3   : > { %v1369_v29 = vsub.f32 0.0, %v4312_v53  ;;  %v1370_v11 = vsub.f32 0.0, %v4315_v30  ;;  %v1371_v1 = vsub.f32 0.0, %v4320_v39  ;;  %v1372_v63 = vsub.f32 0.0, %v4323_v56 }
 0x1a4   : > { %v1373_v50 = vsub.f32 0.0, %v4326_v5  ;;  %v1536_v4 = vmul.f32 1.442695, %v1344_v60  ;;  %v1538_v28 = vmul.f32 1.442695, %v1345_v44  ;;  %v1374_v18 = vsub.f32 0.0, %v4329_v0 }
 0x1a5   : > { %v1540_v58 = vmul.f32 1.442695, %v1346_v25  ;;  %v1542_v41 = vmul.f32 1.442695, %v1347_v13  ;;  %v1375_v53 = vsub.f32 0.0, %v4334_v8  ;;  %v4381_v56 = vsub.f32 %v3520_v22, %v4374_v57 }
 0x1a6   : > { %2483 = vpow2.f32 %v1536_v4  ;;  %v1544_v30 = vmul.f32 1.442695, %v1348_v20  ;;  %v1546_v39 = vmul.f32 1.442695, %v1349_v48  ;;  %v1548_v27 = vmul.f32 1.442695, %v1350_v62 }
 0x1a7   : > { %2485 = vpow2.f32 %v1538_v28  ;;  %v1550_v5 = vmul.f32 1.442695, %v1351_v7  ;;  %v1552_v60 = vmul.f32 1.442695, %v1352_v37  ;;  %v1554_v45 = vmul.f32 1.442695, %v1353_v43 }
 0x1a8   : > { %2487 = vpow2.f32 %v1540_v58  ;;  %v1556_v44 = vmul.f32 1.442695, %v1354_v14  ;;  %v1558_v25 = vmul.f32 1.442695, %v1355_v55  ;;  %v1560_v13 = vmul.f32 1.442695, %v1356_v12 }
 0x1a9   : > { %2489 = vpow2.f32 %v1542_v41  ;;  %v1562_v0 = vmul.f32 1.442695, %v1357_v34  ;;  %v1564_v8 = vmul.f32 1.442695, %v1358_v47  ;;  %v1566_v4 = vmul.f32 1.442695, %v1359_v32 }
 0x1aa   : > { %2491 = vpow2.f32 %v1544_v30  ;;  %v1568_v20 = vmul.f32 1.442695, %v1360_v10  ;;  %v1570_v48 = vmul.f32 1.442695, %v1361_v24  ;;  %v1572_v62 = vmul.f32 1.442695, %v1362_v15 }
 0x1ab   : > { %2493 = vpow2.f32 %v1546_v39  ;;  %v1574_v28 = vmul.f32 1.442695, %v1363_v59  ;;  %v1576_v22 = vmul.f32 1.442695, %v1364_v54  ;;  %v4383_v38 = vmul.f32 1.442695, %v1365_v46  ;;  %v4415_v54 = vpop.eup %2481 }
 0x1ac   : > { %2495 = vpow2.f32 %v1548_v27  ;;  %v4385_v7 = vmul.f32 1.442695, %v1366_v51  ;;  %v4387_v37 = vmul.f32 1.442695, %v1367_v26  ;;  %v4389_v43 = vmul.f32 1.442695, %v1368_v23 }
 0x1ad   : > { %2497 = vpow2.f32 %v1550_v5  ;;  %v4391_v14 = vmul.f32 1.442695, %v1369_v29  ;;  %v4393_v55 = vmul.f32 1.442695, %v1370_v11  ;;  %v4395_v12 = vmul.f32 1.442695, %v1371_v1 }
 0x1ae   : > { %2499 = vpow2.f32 %v1552_v60  ;;  %v4397_v27 = vmul.f32 1.442695, %v1372_v63  ;;  %v4399_v59 = vmul.f32 1.442695, %v1373_v50  ;;  %v4401_v34 = vmul.f32 1.442695, %v1374_v18 }
 0x1af   : > { %2501 = vpow2.f32 %v1554_v45  ;;  %v4403_v47 = vmul.f32 1.442695, %v1375_v53  ;;  %v865_v23 = vsub.f32 %v5614_v31, %v4374_v57  ;;  %v866_v32 = vsub.f32 %v5615_v52, %v4374_v57  ;;  %v5788_v29 = vld [vmem:[#allocation16_spill] sm:$0xff]  ;;  %v5791_v50 = vld [vmem:[#allocation19_spill] sm:$0xff]  ;;  %v5794_v30 = vld [vmem:[#allocation21_spill] sm:$0xff] }
 0x1b0   : > { %2503 = vpow2.f32 %v1556_v44  ;;  %v867_v10 = vsub.f32 %v5616_v2, %v4374_v57  ;;  %v868_v24 = vsub.f32 %v5617_v21, %v4374_v57  ;;  %v869_v15 = vsub.f32 %v5618_v35, %v4374_v57  ;;  %v5786_v2 = vld [vmem:[#allocation14_spill] sm:$0xff]  ;;  %v5787_v35 = vld [vmem:[#allocation15_spill] sm:$0xff]  ;;  %v5793_v18 = vld [vmem:[#allocation20_spill] sm:$0xff] }
 0x1b1   : > { %2505 = vpow2.f32 %v1558_v25  ;;  %v870_v46 = vsub.f32 %v5619_v33, %v4374_v57  ;;  %v871_v31 = vsub.f32 %v5620_v3, %v4374_v57  ;;  %v872_v52 = vsub.f32 %v5621_v61, %v4374_v57  ;;  %v5789_v33 = vld [vmem:[#allocation17_spill] sm:$0xff]  ;;  %v5790_v61 = vld [vmem:[#allocation18_spill] sm:$0xff]  ;;  %v5797_v44 = vld [vmem:[#allocation23_spill] sm:$0xff] }
 0x1b2   : > { %2507 = vpow2.f32 %v1560_v13  ;;  %v873_v21 = vsub.f32 %v5786_v2, %v4374_v57  ;;  %v874_v26 = vsub.f32 %v5787_v35, %v4374_v57  ;;  %v875_v11 = vsub.f32 %v5788_v29, %v4374_v57  ;;  %v5795_v5 = vld [vmem:[#allocation22_spill] sm:$0xff]  ;;  %v5798_v13 = vld [vmem:[#allocation24_spill] sm:$0xff] }
 0x1b3   : > { %v4423_v51 = vpop.eup %2483  ;;  %2509 = vpow2.f32 %v1562_v0  ;;  %v876_v3 = vsub.f32 %v5789_v33, %v4374_v57  ;;  %v877_v63 = vsub.f32 %v5790_v61, %v4374_v57  ;;  %v878_v58 = vsub.f32 %v5791_v50, %v4374_v57  ;;  %v5801_v35 = vld [vmem:[#allocation26_spill] sm:$0xff]  ;;  %v5802_v33 = vld [vmem:[#allocation27_spill] sm:$0xff] }
 0x1b4   : > { %v4431_v1 = vpop.eup %2485  ;;  %2511 = vpow2.f32 %v1564_v8  ;;  %v879_v53 = vsub.f32 %v5793_v18, %v4374_v57  ;;  %v880_v39 = vsub.f32 %v5794_v30, %v4374_v57  ;;  %v881_v60 = vsub.f32 %v5795_v5, %v4374_v57  ;;  %v5799_v8 = vld [vmem:[#allocation25_spill] sm:$0xff] }
 0x1b5   : > { %v4439_v41 = vpop.eup %2487  ;;  %2513 = vpow2.f32 %v1566_v4  ;;  %v882_v25 = vsub.f32 %v5797_v44, %v4374_v57  ;;  %v883_v0 = vsub.f32 %v5798_v13, %v4374_v57  ;;  %v884_v4 = vsub.f32 %v5799_v8, %v4374_v57  ;;  %v5805_v30 = vld [vmem:[#allocation29_spill] sm:$0xff]  ;;  %v5806_v44 = vld [vmem:[#allocation30_spill] sm:$0xff] }
 0x1b6   : > { %5792 = vst [vmem:[#allocation108_spill] sm:$0xff] %v4439_v41  ;;  %v4447_v45 = vpop.eup %2489  ;;  %2515 = vpow2.f32 %v1568_v20  ;;  %v885_v29 = vsub.f32 %v5801_v35, %v4374_v57  ;;  %v886_v61 = vsub.f32 %v5802_v33, %v4374_v57  ;;  %v5803_v20 = vld [vmem:[#allocation28_spill] sm:$0xff]  ;;  %v888_v5 = vsub.f32 %v5805_v30, %v4374_v57 }
 0x1b7   : > { %5796 = vst [vmem:[#allocation109_spill] sm:$0xff] %v4447_v45  ;;  %v4455_v2 = vpop.eup %2491  ;;  %2517 = vpow2.f32 %v1570_v48  ;;  %v887_v50 = vsub.f32 %v5803_v20, %v4374_v57  ;;  %v889_v13 = vsub.f32 %v5806_v44, %v4374_v57  ;;  %v5807_v48 = vld [vmem:[#allocation31_spill] sm:$0xff]  ;;  %v5808_v35 = vld [vmem:[#allocation32_spill] sm:$0xff]  ;;  %v5809_v20 = vld [vmem:[#allocation33_spill] sm:$0xff] }
 0x1b8   : > { %5800 = vst [vmem:[#allocation110_spill] sm:$0xff] %v4455_v2  ;;  %v4463_v18 = vpop.eup %2493  ;;  %2519 = vpow2.f32 %v1572_v62  ;;  %v890_v8 = vsub.f32 %v5807_v48, %v4374_v57  ;;  %v891_v33 = vsub.f32 %v5808_v35, %v4374_v57  ;;  %v892_v45 = vsub.f32 %v5809_v20, %v4374_v57  ;;  %v5810_v62 = vld [vmem:[#allocation34_spill] sm:$0xff]  ;;  %v5812_v44 = vld [vmem:[#allocation35_spill] sm:$0xff] }
 0x1b9   : > { %5804 = vst [vmem:[#allocation111_spill] sm:$0xff] %v4463_v18  ;;  %v4471_v2 = vpop.eup %2495  ;;  %2521 = vpow2.f32 %v1574_v28  ;;  %v4479_v18 = vsub.f32 %v5810_v62, %v4374_v57  ;;  %v4485_v41 = vsub.f32 %v5812_v44, %v4374_v57  ;;  %v5813_v48 = vld [vmem:[#allocation155_spill] sm:$0xff]  ;;  %v4493_v35 = vmul.f32 %v4381_v56, %v4381_v56 }
 0x1ba   : > { %v4481_v30 = vpop.eup %2497  ;;  %2523 = vpow2.f32 %v1576_v22  ;;  %v4489_v28 = vsub.f32 %v5813_v48, %v4374_v57  ;;  %v4498_v62 = vmul.f32 %v865_v23, %v865_v23  ;;  %v4502_v22 = vmul.f32 %v867_v10, %v867_v10 }
 0x1bb   : > { %5811 = vst [vmem:[#allocation112_spill] sm:$0xff] %v4479_v18  ;;  %5814 = vst [vmem:[#allocation113_spill] sm:$0xff] %v4493_v35  ;;  %v4495_v20 = vpop.eup %2499  ;;  %2525 = vpow2.f32 %v4383_v38  ;;  %v4500_v18 = vmul.f32 %v866_v32, %v866_v32  ;;  %v4507_v57 = vmul.f32 %v868_v24, %v868_v24  ;;  %v4509_v48 = vmul.f32 %v869_v15, %v869_v15 }
 0x1bc   : > { %v4504_v44 = vpop.eup %2501  ;;  %2527 = vpow2.f32 %v4385_v7  ;;  %v4511_v56 = vmul.f32 %v870_v46, %v870_v46  ;;  %v4516_v38 = vmul.f32 %v871_v31, %v871_v31  ;;  %v4518_v23 = vmul.f32 %v872_v52, %v872_v52 }
 0x1bd   : > { %v4513_v35 = vpop.eup %2503  ;;  %2529 = vpow2.f32 %v4387_v37  ;;  %v4520_v32 = vmul.f32 %v873_v21, %v873_v21  ;;  %v4525_v7 = vmul.f32 %v874_v26, %v874_v26  ;;  %v4527_v24 = vmul.f32 %v875_v11, %v875_v11 }
 0x1be   : > { %v4522_v10 = vpop.eup %2505  ;;  %2531 = vpow2.f32 %v4389_v43  ;;  %v4529_v15 = vmul.f32 %v876_v3, %v876_v3  ;;  %v4534_v37 = vmul.f32 %v877_v63, %v877_v63  ;;  %v4536_v31 = vmul.f32 %v878_v58, %v878_v58 }
 0x1bf   : > { %v4531_v46 = vpop.eup %2507  ;;  %2533 = vpow2.f32 %v4391_v14  ;;  %v4538_v52 = vmul.f32 %v879_v53, %v879_v53  ;;  %v4544_v43 = vmul.f32 %v880_v39, %v880_v39  ;;  %v4546_v26 = vmul.f32 %v881_v60, %v881_v60 }
 0x1c0   : > { %v4540_v21 = vpop.eup %2509  ;;  %2535 = vpow2.f32 %v4393_v55  ;;  %v4548_v11 = vmul.f32 %v882_v25, %v882_v25  ;;  %v4553_v14 = vmul.f32 %v883_v0, %v883_v0  ;;  %v4555_v63 = vmul.f32 %v884_v4, %v884_v4  ;;  %v4582_v4 = vpop.permute.xlu1 %1670 }
 0x1c1   : > { %v4550_v3 = vpop.eup %2511  ;;  %2537 = vpow2.f32 %v4395_v12  ;;  %v4557_v58 = vmul.f32 %v885_v29, %v885_v29  ;;  %v4562_v55 = vmul.f32 %v886_v61, %v886_v61  ;;  %v4564_v39 = vmul.f32 %v887_v50, %v887_v50  ;;  %v5823_v50 = vld [vmem:[#allocation86_spill] sm:$0xff] }
 0x1c2   : > { %5815 = vst [vmem:[#allocation114_spill] sm:$0xff] %v4553_v14  ;;  %v4559_v53 = vpop.eup %2513  ;;  %2539 = vpow2.f32 %v4397_v27  ;;  %v4566_v60 = vmul.f32 %v888_v5, %v888_v5  ;;  %v4576_v12 = vmul.f32 %v889_v13, %v889_v13  ;;  %v4578_v0 = vmul.f32 %v890_v8, %v890_v8 }
 0x1c3   : > { %5816 = vst [vmem:[#allocation53_spill] sm:$0xff] %v4562_v55  ;;  %5817 = vst [vmem:[#allocation54_spill] sm:$0xff] %v4564_v39  ;;  %v4568_v25 = vpop.eup %2515  ;;  %2541 = vpow2.f32 %v4399_v59  ;;  %v4580_v27 = vmul.f32 %v891_v33, %v891_v33  ;;  %v4587_v61 = vmul.f32 %v892_v45, %v892_v45  ;;  %v1688_v5 = vmul.f32 %v5823_v50, %v4582_v4  ;;  %v5824_v59 = vld [vmem:[#allocation87_spill] sm:$0xff]  ;;  %v5825_v33 = vld [vmem:[#allocation88_spill] sm:$0xff] }
 0x1c4   : > { %5818 = vst [vmem:[#allocation55_spill] sm:$0xff] %v4566_v60  ;;  %5819 = vst [vmem:[#allocation56_spill] sm:$0xff] %v4576_v12  ;;  %v4584_v29 = vpop.eup %2517  ;;  %2543 = vpow2.f32 %v4401_v34  ;;  %v1689_v13 = vmul.f32 %v5824_v59, %v4582_v4  ;;  %v5827_v45 = vld [vmem:[#allocation90_spill] sm:$0xff]  ;;  %v5828_v59 = vld [vmem:[#allocation91_spill] sm:$0xff] }
 0x1c5   : > { %5820 = vst [vmem:[#allocation57_spill] sm:$0xff] %v4578_v0  ;;  %5821 = vst [vmem:[#allocation58_spill] sm:$0xff] %v4580_v27  ;;  %v4593_v8 = vpop.eup %2519  ;;  %2545 = vpow2.f32 %v4403_v47  ;;  %v1690_v27 = vmul.f32 %v5825_v33, %v4582_v4  ;;  %v5826_v0 = vld [vmem:[#allocation89_spill] sm:$0xff]  ;;  %v1693_v12 = vmul.f32 %v5828_v59, %v4582_v4  ;;  %v5829_v60 = vld [vmem:[#allocation92_spill] sm:$0xff]  ;;  %v1700_v59 = vmul.f32 %v4204_v36, %v4582_v4 }
 0x1c6   : > { %5822 = vst [vmem:[#allocation59_spill] sm:$0xff] %v4587_v61  ;;  %v1691_v34 = vmul.f32 %v5826_v0, %v4582_v4  ;;  %v1692_v61 = vmul.f32 %v5827_v45, %v4582_v4  ;;  %v4602_v50 = vpop.eup %2521  ;;  %v1694_v47 = vmul.f32 %v5829_v60, %v4582_v4  ;;  %v5830_v39 = vld [vmem:[#allocation93_spill] sm:$0xff]  ;;  %v5831_v33 = vld [vmem:[#allocation94_spill] sm:$0xff]  ;;  %1816 = vst [vmem:[%s4573_s14] sm:$0xff] %v1688_v5 }
 0x1c7   : > { %v1695_v14 = vmul.f32 %v5830_v39, %v4582_v4  ;;  %v1696_v55 = vmul.f32 %v5831_v33, %v4582_v4  ;;  %1817 = vst [vmem:[%s4573_s14 + $0x8] sm:$0xff] %v1689_v13  ;;  %v4614_v0 = vpop.eup %2523  ;;  %v1697_v45 = vmul.f32 %v4195_v49, %v4582_v4  ;;  %v1698_v60 = vmul.f32 %v4198_v42, %v4582_v4  ;;  %v5832_v36 = vld [vmem:[#allocation95_spill] sm:$0xff] }
 0x1c8   : > { %v1699_v39 = vmul.f32 %v4201_v40, %v4582_v4  ;;  %1818 = vst [vmem:[%s4573_s14 + $0x10] sm:$0xff] %v1690_v27  ;;  %1819 = vst [vmem:[%s4573_s14 + $0x18] sm:$0xff] %v1691_v34  ;;  %v4627_v5 = vpop.eup %2525  ;;  %v1701_v49 = vmul.f32 %v4207_v16, %v4582_v4  ;;  %v1702_v42 = vmul.f32 %v4210_v17, %v4582_v4  ;;  %v5833_v16 = vld [vmem:[#allocation96_spill] sm:$0xff] }
 0x1c9   : > { %1820 = vst [vmem:[%s4573_s14 + $0x20] sm:$0xff] %v1692_v61  ;;  %v1703_v40 = vmul.f32 %v4213_v9, %v4582_v4  ;;  %v1704_v27 = vmul.f32 %v5832_v36, %v4582_v4  ;;  %1821 = vst [vmem:[%s4573_s14 + $0x28] sm:$0xff] %v1693_v12  ;;  %v4641_v61 = vpop.eup %2527  ;;  %v1705_v13 = vmul.f32 %v5833_v16, %v4582_v4  ;;  %v5834_v9 = vld [vmem:[#allocation97_spill] sm:$0xff]  ;;  %v5835_v12 = vld [vmem:[#allocation98_spill] sm:$0xff] }
 0x1ca   : > { %1822 = vst [vmem:[%s4573_s14 + $0x30] sm:$0xff] %v1694_v47  ;;  %1823 = vst [vmem:[%s4573_s14 + $0x38] sm:$0xff] %v1695_v14  ;;  %v1706_v17 = vmul.f32 %v4222_v6, %v4582_v4  ;;  %v1707_v34 = vmul.f32 %v5834_v9, %v4582_v4  ;;  %v1708_v47 = vmul.f32 %v5835_v12, %v4582_v4  ;;  %v4655_v14 = vpop.eup %2529  ;;  %v5837_v6 = vld [vmem:[#allocation100_spill] sm:$0xff]  ;;  %v5838_v16 = vld [vmem:[#allocation101_spill] sm:$0xff] }
 0x1cb   : > { %1824 = vst [vmem:[%s4573_s14 + $0x40] sm:$0xff] %v1696_v55  ;;  %1825 = vst [vmem:[%s4573_s14 + $0x48] sm:$0xff] %v1697_v45  ;;  %v5836_v55 = vld [vmem:[#allocation99_spill] sm:$0xff]  ;;  %v1710_v36 = vmul.f32 %v5837_v6, %v4582_v4  ;;  %v1711_v9 = vmul.f32 %v5838_v16, %v4582_v4  ;;  %v5839_v45 = vld [vmem:[#allocation102_spill] sm:$0xff] }
 0x1cc   : > { %1826 = vst [vmem:[%s4573_s14 + $0x50] sm:$0xff] %v1698_v60  ;;  %1827 = vst [vmem:[%s4573_s14 + $0x58] sm:$0xff] %v1699_v39  ;;  %v1709_v33 = vmul.f32 %v5836_v55, %v4582_v4  ;;  %v1712_v60 = vmul.f32 %v5839_v45, %v4582_v4  ;;  %v4669_v39 = vpop.eup %2531  ;;  %v5840_v12 = vld [vmem:[#allocation103_spill] sm:$0xff]  ;;  %v5841_v6 = vld [vmem:[#allocation104_spill] sm:$0xff] }
 0x1cd   : > { %1828 = vst [vmem:[%s4573_s14 + $0x60] sm:$0xff] %v1700_v59  ;;  %1829 = vst [vmem:[%s4573_s14 + $0x68] sm:$0xff] %v1701_v49  ;;  %v1713_v59 = vmul.f32 %v4317_v19, %v4582_v4  ;;  %v1714_v55 = vmul.f32 %v5840_v12, %v4582_v4  ;;  %v1715_v16 = vmul.f32 %v5841_v6, %v4582_v4  ;;  %v5842_v49 = vld [vmem:[#allocation105_spill] sm:$0xff]  ;;  %v4685_v19 = vpop.eup %2533  ;;  %v5844_v12 = vld [vmem:[#allocation107_spill] sm:$0xff] }
 0x1ce   : > { %1830 = vst [vmem:[%s4573_s14 + $0x70] sm:$0xff] %v1702_v42  ;;  %1831 = vst [vmem:[%s4573_s14 + $0x78] sm:$0xff] %v1703_v40  ;;  %v1716_v42 = vmul.f32 %v5842_v49, %v4582_v4  ;;  %v4683_v40 = vpop.permute.xlu1 %1680  ;;  %v1718_v6 = vmul.f32 %v5844_v12, %v4582_v4  ;;  %v1719_v49 = vmul.f32 %v4415_v54, %v4582_v4  ;;  %v5845_v54 = vld [vmem:[#allocation108_spill] sm:$0xff] }
 0x1cf   : > { %1832 = vst [vmem:[%s4573_s14 + $0x80] sm:$0xff] %v1704_v27  ;;  %1833 = vst [vmem:[%s4573_s14 + $0x88] sm:$0xff] %v1705_v13  ;;  %v5843_v27 = vld [vmem:[#allocation106_spill] sm:$0xff]  ;;  %v1752_v13 = vmul.f32 %v4423_v51, %v4683_v40 }
 0x1d0   : > { %1834 = vst [vmem:[%s4573_s14 + $0x90] sm:$0xff] %v1706_v17  ;;  %1835 = vst [vmem:[%s4573_s14 + $0x98] sm:$0xff] %v1707_v34  ;;  %v1717_v45 = vmul.f32 %v5843_v27, %v4582_v4  ;;  %v2536_v17 = vpop.eup %2535  ;;  %v1753_v34 = vmul.f32 %v4431_v1, %v4683_v40  ;;  %v1754_v4 = vmul.f32 %v5845_v54, %v4683_v40 }
 0x1d1   : > { %1836 = vst [vmem:[%s4573_s14 + $0xa0] sm:$0xff] %v1708_v47  ;;  %1837 = vst [vmem:[%s4573_s14 + $0xa8] sm:$0xff] %v1709_v33  ;;  %v5846_v47 = vld [vmem:[#allocation109_spill] sm:$0xff]  ;;  %v2538_v51 = vpop.eup %2537  ;;  %v1761_v27 = vmul.f32 %v4504_v44, %v4683_v40  ;;  %v1765_v44 = vmul.f32 %v4540_v21, %v4683_v40  ;;  %v1769_v21 = vmul.f32 %v4584_v29, %v4683_v40 }
 0x1d2   : > { %1838 = vst [vmem:[%s4573_s14 + $0xb0] sm:$0xff] %v1710_v36  ;;  %1839 = vst [vmem:[%s4573_s14 + $0xb8] sm:$0xff] %v1711_v9  ;;  %v1755_v33 = vmul.f32 %v5846_v47, %v4683_v40  ;;  %v5847_v36 = vld [vmem:[#allocation110_spill] sm:$0xff]  ;;  %v1773_v29 = vmul.f32 %v4627_v5, %v4683_v40  ;;  %v1777_v5 = vmul.f32 %v4685_v19, %v4683_v40  ;;  %v5850_v47 = vld [vmem:[#allocation37_spill] sm:$0xff] }
 0x1d3   : > { %1840 = vst [vmem:[%s4573_s14 + $0xc0] sm:$0xff] %v1712_v60  ;;  %1841 = vst [vmem:[%s4573_s14 + $0xc8] sm:$0xff] %v1713_v59  ;;  %v1756_v9 = vmul.f32 %v5847_v36, %v4683_v40  ;;  %v5848_v60 = vld [vmem:[#allocation111_spill] sm:$0xff]  ;;  %v1758_v59 = vmul.f32 %v4471_v2, %v4683_v40  ;;  %v1763_v2 = vmul.f32 %v4522_v10, %v4683_v40 }
 0x1d4   : > { %1842 = vst [vmem:[%s4573_s14 + $0xd0] sm:$0xff] %v1714_v55  ;;  %1843 = vst [vmem:[%s4573_s14 + $0xd8] sm:$0xff] %v1715_v16  ;;  %v1757_v1 = vmul.f32 %v5848_v60, %v4683_v40  ;;  %v1759_v55 = vmul.f32 %v4481_v30, %v4683_v40  ;;  %v1760_v16 = vmul.f32 %v4495_v20, %v4683_v40  ;;  %v5854_v60 = vld [vmem:[#allocation40_spill] sm:$0xff] }
 0x1d5   : > { %1844 = vst [vmem:[%s4573_s14 + $0xe0] sm:$0xff] %v1716_v42  ;;  %1845 = vst [vmem:[%s4573_s14 + $0xe8] sm:$0xff] %v1717_v45  ;;  %v2540_v42 = vpop.eup %2539  ;;  %v1762_v45 = vmul.f32 %v4513_v35, %v4683_v40  ;;  %v1764_v30 = vmul.f32 %v4531_v46, %v4683_v40  ;;  %v1766_v35 = vmul.f32 %v4550_v3, %v4683_v40 }
 0x1d6   : > { %1846 = vst [vmem:[%s4573_s14 + $0xf0] sm:$0xff] %v1718_v6  ;;  %1847 = vst [vmem:[%s4573_s14 + $0xf8] sm:$0xff] %v1719_v49  ;;  %v2542_v20 = vpop.eup %2541  ;;  %v1767_v10 = vmul.f32 %v4559_v53, %v4683_v40  ;;  %v1768_v46 = vmul.f32 %v4568_v25, %v4683_v40  ;;  %v1770_v3 = vmul.f32 %v4593_v8, %v4683_v40 }
 0x1d7   : > { %1880 = vst [vmem:[%s4573_s14 + $0x200] sm:$0xff] %v1752_v13  ;;  %1881 = vst [vmem:[%s4573_s14 + $0x208] sm:$0xff] %v1753_v34  ;;  %v2544_v12 = vpop.eup %2543  ;;  %v1771_v53 = vmul.f32 %v4602_v50, %v4683_v40  ;;  %v1772_v25 = vmul.f32 %v4614_v0, %v4683_v40  ;;  %v1774_v8 = vmul.f32 %v4641_v61, %v4683_v40 }
 0x1d8   : > { %1882 = vst [vmem:[%s4573_s14 + $0x210] sm:$0xff] %v1754_v4  ;;  %1883 = vst [vmem:[%s4573_s14 + $0x218] sm:$0xff] %v1755_v33  ;;  %v2546_v6 = vpop.eup %2545  ;;  %v1775_v50 = vmul.f32 %v4655_v14, %v4683_v40  ;;  %v1776_v0 = vmul.f32 %v4669_v39, %v4683_v40  ;;  %v1778_v49 = vmul.f32 %v2536_v17, %v4683_v40  ;;  %v5849_v39 = vld [vmem:[#allocation112_spill] sm:$0xff]  ;;  %v5851_v33 = vld [vmem:[#allocation113_spill] sm:$0xff] }
 0x1d9   : > { %1884 = vst [vmem:[%s4573_s14 + $0x220] sm:$0xff] %v1756_v9  ;;  %1885 = vst [vmem:[%s4573_s14 + $0x228] sm:$0xff] %v1757_v1  ;;  %v1779_v61 = vmul.f32 %v2538_v51, %v4683_v40  ;;  %v1780_v14 = vmul.f32 %v2540_v42, %v4683_v40  ;;  %v1149_v13 = vmul.f32 %v5849_v39, %v5849_v39  ;;  %v5852_v9 = vld [vmem:[#allocation38_spill] sm:$0xff]  ;;  %v5853_v51 = vld [vmem:[#allocation39_spill] sm:$0xff] }
 0x1da   : > { %1886 = vst [vmem:[%s4573_s14 + $0x230] sm:$0xff] %v1758_v59  ;;  %1887 = vst [vmem:[%s4573_s14 + $0x238] sm:$0xff] %v1759_v55  ;;  %v1781_v19 = vmul.f32 %v2542_v20, %v4683_v40  ;;  %v1782_v17 = vmul.f32 %v2544_v12, %v4683_v40  ;;  %v1783_v34 = vmul.f32 %v2546_v6, %v4683_v40  ;;  %v5855_v1 = vld [vmem:[#allocation116_spill] sm:$0xff]  ;;  %v5856_v55 = vld [vmem:[#allocation117_spill] sm:$0xff] }
 0x1db   : > { %1888 = vst [vmem:[%s4573_s14 + $0x240] sm:$0xff] %v1760_v16  ;;  %1889 = vst [vmem:[%s4573_s14 + $0x248] sm:$0xff] %v1761_v27  ;;  %v1150_v54 = vmul.f32 %v4485_v41, %v4485_v41  ;;  %v1151_v4 = vmul.f32 %v4489_v28, %v4489_v28  ;;  %v4799_v36 = vadd.f32 %v5851_v33, %v5850_v47  ;;  %v5857_v42 = vld [vmem:[#allocation118_spill] sm:$0xff]  ;;  %v5858_v27 = vld [vmem:[#allocation119_spill] sm:$0xff] }
 0x1dc   : > { %1890 = vst [vmem:[%s4573_s14 + $0x250] sm:$0xff] %v1762_v45  ;;  %1891 = vst [vmem:[%s4573_s14 + $0x258] sm:$0xff] %v1763_v2  ;;  %v4803_v40 = vadd.f32 %v4498_v62, %v5852_v9  ;;  %v1250_v41 = vadd.f32 %v4500_v18, %v5853_v51  ;;  %v1251_v28 = vadd.f32 %v4502_v22, %v5854_v60  ;;  %v5859_v18 = vld [vmem:[#allocation120_spill] sm:$0xff]  ;;  %v5860_v22 = vld [vmem:[#allocation121_spill] sm:$0xff] }
 0x1dd   : > { %1892 = vst [vmem:[%s4573_s14 + $0x260] sm:$0xff] %v1764_v30  ;;  %1893 = vst [vmem:[%s4573_s14 + $0x268] sm:$0xff] %v1765_v44  ;;  %v4814_v59 = vadd.f32 %v4507_v57, %v5855_v1  ;;  %v4818_v16 = vadd.f32 %v4509_v48, %v5856_v55  ;;  %v4822_v62 = vadd.f32 %v4511_v56, %v5857_v42  ;;  %v5861_v30 = vld [vmem:[#allocation122_spill] sm:$0xff]  ;;  %v5862_v20 = vld [vmem:[#allocation123_spill] sm:$0xff] }
 0x1de   : > { %1894 = vst [vmem:[%s4573_s14 + $0x270] sm:$0xff] %v1766_v35  ;;  %1895 = vst [vmem:[%s4573_s14 + $0x278] sm:$0xff] %v1767_v10  ;;  %v4826_v45 = vadd.f32 %v4516_v38, %v5858_v27  ;;  %v4830_v2 = vadd.f32 %v4518_v23, %v5859_v18  ;;  %v4834_v57 = vadd.f32 %v4520_v32, %v5860_v22  ;;  %v5863_v44 = vld [vmem:[#allocation124_spill] sm:$0xff]  ;;  %v5864_v35 = vld [vmem:[#allocation125_spill] sm:$0xff] }
 0x1df   : > { %1896 = vst [vmem:[%s4573_s14 + $0x280] sm:$0xff] %v1768_v46  ;;  %1897 = vst [vmem:[%s4573_s14 + $0x288] sm:$0xff] %v1769_v21  ;;  %v4838_v48 = vadd.f32 %v4525_v7, %v5861_v30  ;;  %v4842_v56 = vadd.f32 %v4527_v24, %v5862_v20  ;;  %v4846_v38 = vadd.f32 %v4529_v15, %v5863_v44  ;;  %v5865_v10 = vld [vmem:[#allocation126_spill] sm:$0xff]  ;;  %v5866_v46 = vld [vmem:[#allocation127_spill] sm:$0xff]  ;;  %v1376_v20 = vsub.f32 0.0, %v4799_v36 }
 0x1e0   : > { %1898 = vst [vmem:[%s4573_s14 + $0x290] sm:$0xff] %v1770_v3  ;;  %1899 = vst [vmem:[%s4573_s14 + $0x298] sm:$0xff] %v1771_v53  ;;  %v4850_v23 = vadd.f32 %v4534_v37, %v5864_v35  ;;  %v4854_v32 = vadd.f32 %v4536_v31, %v5865_v10  ;;  %v4858_v7 = vadd.f32 %v4538_v52, %v5866_v46  ;;  %v5867_v12 = vld [vmem:[#allocation128_spill] sm:$0xff]  ;;  %v5869_v3 = vld [vmem:[#allocation129_spill] sm:$0xff]  ;;  %v1377_v44 = vsub.f32 0.0, %v4803_v40 }
 0x1e1   : > { %1900 = vst [vmem:[%s4573_s14 + $0x2a0] sm:$0xff] %v1772_v25  ;;  %1901 = vst [vmem:[%s4573_s14 + $0x2a8] sm:$0xff] %v1773_v29  ;;  %v4862_v24 = vadd.f32 %v4544_v43, %v5867_v12  ;;  %v5868_v21 = vld [vmem:[#allocation132_spill] sm:$0xff]  ;;  %v4870_v37 = vadd.f32 %v4546_v26, %v5869_v3  ;;  %v5870_v53 = vld [vmem:[#allocation130_spill] sm:$0xff]  ;;  %v1378_v35 = vsub.f32 0.0, %v1250_v41  ;;  %v1379_v10 = vsub.f32 0.0, %v1251_v28 }
 0x1e2   : > { %1902 = vst [vmem:[%s4573_s14 + $0x2b0] sm:$0xff] %v1774_v8  ;;  %1903 = vst [vmem:[%s4573_s14 + $0x2b8] sm:$0xff] %v1775_v50  ;;  %v4866_v15 = vadd.f32 %v4555_v63, %v5868_v21  ;;  %v4874_v31 = vadd.f32 %v4548_v11, %v5870_v53  ;;  %v5871_v25 = vld [vmem:[#allocation133_spill] sm:$0xff]  ;;  %v5872_v6 = vld [vmem:[#allocation134_spill] sm:$0xff]  ;;  %v1380_v46 = vsub.f32 0.0, %v4814_v59  ;;  %v1381_v12 = vsub.f32 0.0, %v4818_v16 }
 0x1e3   : > { %1904 = vst [vmem:[%s4573_s14 + $0x2c0] sm:$0xff] %v1776_v0  ;;  %1905 = vst [vmem:[%s4573_s14 + $0x2c8] sm:$0xff] %v1777_v5  ;;  %v4878_v52 = vadd.f32 %v4557_v58, %v5871_v25  ;;  %v5873_v29 = vld [vmem:[#allocation53_spill] sm:$0xff]  ;;  %v5874_v8 = vld [vmem:[#allocation131_spill] sm:$0xff]  ;;  %v1382_v21 = vsub.f32 0.0, %v4822_v62  ;;  %v1385_v3 = vsub.f32 0.0, %v4834_v57 }
 0x1e4   : > { %1906 = vst [vmem:[%s4573_s14 + $0x2d0] sm:$0xff] %v1778_v49  ;;  %1907 = vst [vmem:[%s4573_s14 + $0x2d8] sm:$0xff] %v1779_v61  ;;  %v4882_v43 = vadd.f32 %v5873_v29, %v5872_v6  ;;  %v5875_v50 = vld [vmem:[#allocation114_spill] sm:$0xff]  ;;  %v5876_v0 = vld [vmem:[#allocation135_spill] sm:$0xff]  ;;  %v1387_v36 = vsub.f32 0.0, %v4842_v56  ;;  %v1388_v40 = vsub.f32 0.0, %v4846_v38  ;;  %v4941_v56 = vpop.permute.xlu0 %1675 }
 0x1e5   : > { %1908 = vst [vmem:[%s4573_s14 + $0x2e0] sm:$0xff] %v1780_v14  ;;  %1909 = vst [vmem:[%s4573_s14 + $0x2e8] sm:$0xff] %v1781_v19  ;;  %v4886_v63 = vadd.f32 %v5875_v50, %v5874_v8  ;;  %v5877_v5 = vld [vmem:[#allocation54_spill] sm:$0xff]  ;;  %v5878_v49 = vld [vmem:[#allocation136_spill] sm:$0xff]  ;;  %v1389_v41 = vsub.f32 0.0, %v4850_v23  ;;  %v1390_v28 = vsub.f32 0.0, %v4854_v32 }
 0x1e6   : > { %1910 = vst [vmem:[%s4573_s14 + $0x2f0] sm:$0xff] %v1782_v17  ;;  %1911 = vst [vmem:[%s4573_s14 + $0x2f8] sm:$0xff] %v1783_v34  ;;  %v4890_v26 = vadd.f32 %v5877_v5, %v5876_v0  ;;  %v5879_v61 = vld [vmem:[#allocation55_spill] sm:$0xff]  ;;  %v5880_v14 = vld [vmem:[#allocation137_spill] sm:$0xff]  ;;  %v1391_v59 = vsub.f32 0.0, %v4858_v7  ;;  %v1392_v16 = vsub.f32 0.0, %v4862_v24 }
 0x1e7   : > { %v4894_v11 = vadd.f32 %v5879_v61, %v5878_v49  ;;  %v5881_v39 = vld [vmem:[#allocation56_spill] sm:$0xff]  ;;  %v5882_v19 = vld [vmem:[#allocation138_spill] sm:$0xff]  ;;  %v5883_v17 = vld [vmem:[#allocation57_spill] sm:$0xff]  ;;  %v1393_v62 = vsub.f32 0.0, %v4870_v37  ;;  %v1396_v57 = vsub.f32 0.0, %v4866_v15  ;;  %v1398_v38 = vsub.f32 0.0, %v4882_v43 }
 0x1e8   : > { %v4898_v58 = vadd.f32 %v5881_v39, %v5880_v14  ;;  %v4902_v34 = vadd.f32 %v5883_v17, %v5882_v19  ;;  %v5884_v47 = vld [vmem:[#allocation139_spill] sm:$0xff]  ;;  %v5885_v33 = vld [vmem:[#allocation58_spill] sm:$0xff]  ;;  %v5886_v51 = vld [vmem:[#allocation140_spill] sm:$0xff]  ;;  %v1399_v23 = vsub.f32 0.0, %v4890_v26  ;;  %v1600_v15 = vmul.f32 1.442695, %v1376_v20 }
 0x1e9   : > { %v4906_v9 = vadd.f32 %v5885_v33, %v5884_v47  ;;  %v5887_v60 = vld [vmem:[#allocation59_spill] sm:$0xff]  ;;  %v5888_v55 = vld [vmem:[#allocation141_spill] sm:$0xff]  ;;  %v5889_v27 = vld [vmem:[#allocation142_spill] sm:$0xff]  ;;  %v1400_v32 = vsub.f32 0.0, %v4894_v11  ;;  %v1604_v25 = vmul.f32 1.442695, %v1378_v35 }
 0x1ea   : > { %v4910_v1 = vadd.f32 %v5887_v60, %v5886_v51  ;;  %v4913_v42 = vadd.f32 %v1149_v13, %v5888_v55  ;;  %v4916_v18 = vadd.f32 %v1150_v54, %v5889_v27  ;;  %v5890_v22 = vld [vmem:[#allocation43_spill] sm:$0xff]  ;;  %v1383_v13 = vsub.f32 0.0, %v4826_v45  ;;  %v5891_v6 = vld [vmem:[#allocation44_spill] sm:$0xff] }
 0x1eb   : > { %v4919_v30 = vadd.f32 %v1151_v4, %v5890_v22  ;;  %v1384_v54 = vsub.f32 0.0, %v4830_v2  ;;  %v1386_v4 = vsub.f32 0.0, %v4838_v48  ;;  %v1394_v45 = vsub.f32 0.0, %v4874_v31 }
 0x1ec   : > { %v1395_v2 = vsub.f32 0.0, %v4886_v63  ;;  %v1397_v48 = vsub.f32 0.0, %v4878_v52  ;;  %v1401_v7 = vsub.f32 0.0, %v4898_v58  ;;  %v1402_v24 = vsub.f32 0.0, %v4902_v34 }
 0x1ed   : > { %v1403_v37 = vsub.f32 0.0, %v4906_v9  ;;  %v1404_v53 = vsub.f32 0.0, %v4910_v1  ;;  %v1602_v31 = vmul.f32 1.442695, %v1377_v44  ;;  %v1606_v52 = vmul.f32 1.442695, %v1379_v10 }
 0x1ee   : > { %v1720_v29 = vmul.f32 %v5891_v6, %v4941_v56  ;;  %v1405_v43 = vsub.f32 0.0, %v4913_v42  ;;  %v1406_v8 = vsub.f32 0.0, %v4916_v18  ;;  %2547 = vpow2.f32 %v1600_v15  ;;  %v5892_v10 = vld [vmem:[#allocation45_spill] sm:$0xff]  ;;  %v5904_v15 = vld [vmem:[#allocation147_spill] sm:$0xff] }
 0x1ef   : > { %v1608_v50 = vmul.f32 1.442695, %v1380_v46  ;;  %v1407_v63 = vsub.f32 0.0, %v4919_v30  ;;  %2549 = vpow2.f32 %v1602_v31  ;;  %v1610_v0 = vmul.f32 1.442695, %v1381_v12  ;;  %v5893_v12 = vld [vmem:[#allocation46_spill] sm:$0xff] }
 0x1f0   : > { %v1612_v5 = vmul.f32 1.442695, %v1382_v21  ;;  %1848 = vst [vmem:[%s4573_s14 + $0x100] sm:$0xff] %v1720_v29  ;;  %2551 = vpow2.f32 %v1604_v25  ;;  %v1614_v26 = vmul.f32 1.442695, %v1383_v13  ;;  %v1721_v46 = vmul.f32 %v5892_v10, %v4941_v56  ;;  %v5894_v13 = vld [vmem:[#allocation47_spill] sm:$0xff] }
 0x1f1   : > { %v1616_v49 = vmul.f32 1.442695, %v1384_v54  ;;  %v1618_v61 = vmul.f32 1.442695, %v1385_v3  ;;  %2553 = vpow2.f32 %v1606_v52  ;;  %v1620_v11 = vmul.f32 1.442695, %v1386_v4 }
 0x1f2   : > { %v1622_v14 = vmul.f32 1.442695, %v1387_v36  ;;  %v1624_v39 = vmul.f32 1.442695, %v1388_v40  ;;  %2555 = vpow2.f32 %v1608_v50  ;;  %v1626_v58 = vmul.f32 1.442695, %v1389_v41  ;;  %v4990_v41 = vpop.permute.xlu1 %1685 }
 0x1f3   : > { %v1628_v19 = vmul.f32 1.442695, %v1390_v28  ;;  %v1630_v17 = vmul.f32 1.442695, %v1391_v59  ;;  %2557 = vpow2.f32 %v1610_v0  ;;  %v1632_v34 = vmul.f32 1.442695, %v1392_v16 }
 0x1f4   : > { %v4956_v47 = vmul.f32 1.442695, %v1393_v62  ;;  %v4958_v33 = vmul.f32 1.442695, %v1394_v45  ;;  %2559 = vpow2.f32 %v1612_v5  ;;  %v4960_v9 = vmul.f32 1.442695, %v1395_v2 }
 0x1f5   : > { %v4962_v51 = vmul.f32 1.442695, %v1396_v57  ;;  %v4964_v60 = vmul.f32 1.442695, %v1397_v48  ;;  %2561 = vpow2.f32 %v1614_v26  ;;  %v4966_v1 = vmul.f32 1.442695, %v1398_v38 }
 0x1f6   : > { %v4968_v55 = vmul.f32 1.442695, %v1399_v23  ;;  %v4970_v27 = vmul.f32 1.442695, %v1400_v32  ;;  %2563 = vpow2.f32 %v1616_v49  ;;  %v4972_v22 = vmul.f32 1.442695, %v1401_v7 }
 0x1f7   : > { %v4974_v20 = vmul.f32 1.442695, %v1402_v24  ;;  %v4976_v44 = vmul.f32 1.442695, %v1403_v37  ;;  %2565 = vpow2.f32 %v1618_v61  ;;  %v4978_v35 = vmul.f32 1.442695, %v1404_v53 }
 0x1f8   : > { %v1722_v21 = vmul.f32 %v5893_v12, %v4941_v56  ;;  %2567 = vpow2.f32 %v1620_v11  ;;  %v1723_v54 = vmul.f32 %v5894_v13, %v4941_v56  ;;  %v5895_v3 = vld [vmem:[#allocation48_spill] sm:$0xff]  ;;  %v5896_v36 = vld [vmem:[#allocation49_spill] sm:$0xff]  ;;  %v5897_v28 = vld [vmem:[#allocation50_spill] sm:$0xff]  ;;  %1849 = vst [vmem:[%s4573_s14 + $0x108] sm:$0xff] %v1721_v46  ;;  %v1733_v31 = vmul.f32 %v5904_v15, %v4941_v56 }
 0x1f9   : > { %v1724_v4 = vmul.f32 %v5895_v3, %v4941_v56  ;;  %v1725_v40 = vmul.f32 %v5896_v36, %v4941_v56  ;;  %2569 = vpow2.f32 %v1622_v14  ;;  %v1726_v59 = vmul.f32 %v5897_v28, %v4941_v56  ;;  %v5898_v16 = vld [vmem:[#allocation51_spill] sm:$0xff]  ;;  %v5899_v45 = vld [vmem:[#allocation52_spill] sm:$0xff]  ;;  %v5902_v32 = vld [vmem:[#allocation145_spill] sm:$0xff] }
 0x1fa   : > { %v1727_v62 = vmul.f32 %v5898_v16, %v4941_v56  ;;  %v1728_v2 = vmul.f32 %v5899_v45, %v4941_v56  ;;  %1850 = vst [vmem:[%s4573_s14 + $0x110] sm:$0xff] %v1722_v21  ;;  %2571 = vpow2.f32 %v1624_v39  ;;  %v5900_v57 = vld [vmem:[#allocation143_spill] sm:$0xff]  ;;  %v5901_v38 = vld [vmem:[#allocation144_spill] sm:$0xff]  ;;  %v1731_v7 = vmul.f32 %v5902_v32, %v4941_v56  ;;  %1851 = vst [vmem:[%s4573_s14 + $0x118] sm:$0xff] %v1723_v54 }
 0x1fb   : > { %v1729_v48 = vmul.f32 %v5900_v57, %v4941_v56  ;;  %v1730_v23 = vmul.f32 %v5901_v38, %v4941_v56  ;;  %1852 = vst [vmem:[%s4573_s14 + $0x120] sm:$0xff] %v1724_v4  ;;  %1853 = vst [vmem:[%s4573_s14 + $0x128] sm:$0xff] %v1725_v40  ;;  %v2548_v24 = vpop.eup %2547  ;;  %2573 = vpow2.f32 %v1626_v58  ;;  %v5903_v37 = vld [vmem:[#allocation146_spill] sm:$0xff]  ;;  %v5905_v25 = vld [vmem:[#allocation148_spill] sm:$0xff] }
 0x1fc   : > { %v1732_v53 = vmul.f32 %v5903_v37, %v4941_v56  ;;  %v1734_v52 = vmul.f32 %v5905_v25, %v4941_v56  ;;  %1854 = vst [vmem:[%s4573_s14 + $0x130] sm:$0xff] %v1726_v59  ;;  %1855 = vst [vmem:[%s4573_s14 + $0x138] sm:$0xff] %v1727_v62  ;;  %v2550_v6 = vpop.eup %2549  ;;  %2575 = vpow2.f32 %v1628_v19  ;;  %v1784_v29 = vmul.f32 %v2548_v24, %v4990_v41  ;;  %v5906_v50 = vld [vmem:[#allocation149_spill] sm:$0xff]  ;;  %v5907_v5 = vld [vmem:[#allocation150_spill] sm:$0xff] }
 0x1fd   : > { %1856 = vst [vmem:[%s4573_s14 + $0x140] sm:$0xff] %v1728_v2  ;;  %v1735_v0 = vmul.f32 %v5906_v50, %v4941_v56  ;;  %v1736_v26 = vmul.f32 %v5907_v5, %v4941_v56  ;;  %1857 = vst [vmem:[%s4573_s14 + $0x148] sm:$0xff] %v1729_v48  ;;  %v2552_v49 = vpop.eup %2551  ;;  %2577 = vpow2.f32 %v1630_v17  ;;  %v1785_v61 = vmul.f32 %v2550_v6, %v4990_v41  ;;  %v5908_v11 = vld [vmem:[#allocation151_spill] sm:$0xff]  ;;  %v5909_v39 = vld [vmem:[#allocation152_spill] sm:$0xff] }
 0x1fe   : > { %1858 = vst [vmem:[%s4573_s14 + $0x150] sm:$0xff] %v1730_v23  ;;  %1859 = vst [vmem:[%s4573_s14 + $0x158] sm:$0xff] %v1731_v7  ;;  %v1737_v14 = vmul.f32 %v5908_v11, %v4941_v56  ;;  %v1738_v58 = vmul.f32 %v5909_v39, %v4941_v56  ;;  %v2554_v19 = vpop.eup %2553  ;;  %2579 = vpow2.f32 %v1632_v34  ;;  %v1786_v10 = vmul.f32 %v2552_v49, %v4990_v41  ;;  %v5910_v17 = vld [vmem:[#allocation153_spill] sm:$0xff]  ;;  %v5911_v12 = vld [vmem:[#allocation115_spill] sm:$0xff] }
 0x1ff   : > { %1860 = vst [vmem:[%s4573_s14 + $0x160] sm:$0xff] %v1732_v53  ;;  %1861 = vst [vmem:[%s4573_s14 + $0x168] sm:$0xff] %v1733_v31  ;;  %v1739_v46 = vmul.f32 %v5910_v17, %v4941_v56  ;;  %v1740_v21 = vmul.f32 %v5911_v12, %v4941_v56  ;;  %v2556_v13 = vpop.eup %2555  ;;  %2581 = vpow2.f32 %v4956_v47  ;;  %v1787_v54 = vmul.f32 %v2554_v19, %v4990_v41  ;;  %v5912_v34 = vld [vmem:[#allocation6_spill] sm:$0xff]  ;;  %v5913_v4 = vld [vmem:[#allocation7_spill] sm:$0xff] }
 0x200   : > { %1862 = vst [vmem:[%s4573_s14 + $0x170] sm:$0xff] %v1734_v52  ;;  %1912 = vst [vmem:[%s4573_s14 + $0x300] sm:$0x3f] %v1784_v29  ;;  %v1741_v3 = vmul.f32 %v5912_v34, %v4941_v56  ;;  %v1742_v36 = vmul.f32 %v5913_v4, %v4941_v56  ;;  %v2558_v40 = vpop.eup %2557  ;;  %2583 = vpow2.f32 %v4958_v33  ;;  %v1788_v28 = vmul.f32 %v2556_v13, %v4990_v41  ;;  %v5914_v47 = vld [vmem:[#allocation8_spill] sm:$0xff]  ;;  %v5915_v16 = vld [vmem:[#allocation9_spill] sm:$0xff] }
 0x201   : > { %1863 = vst [vmem:[%s4573_s14 + $0x178] sm:$0xff] %v1735_v0  ;;  %1864 = vst [vmem:[%s4573_s14 + $0x180] sm:$0xff] %v1736_v26  ;;  %v1743_v59 = vmul.f32 %v5914_v47, %v4941_v56  ;;  %v1744_v62 = vmul.f32 %v5915_v16, %v4941_v56  ;;  %v2560_v45 = vpop.eup %2559  ;;  %2585 = vpow2.f32 %v4960_v9  ;;  %v1789_v2 = vmul.f32 %v2558_v40, %v4990_v41  ;;  %v5916_v33 = vld [vmem:[#allocation10_spill] sm:$0xff]  ;;  %v5917_v48 = vld [vmem:[#allocation11_spill] sm:$0xff] }
 0x202   : > { %1913 = vst [vmem:[%s4573_s14 + $0x308] sm:$0x3f] %v1785_v61  ;;  %1865 = vst [vmem:[%s4573_s14 + $0x188] sm:$0xff] %v1737_v14  ;;  %v1745_v57 = vmul.f32 %v5916_v33, %v4941_v56  ;;  %v1746_v38 = vmul.f32 %v5917_v48, %v4941_v56  ;;  %v2562_v23 = vpop.eup %2561  ;;  %2587 = vpow2.f32 %v4962_v51  ;;  %v1790_v9 = vmul.f32 %v2560_v45, %v4990_v41  ;;  %v5918_v32 = vld [vmem:[#allocation12_spill] sm:$0xff]  ;;  %v5919_v24 = vld [vmem:[#allocation13_spill] sm:$0xff] }
 0x203   : > { %1866 = vst [vmem:[%s4573_s14 + $0x190] sm:$0xff] %v1738_v58  ;;  %1914 = vst [vmem:[%s4573_s14 + $0x310] sm:$0x3f] %v1786_v10  ;;  %v1747_v7 = vmul.f32 %v5918_v32, %v4941_v56  ;;  %v1748_v37 = vmul.f32 %v5919_v24, %v4941_v56  ;;  %v2564_v53 = vpop.eup %2563  ;;  %2589 = vpow2.f32 %v4964_v60  ;;  %v1791_v15 = vmul.f32 %v2562_v23, %v4990_v41  ;;  %v5920_v51 = vld [vmem:[#allocation41_spill] sm:$0xff]  ;;  %v5921_v25 = vld [vmem:[#allocation42_spill] sm:$0xff] }
 0x204   : > { %1867 = vst [vmem:[%s4573_s14 + $0x198] sm:$0xff] %v1739_v46  ;;  %1868 = vst [vmem:[%s4573_s14 + $0x1a0] sm:$0xff] %v1740_v21  ;;  %v1749_v31 = vmul.f32 %v5920_v51, %v4941_v56  ;;  %v1750_v52 = vmul.f32 %v5921_v25, %v4941_v56  ;;  %v1945_v6 = vld [vmem:[%s2802_s20] sm:$0x1]  ;;  %v2566_v29 = vpop.eup %2565  ;;  %2591 = vpow2.f32 %v4966_v1  ;;  %v1658_v60 = vmul.f32 1.442695, %v1405_v43  ;;  %v2063_v43 = vpop.permute.xlu0 %2062 }
 0x205   : > { %1915 = vst [vmem:[%s4573_s14 + $0x318] sm:$0x3f] %v1787_v54  ;;  %1869 = vst [vmem:[%s4573_s14 + $0x1a8] sm:$0xff] %v1741_v3  ;;  %v1792_v50 = vmul.f32 %v2564_v53, %v4990_v41  ;;  %v5922_v0 = vld [vmem:[#allocation85_spill] sm:$0xff]  ;;  %v2568_v26 = vpop.eup %2567  ;;  %2593 = vpow2.f32 %v4968_v55  ;;  %v1660_v1 = vmul.f32 1.442695, %v1406_v8  ;;  %v1793_v42 = vmul.f32 %v2566_v29, %v4990_v41 }
 0x206   : > { %1870 = vst [vmem:[%s4573_s14 + $0x1b0] sm:$0xff] %v1742_v36  ;;  %1916 = vst [vmem:[%s4573_s14 + $0x320] sm:$0x3f] %v1788_v28  ;;  %v1751_v5 = vmul.f32 %v5922_v0, %v4941_v56  ;;  %v2068_v56 = vld [vmem:[%s2899_s12] sm:$0x7]  ;;  %v2570_v49 = vpop.eup %2569  ;;  %2595 = vpow2.f32 %v4970_v27  ;;  %v1794_v61 = vmul.f32 %v2568_v26, %v4990_v41  ;;  %v1946_v18 = vsub.f32 0.0, %v1945_v6 }
 0x207   : > { %1871 = vst [vmem:[%s4573_s14 + $0x1b8] sm:$0xff] %v1743_v59  ;;  %1872 = vst [vmem:[%s4573_s14 + $0x1c0] sm:$0xff] %v1744_v62  ;;  %v2572_v8 = vpop.eup %2571  ;;  %2597 = vpow2.f32 %v4972_v22  ;;  %v1795_v55 = vmul.f32 %v2570_v49, %v4990_v41  ;;  %v5923_v27 = vld [vmem:[#allocation36_spill] sm:$0xff]  ;;  %v5924_v39 = vld [vmem:[#allocation154_spill] sm:$0xff]  ;;  %v2069_v19 = vsub.f32 %v2068_v56, %v2063_v43  ;;  %v1662_v17 = vmul.f32 1.442695, %v1407_v63 }
 0x208   : > { %1917 = vst [vmem:[%s4573_s14 + $0x328] sm:$0x3f] %v1789_v2  ;;  %1873 = vst [vmem:[%s4573_s14 + $0x1c8] sm:$0xff] %v1745_v57  ;;  %v2574_v11 = vpop.eup %2573  ;;  %2599 = vpow2.f32 %v4974_v20  ;;  %v1796_v14 = vmul.f32 %v2572_v8, %v4990_v41  ;;  %v5925_v58 = vld [vmem:[#allocation5_spill] sm:$0xff]  ;;  %v1947_v21 = vmul.f32 1.442695, %v1946_v18 }
 0x209   : > { %1874 = vst [vmem:[%s4573_s14 + $0x1d0] sm:$0xff] %v1746_v38  ;;  %1918 = vst [vmem:[%s4573_s14 + $0x330] sm:$0x3f] %v1790_v9  ;;  %v2065_v22 = vsub.f32 %v5925_v58, %v2063_v43  ;;  %v2576_v10 = vpop.eup %2575  ;;  %2601 = vpow2.f32 %v4976_v44  ;;  %v1797_v46 = vmul.f32 %v2574_v11, %v4990_v41 }
 0x20a   : > { %1875 = vst [vmem:[%s4573_s14 + $0x1d8] sm:$0xff] %v1747_v7  ;;  %1876 = vst [vmem:[%s4573_s14 + $0x1e0] sm:$0xff] %v1748_v37  ;;  %v2578_v20 = vpop.eup %2577  ;;  %2603 = vpow2.f32 %v4978_v35  ;;  %v1798_v12 = vmul.f32 %v2576_v10, %v4990_v41 }
 0x20b   : > { %1919 = vst [vmem:[%s4573_s14 + $0x338] sm:$0x3f] %v1791_v15  ;;  %1877 = vst [vmem:[%s4573_s14 + $0x1e8] sm:$0xff] %v1749_v31  ;;  %v2580_v44 = vpop.eup %2579  ;;  %2605 = vpow2.f32 %v1658_v60  ;;  %v1799_v30 = vmul.f32 %v2578_v20, %v4990_v41 }
 0x20c   : > { %1878 = vst [vmem:[%s4573_s14 + $0x1f0] sm:$0xff] %v1750_v52  ;;  %1920 = vst [vmem:[%s4573_s14 + $0x340] sm:$0x3f] %v1792_v50  ;;  %v2582_v63 = vpop.eup %2581  ;;  %2607 = vpow2.f32 %v1660_v1  ;;  %v1800_v35 = vmul.f32 %v2580_v44, %v4990_v41 }
 0x20d   : > { %1879 = vst [vmem:[%s4573_s14 + $0x1f8] sm:$0xff] %v1751_v5  ;;  %1952 = vst.msk [vmem:[%s2826_s22] sm:$0x1] %vm1951_vm1, %v1945_v6  ;;  %v2584_v13 = vpop.eup %2583  ;;  %2609 = vpow2.f32 %v1662_v17  ;;  %v1801_v54 = vmul.f32 %v2582_v63, %v4990_v41 }
 0x20e   : > { %1921 = vst [vmem:[%s4573_s14 + $0x348] sm:$0x3f] %v1793_v42  ;;  %2052 = vst.msk [vmem:[%s2826_s22 + $0x1] sm:$0x1] %vm2051_vm2, %v5923_v27  ;;  %v2586_v34 = vpop.eup %2585  ;;  %v1802_v3 = vmul.f32 %v2584_v13, %v4990_v41  ;;  %2611 = vpow2.f32 %v1947_v21 }
 0x20f   : > { %1922 = vst [vmem:[%s4573_s14 + $0x350] sm:$0x3f] %v1794_v61  ;;  %2059 = vst.msk [vmem:[%s2826_s22 + $0x1] sm:$0x2] %vm2058_vm3, %v5924_v39  ;;  %v2588_v4 = vpop.eup %2587  ;;  %v1803_v36 = vmul.f32 %v2586_v34, %v4990_v41 }
 0x210   : > { %1923 = vst [vmem:[%s4573_s14 + $0x358] sm:$0x3f] %v1795_v55  ;;  %1924 = vst [vmem:[%s4573_s14 + $0x360] sm:$0x3f] %v1796_v14  ;;  %v2590_v40 = vpop.eup %2589  ;;  %v1804_v28 = vmul.f32 %v2588_v4, %v4990_v41 }
 0x211   : > { %2067 = vst.msk [vmem:[%s2826_s22 + $0x3] sm:$0x7] %vm2066_vm4, %v2065_v22  ;;  %2070 = vst [vmem:[%s370_s18] sm:$0x7] %v2069_v19  ;;  %v2592_v47 = vpop.eup %2591  ;;  %v1805_v59 = vmul.f32 %v2590_v40, %v4990_v41 }
 0x212   : > { %1925 = vst [vmem:[%s4573_s14 + $0x368] sm:$0x3f] %v1797_v46  ;;  %1926 = vst [vmem:[%s4573_s14 + $0x370] sm:$0x3f] %v1798_v12  ;;  %v2594_v16 = vpop.eup %2593  ;;  %v1806_v62 = vmul.f32 %v2592_v47, %v4990_v41 }
 0x213   : > { %1927 = vst [vmem:[%s4573_s14 + $0x378] sm:$0x3f] %v1799_v30  ;;  %1928 = vst [vmem:[%s4573_s14 + $0x380] sm:$0x3f] %v1800_v35  ;;  %v2596_v45 = vpop.eup %2595  ;;  %v1807_v2 = vmul.f32 %v2594_v16, %v4990_v41 }
 0x214   : > { %1929 = vst [vmem:[%s4573_s14 + $0x388] sm:$0x3f] %v1801_v54  ;;  %1930 = vst [vmem:[%s4573_s14 + $0x390] sm:$0x3f] %v1802_v3  ;;  %v2598_v33 = vpop.eup %2597  ;;  %v1808_v57 = vmul.f32 %v2596_v45, %v4990_v41 }
 0x215   : > { %1931 = vst [vmem:[%s4573_s14 + $0x398] sm:$0x3f] %v1803_v36  ;;  %1932 = vst [vmem:[%s4573_s14 + $0x3a0] sm:$0x3f] %v1804_v28  ;;  %v2600_v48 = vpop.eup %2599  ;;  %v1809_v38 = vmul.f32 %v2598_v33, %v4990_v41 }
 0x216   : > { %1933 = vst [vmem:[%s4573_s14 + $0x3a8] sm:$0x3f] %v1805_v59  ;;  %1934 = vst [vmem:[%s4573_s14 + $0x3b0] sm:$0x3f] %v1806_v62  ;;  %v2602_v23 = vpop.eup %2601  ;;  %v1810_v9 = vmul.f32 %v2600_v48, %v4990_v41 }
 0x217   : > { %1935 = vst [vmem:[%s4573_s14 + $0x3b8] sm:$0x3f] %v1807_v2  ;;  %1936 = vst [vmem:[%s4573_s14 + $0x3c0] sm:$0x3f] %v1808_v57  ;;  %v2604_v32 = vpop.eup %2603  ;;  %v1811_v7 = vmul.f32 %v2602_v23, %v4990_v41 }
 0x218   : > { %1937 = vst [vmem:[%s4573_s14 + $0x3c8] sm:$0x3f] %v1809_v38  ;;  %v2606_v24 = vpop.eup %2605  ;;  %v1812_v37 = vmul.f32 %v2604_v32, %v4990_v41  ;;  %1938 = vst [vmem:[%s4573_s14 + $0x3d0] sm:$0x3f] %v1810_v9 }
 0x219   : > { %v2608_v53 = vpop.eup %2607  ;;  %v1813_v15 = vmul.f32 %v2606_v24, %v4990_v41  ;;  %1939 = vst [vmem:[%s4573_s14 + $0x3d8] sm:$0x3f] %v1811_v7 }
 0x21a   : > { %v2610_v51 = vpop.eup %2609  ;;  %v1814_v31 = vmul.f32 %v2608_v53, %v4990_v41  ;;  %1940 = vst [vmem:[%s4573_s14 + $0x3e0] sm:$0x3f] %v1812_v37 }
 0x21b   : > { %v2612_v25 = vpop.eup %2611  ;;  %v1815_v52 = vmul.f32 %v2610_v51, %v4990_v41  ;;  %1941 = vst [vmem:[%s4573_s14 + $0x3e8] sm:$0x3f] %v1813_v15 }
 0x21c   : > { %1942 = vst [vmem:[%s4573_s14 + $0x3f0] sm:$0x3f] %v1814_v31  ;;  %v1949_v6 = vadd.f32 1.0, %v2612_v25 }
 0x21d   : > { %1943 = vst [vmem:[%s4573_s14 + $0x3f8] sm:$0x3f] %v1815_v52 }
 0x21e   : > { %2613 = vrcp.f32 %v1949_v6 }
 0x22b   : > { %v2614_v29 = vpop.eup %2613 }
 0x22c   : > { %v1953_v60 = vmul.f32 48.828125, %v2614_v29 }
 0x22e   : > { %1955 = vst.msk [vmem:[%s2826_s22] sm:$0x1] %vm1954_vm5, %v1953_v60 }
 0x22f PF: > { %p18_p8 = scmp.ge.s32.totalorder %s2746_s29, 4   ;;  %s5926_s24 = smov %s2669_s25 }
 0x230   : > { %s5927_s25 = smov %s2673_s26  ;;  %s5928_s26 = smov %s2756_s9 }
 0x231   : > { %s5929_s27 = smov %s2746_s29  ;;  %20 = sbr.rel (!%p18_p8) target bundleno = 3 (0x3), region = 113 }
 0x236   :  { %2120 = vsyncpa [#allocation3], 1 }
 0x237   :  { %2122 = vsyncpa [#allocation3 + $0x1], 1 }

</bundles_post_ra>
